<compile_context>
chip_gen: v5e
topology: v5e:2x2
jax: 0.10.0
libtpu: 0.0.40
codegen_flags: <defaults>
</compile_context>

<pallas_src>
import functools

import jax
import jax.numpy as jnp
from jax.experimental import pallas as pl
from jax.experimental.pallas import tpu as pltpu


# ----------------------------- Fused CBAM kernel -----------------------------
def cbam_kernel(x_ref, w1_ref, w2_ref, wsp_ref, bsp_ref, out_ref,
                pad_ref, saf_ref, *, H, W):
    """Fused CBAM forward for one batch sample in lane-dense (C, H*W) layout."""
    x2 = x_ref[0].astype(jnp.float32)                        # (C, H*W)

    # ---------------- channel attention ----------------
    # AdaptiveAvgPool2d(1) / AdaptiveMaxPool2d(1): reduce over the lane axis.
    avg = jnp.mean(x2, axis=1, keepdims=True)                # (C, 1)
    mx = jnp.max(x2, axis=1, keepdims=True)                  # (C, 1)
    pooled = jnp.concatenate([avg, mx], axis=1)              # (C, 2) cols = [avg, max]

    # Shared MLP: Conv1x1(C->C/r, no bias) -> ReLU -> Conv1x1(C/r->C, no bias)
    h = jnp.maximum(
        jnp.dot(w1_ref[...], pooled, preferred_element_type=jnp.float32), 0.0)  # (hid, 2)
    o = jnp.dot(w2_ref[...], h, preferred_element_type=jnp.float32)             # (C, 2)

    ca = jax.nn.sigmoid(o[:, 0:1] + o[:, 1:2])               # (C, 1)
    out1 = x2 * ca                                           # (C, H*W), stays in VMEM/vregs

    # Channel-wise mean / max maps (torch.mean/max over dim=1): sublane reduces.
    cm = jnp.mean(out1, axis=0, keepdims=True)               # (1, H*W)
    cx = jnp.max(out1, axis=0, keepdims=True)                # (1, H*W)

    # ---------------- spatial attention ----------------
    # Build the zero-padded (pad=3) 2D map directly in VMEM scratch.
    pad_ref[...] = jnp.zeros(pad_ref.shape, pad_ref.dtype)
    for y in range(H):
        pad_ref[0, y + 3:y + 4, 3:3 + W] = cm[:, y * W:(y + 1) * W]
        pad_ref[1, y + 3:y + 4, 3:3 + W] = cx[:, y * W:(y + 1) * W]

    # Hoist all 98 SMEM scalar weight reads out of the MAC chain.
    ws = [wsp_ref[i] for i in range(2 * 7 * 7)]
    bias = bsp_ref[0]

    p = pad_ref[...]                                         # (2, H+6, W+6)
    # Hoist the lane (kx) shifts: 2 channels x 7 kx column-shifted slabs.
    shifted = [[p[c, :, kx:kx + W] for kx in range(7)] for c in range(2)]

    # 7x7 conv, stride 1, padding 3, 2 in-channels -> 1 out-channel.
    # Inner sums run on full (H+6, W) slabs (pure VPU FMAs); only 7 sublane
    # slices remain for the ky accumulation.
    acc = jnp.zeros((H, W), jnp.float32)
    for ky in range(7):
        part = jnp.zeros((H + 6, W), jnp.float32)
        for c in range(2):
            for kx in range(7):
                part = part + ws[c * 49 + ky * 7 + kx] * shifted[c][kx]
        acc = acc + part[ky:ky + H, :]
    sa = jax.nn.sigmoid(acc + bias)                          # (H, W)

    # Flatten sa to the lane-dense (1, H*W) layout via a small VMEM scratch.
    for y in range(H):
        saf_ref[:, y * W:(y + 1) * W] = sa[y:y + 1, :]
    saf = saf_ref[...]                                       # (1, H*W)

    # Final gating; lane-dense output store.
    out_ref[0] = (out1 * saf).astype(out_ref.dtype)


# ----------------------------- Wrapper -----------------------------
def cbam_pallas(x, w1, w2, wsp_flat, bsp):
    B, C, H, W = x.shape
    hid = w1.shape[0]
    HW = H * W

    # Lane-dense spatial layout (contiguous reshape, essentially free in XLA).
    xf = x.reshape(B, C, HW)

    kernel = functools.partial(cbam_kernel, H=H, W=W)
    outf = pl.pallas_call(
        kernel,
        out_shape=jax.ShapeDtypeStruct((B, C, HW), x.dtype),
        grid=(B,),
        in_specs=[
            pl.BlockSpec((1, C, HW), lambda b: (b, 0, 0)),
            pl.BlockSpec((hid, C), lambda b: (0, 0)),
            pl.BlockSpec((C, hid), lambda b: (0, 0)),
            pl.BlockSpec(memory_space=pltpu.MemorySpace.SMEM),   # wsp_flat (98,)
            pl.BlockSpec(memory_space=pltpu.MemorySpace.SMEM),   # bsp (1,)
        ],
        out_specs=pl.BlockSpec((1, C, HW), lambda b: (b, 0, 0)),
        scratch_shapes=[
            pltpu.VMEM((2, H + 6, W + 6), jnp.float32),          # padded 2-ch map
            pltpu.VMEM((1, HW), jnp.float32),                    # flattened spatial gate
        ],
        compiler_params=pltpu.CompilerParams(dimension_semantics=("parallel",)),
    )(xf, w1, w2, wsp_flat, bsp)

    # TODO(synk): for production shapes (large C / H*W) add a C-tile grid axis
    # with VMEM-accumulated mean/max and an explicit vmem_limit_bytes (v7x 64 MiB).
    return outf.reshape(B, C, H, W)


# ----------------------------- Pure-JAX reference (for validation) -----------------------------
def cbam_ref(x, w1, w2, wsp, bsp):
    avg = jnp.mean(x, axis=(2, 3))                            # (B, C)
    mx = jnp.max(x, axis=(2, 3))                              # (B, C)

    def mlp(v):
        h = jnp.maximum(v @ w1.T, 0.0)
        return h @ w2.T

    ca = jax.nn.sigmoid(mlp(avg) + mlp(mx))[:, :, None, None]  # (B, C, 1, 1)
    out1 = ca * x

    am = jnp.mean(out1, axis=1, keepdims=True)
    amx = jnp.max(out1, axis=1, keepdims=True)
    cat = jnp.concatenate([am, amx], axis=1)                  # (B, 2, H, W)
    conv = jax.lax.conv_general_dilated(
        cat, wsp, window_strides=(1, 1), padding=((3, 3), (3, 3)),
        dimension_numbers=('NCHW', 'OIHW', 'NCHW')) + bsp[0]
    sa = jax.nn.sigmoid(conv)                                 # (B, 1, H, W)
    return sa * out1


if __name__ == "__main__":
    key = jax.random.PRNGKey(0)
    k1, k2, k3, k4, k5 = jax.random.split(key, 5)

    # ratio=16 in ChannelAttentionModule => channels >= 16; use C=32 (hidden=2).
    B, C, H, W = 2, 32, 16, 16
    hid = C // 16

    x = jax.random.normal(k1, (B, C, H, W), dtype=jnp.float32)
    w1 = jax.random.normal(k2, (hid, C), dtype=jnp.float32) * 0.2       # Conv2d(C, C/16, 1, bias=False)
    w2 = jax.random.normal(k3, (C, hid), dtype=jnp.float32) * 0.2       # Conv2d(C/16, C, 1, bias=False)
    wsp = jax.random.normal(k4, (1, 2, 7, 7), dtype=jnp.float32) * 0.1  # Conv2d(2, 1, 7, padding=3)
    bsp = jax.random.normal(k5, (1,), dtype=jnp.float32) * 0.1

    run = jax.jit(cbam_pallas)
    out = run(x, w1, w2, wsp.reshape(-1), bsp)
    out = jax.block_until_ready(out)

    ref = cbam_ref(x, w1, w2, wsp, bsp)
    err = float(jnp.max(jnp.abs(out - ref)))
    assert out.shape == (B, C, H, W)
    assert jnp.allclose(out, ref, atol=1e-4, rtol=1e-4), f"max abs err = {err}"
    print("KERNEL_OK")
</pallas_src>

<mosaic_0001>
module attributes {stable_mosaic.version = 11 : i64} {
  func.func @cbam_kernel(%arg0: i32, %arg1: memref<1x32x256xf32, #tpu.memory_space<vmem>>, %arg2: memref<2x32xf32, #tpu.memory_space<vmem>>, %arg3: memref<32x2xf32, #tpu.memory_space<vmem>>, %arg4: memref<98xf32, #tpu.memory_space<smem>>, %arg5: memref<1xf32, #tpu.memory_space<smem>>, %arg6: memref<1x32x256xf32, #tpu.memory_space<vmem>>, %arg7: memref<2x22x22xf32, #tpu.memory_space<vmem>>, %arg8: memref<1x256xf32, #tpu.memory_space<vmem>>) attributes {dimension_semantics = [#tpu.dimension_semantics<parallel>], iteration_bounds = array<i64: 2>, scalar_prefetch = 0 : i64, scratch_operands = 2 : i64, tpu.core_type = #tpu.core_type<tc>, window_params = [{transform_indices = @transform_0, window_bounds = array<i64: 1, 32, 256>}, {pipeline_mode = #tpu.pipeline_mode<synchronous>, transform_indices = @transform_1, window_bounds = array<i64: 2, 32>}, {pipeline_mode = #tpu.pipeline_mode<synchronous>, transform_indices = @transform_2, window_bounds = array<i64: 32, 2>}, {transform_indices = @transform_3, window_bounds = array<i64: 98>}, {transform_indices = @transform_4, window_bounds = array<i64: 1>}, {transform_indices = @transform_5, window_bounds = array<i64: 1, 32, 256>}]} {
    %c0 = arith.constant 0 : index
    %c0_0 = arith.constant 0 : index
    %c0_1 = arith.constant 0 : index
    %0 = vector.load %arg1[%c0, %c0_0, %c0_1] : memref<1x32x256xf32, #tpu.memory_space<vmem>>, vector<1x32x256xf32>
    %1 = vector.shape_cast %0 : vector<1x32x256xf32> to vector<32x256xf32>
    %cst = arith.constant dense<0.000000e+00> : vector<32xf32>
    %2 = vector.multi_reduction <add>, %1, %cst [1] : vector<32x256xf32> to vector<32xf32>
    %3 = vector.shape_cast %2 : vector<32xf32> to vector<32x1xf32>
    %cst_2 = arith.constant 2.560000e+02 : f32
    %4 = vector.broadcast %cst_2 : f32 to vector<32x1xf32>
    %5 = arith.divf %3, %4 : vector<32x1xf32>
    %cst_3 = arith.constant dense<0xFF800000> : vector<32xf32>
    %6 = vector.multi_reduction <maximumf>, %1, %cst_3 [1] : vector<32x256xf32> to vector<32xf32>
    %7 = vector.shape_cast %6 : vector<32xf32> to vector<32x1xf32>
    %8 = tpu.concatenate %5, %7 in 1 : vector<32x1xf32>, vector<32x1xf32> -> vector<32x2xf32>
    %c0_4 = arith.constant 0 : index
    %c0_5 = arith.constant 0 : index
    %9 = vector.load %arg2[%c0_4, %c0_5] : memref<2x32xf32, #tpu.memory_space<vmem>>, vector<2x32xf32>
    %cst_6 = arith.constant dense<0.000000e+00> : vector<2x2xf32>
    %10 = tpu.matmul %9, %8, %cst_6 {dimension_numbers = #tpu.dot_dimension_numbers<[1], [0], [0], [1], [0, 0, 1, 1], [], []>} : vector<2x32xf32>, vector<32x2xf32>, vector<2x2xf32> -> vector<2x2xf32>
    %cst_7 = arith.constant 0.000000e+00 : f32
    %11 = vector.broadcast %cst_7 : f32 to vector<2x2xf32>
    %12 = arith.maximumf %10, %11 : vector<2x2xf32>
    %c0_8 = arith.constant 0 : index
    %c0_9 = arith.constant 0 : index
    %13 = vector.load %arg3[%c0_8, %c0_9] : memref<32x2xf32, #tpu.memory_space<vmem>>, vector<32x2xf32>
    %cst_10 = arith.constant dense<0.000000e+00> : vector<32x2xf32>
    %14 = tpu.matmul %13, %12, %cst_10 {dimension_numbers = #tpu.dot_dimension_numbers<[1], [0], [0], [1], [0, 0, 1, 1], [], []>} : vector<32x2xf32>, vector<2x2xf32>, vector<32x2xf32> -> vector<32x2xf32>
    %15 = vector.extract_strided_slice %14 {offsets = [0, 0], sizes = [32, 1], strides = [1, 1]} : vector<32x2xf32> to vector<32x1xf32>
    %16 = vector.extract_strided_slice %14 {offsets = [0, 1], sizes = [32, 1], strides = [1, 1]} : vector<32x2xf32> to vector<32x1xf32>
    %17 = arith.addf %15, %16 : vector<32x1xf32>
    %18 = arith.negf %17 : vector<32x1xf32>
    %19 = math.exp %18 : vector<32x1xf32>
    %cst_11 = arith.constant 1.000000e+00 : f32
    %20 = vector.broadcast %cst_11 : f32 to vector<32x1xf32>
    %21 = arith.addf %20, %19 : vector<32x1xf32>
    %22 = arith.divf %20, %21 : vector<32x1xf32>
    %23 = vector.broadcast %22 : vector<32x1xf32> to vector<32x256xf32>
    %24 = arith.mulf %1, %23 : vector<32x256xf32>
    %cst_12 = arith.constant dense<0.000000e+00> : vector<256xf32>
    %25 = vector.multi_reduction <add>, %24, %cst_12 [0] : vector<32x256xf32> to vector<256xf32>
    %26 = vector.shape_cast %25 : vector<256xf32> to vector<1x256xf32>
    %cst_13 = arith.constant 3.200000e+01 : f32
    %27 = vector.broadcast %cst_13 : f32 to vector<1x256xf32>
    %28 = arith.divf %26, %27 : vector<1x256xf32>
    %cst_14 = arith.constant dense<0xFF800000> : vector<256xf32>
    %29 = vector.multi_reduction <maximumf>, %24, %cst_14 [0] : vector<32x256xf32> to vector<256xf32>
    %30 = vector.shape_cast %29 : vector<256xf32> to vector<1x256xf32>
    %cst_15 = arith.constant 0.000000e+00 : f32
    %31 = vector.broadcast %cst_15 : f32 to vector<2x22x22xf32>
    %c0_16 = arith.constant 0 : index
    %c0_17 = arith.constant 0 : index
    %c0_18 = arith.constant 0 : index
    %32 = vector.load %arg7[%c0_16, %c0_17, %c0_18] : memref<2x22x22xf32, #tpu.memory_space<vmem>>, vector<2x22x22xf32>
    tpu.vector_store %arg7[%c0_16, %c0_17, %c0_18], %31 {strides = array<i32>} : memref<2x22x22xf32, #tpu.memory_space<vmem>>, vector<2x22x22xf32>,
    %33 = vector.extract_strided_slice %28 {offsets = [0, 0], sizes = [1, 16], strides = [1, 1]} : vector<1x256xf32> to vector<1x16xf32>
    %c0_19 = arith.constant 0 : index
    %c3 = arith.constant 3 : index
    %c3_20 = arith.constant 3 : index
    %34 = vector.load %arg7[%c0_19, %c3, %c3_20] : memref<2x22x22xf32, #tpu.memory_space<vmem>>, vector<1x1x16xf32>
    %35 = vector.shape_cast %34 : vector<1x1x16xf32> to vector<1x16xf32>
    %36 = vector.shape_cast %33 : vector<1x16xf32> to vector<1x1x16xf32>
    tpu.vector_store %arg7[%c0_19, %c3, %c3_20], %36 {strides = array<i32>} : memref<2x22x22xf32, #tpu.memory_space<vmem>>, vector<1x1x16xf32>,
    %37 = vector.extract_strided_slice %30 {offsets = [0, 0], sizes = [1, 16], strides = [1, 1]} : vector<1x256xf32> to vector<1x16xf32>
    %c1 = arith.constant 1 : index
    %c3_21 = arith.constant 3 : index
    %c3_22 = arith.constant 3 : index
    %38 = vector.load %arg7[%c1, %c3_21, %c3_22] : memref<2x22x22xf32, #tpu.memory_space<vmem>>, vector<1x1x16xf32>
    %39 = vector.shape_cast %38 : vector<1x1x16xf32> to vector<1x16xf32>
    %40 = vector.shape_cast %37 : vector<1x16xf32> to vector<1x1x16xf32>
    tpu.vector_store %arg7[%c1, %c3_21, %c3_22], %40 {strides = array<i32>} : memref<2x22x22xf32, #tpu.memory_space<vmem>>, vector<1x1x16xf32>,
    %41 = vector.extract_strided_slice %28 {offsets = [0, 16], sizes = [1, 16], strides = [1, 1]} : vector<1x256xf32> to vector<1x16xf32>
    %c0_23 = arith.constant 0 : index
    %c4 = arith.constant 4 : index
    %c3_24 = arith.constant 3 : index
    %42 = vector.load %arg7[%c0_23, %c4, %c3_24] : memref<2x22x22xf32, #tpu.memory_space<vmem>>, vector<1x1x16xf32>
    %43 = vector.shape_cast %42 : vector<1x1x16xf32> to vector<1x16xf32>
    %44 = vector.shape_cast %41 : vector<1x16xf32> to vector<1x1x16xf32>
    tpu.vector_store %arg7[%c0_23, %c4, %c3_24], %44 {strides = array<i32>} : memref<2x22x22xf32, #tpu.memory_space<vmem>>, vector<1x1x16xf32>,
    %45 = vector.extract_strided_slice %30 {offsets = [0, 16], sizes = [1, 16], strides = [1, 1]} : vector<1x256xf32> to vector<1x16xf32>
    %c1_25 = arith.constant 1 : index
    %c4_26 = arith.constant 4 : index
    %c3_27 = arith.constant 3 : index
    %46 = vector.load %arg7[%c1_25, %c4_26, %c3_27] : memref<2x22x22xf32, #tpu.memory_space<vmem>>, vector<1x1x16xf32>
    %47 = vector.shape_cast %46 : vector<1x1x16xf32> to vector<1x16xf32>
    %48 = vector.shape_cast %45 : vector<1x16xf32> to vector<1x1x16xf32>
    tpu.vector_store %arg7[%c1_25, %c4_26, %c3_27], %48 {strides = array<i32>} : memref<2x22x22xf32, #tpu.memory_space<vmem>>, vector<1x1x16xf32>,
    %49 = vector.extract_strided_slice %28 {offsets = [0, 32], sizes = [1, 16], strides = [1, 1]} : vector<1x256xf32> to vector<1x16xf32>
    %c0_28 = arith.constant 0 : index
    %c5 = arith.constant 5 : index
    %c3_29 = arith.constant 3 : index
    %50 = vector.load %arg7[%c0_28, %c5, %c3_29] : memref<2x22x22xf32, #tpu.memory_space<vmem>>, vector<1x1x16xf32>
    %51 = vector.shape_cast %50 : vector<1x1x16xf32> to vector<1x16xf32>
    %52 = vector.shape_cast %49 : vector<1x16xf32> to vector<1x1x16xf32>
    tpu.vector_store %arg7[%c0_28, %c5, %c3_29], %52 {strides = array<i32>} : memref<2x22x22xf32, #tpu.memory_space<vmem>>, vector<1x1x16xf32>,
    %53 = vector.extract_strided_slice %30 {offsets = [0, 32], sizes = [1, 16], strides = [1, 1]} : vector<1x256xf32> to vector<1x16xf32>
    %c1_30 = arith.constant 1 : index
    %c5_31 = arith.constant 5 : index
    %c3_32 = arith.constant 3 : index
    %54 = vector.load %arg7[%c1_30, %c5_31, %c3_32] : memref<2x22x22xf32, #tpu.memory_space<vmem>>, vector<1x1x16xf32>
    %55 = vector.shape_cast %54 : vector<1x1x16xf32> to vector<1x16xf32>
    %56 = vector.shape_cast %53 : vector<1x16xf32> to vector<1x1x16xf32>
    tpu.vector_store %arg7[%c1_30, %c5_31, %c3_32], %56 {strides = array<i32>} : memref<2x22x22xf32, #tpu.memory_space<vmem>>, vector<1x1x16xf32>,
    %57 = vector.extract_strided_slice %28 {offsets = [0, 48], sizes = [1, 16], strides = [1, 1]} : vector<1x256xf32> to vector<1x16xf32>
    %c0_33 = arith.constant 0 : index
    %c6 = arith.constant 6 : index
    %c3_34 = arith.constant 3 : index
    %58 = vector.load %arg7[%c0_33, %c6, %c3_34] : memref<2x22x22xf32, #tpu.memory_space<vmem>>, vector<1x1x16xf32>
    %59 = vector.shape_cast %58 : vector<1x1x16xf32> to vector<1x16xf32>
    %60 = vector.shape_cast %57 : vector<1x16xf32> to vector<1x1x16xf32>
    tpu.vector_store %arg7[%c0_33, %c6, %c3_34], %60 {strides = array<i32>} : memref<2x22x22xf32, #tpu.memory_space<vmem>>, vector<1x1x16xf32>,
    %61 = vector.extract_strided_slice %30 {offsets = [0, 48], sizes = [1, 16], strides = [1, 1]} : vector<1x256xf32> to vector<1x16xf32>
    %c1_35 = arith.constant 1 : index
    %c6_36 = arith.constant 6 : index
    %c3_37 = arith.constant 3 : index
    %62 = vector.load %arg7[%c1_35, %c6_36, %c3_37] : memref<2x22x22xf32, #tpu.memory_space<vmem>>, vector<1x1x16xf32>
    %63 = vector.shape_cast %62 : vector<1x1x16xf32> to vector<1x16xf32>
    %64 = vector.shape_cast %61 : vector<1x16xf32> to vector<1x1x16xf32>
    tpu.vector_store %arg7[%c1_35, %c6_36, %c3_37], %64 {strides = array<i32>} : memref<2x22x22xf32, #tpu.memory_space<vmem>>, vector<1x1x16xf32>,
    %65 = vector.extract_strided_slice %28 {offsets = [0, 64], sizes = [1, 16], strides = [1, 1]} : vector<1x256xf32> to vector<1x16xf32>
    %c0_38 = arith.constant 0 : index
    %c7 = arith.constant 7 : index
    %c3_39 = arith.constant 3 : index
    %66 = vector.load %arg7[%c0_38, %c7, %c3_39] : memref<2x22x22xf32, #tpu.memory_space<vmem>>, vector<1x1x16xf32>
    %67 = vector.shape_cast %66 : vector<1x1x16xf32> to vector<1x16xf32>
    %68 = vector.shape_cast %65 : vector<1x16xf32> to vector<1x1x16xf32>
    tpu.vector_store %arg7[%c0_38, %c7, %c3_39], %68 {strides = array<i32>} : memref<2x22x22xf32, #tpu.memory_space<vmem>>, vector<1x1x16xf32>,
    %69 = vector.extract_strided_slice %30 {offsets = [0, 64], sizes = [1, 16], strides = [1, 1]} : vector<1x256xf32> to vector<1x16xf32>
    %c1_40 = arith.constant 1 : index
    %c7_41 = arith.constant 7 : index
    %c3_42 = arith.constant 3 : index
    %70 = vector.load %arg7[%c1_40, %c7_41, %c3_42] : memref<2x22x22xf32, #tpu.memory_space<vmem>>, vector<1x1x16xf32>
    %71 = vector.shape_cast %70 : vector<1x1x16xf32> to vector<1x16xf32>
    %72 = vector.shape_cast %69 : vector<1x16xf32> to vector<1x1x16xf32>
    tpu.vector_store %arg7[%c1_40, %c7_41, %c3_42], %72 {strides = array<i32>} : memref<2x22x22xf32, #tpu.memory_space<vmem>>, vector<1x1x16xf32>,
    %73 = vector.extract_strided_slice %28 {offsets = [0, 80], sizes = [1, 16], strides = [1, 1]} : vector<1x256xf32> to vector<1x16xf32>
    %c0_43 = arith.constant 0 : index
    %c8 = arith.constant 8 : index
    %c3_44 = arith.constant 3 : index
    %74 = vector.load %arg7[%c0_43, %c8, %c3_44] : memref<2x22x22xf32, #tpu.memory_space<vmem>>, vector<1x1x16xf32>
    %75 = vector.shape_cast %74 : vector<1x1x16xf32> to vector<1x16xf32>
    %76 = vector.shape_cast %73 : vector<1x16xf32> to vector<1x1x16xf32>
    tpu.vector_store %arg7[%c0_43, %c8, %c3_44], %76 {strides = array<i32>} : memref<2x22x22xf32, #tpu.memory_space<vmem>>, vector<1x1x16xf32>,
    %77 = vector.extract_strided_slice %30 {offsets = [0, 80], sizes = [1, 16], strides = [1, 1]} : vector<1x256xf32> to vector<1x16xf32>
    %c1_45 = arith.constant 1 : index
    %c8_46 = arith.constant 8 : index
    %c3_47 = arith.constant 3 : index
    %78 = vector.load %arg7[%c1_45, %c8_46, %c3_47] : memref<2x22x22xf32, #tpu.memory_space<vmem>>, vector<1x1x16xf32>
    %79 = vector.shape_cast %78 : vector<1x1x16xf32> to vector<1x16xf32>
    %80 = vector.shape_cast %77 : vector<1x16xf32> to vector<1x1x16xf32>
    tpu.vector_store %arg7[%c1_45, %c8_46, %c3_47], %80 {strides = array<i32>} : memref<2x22x22xf32, #tpu.memory_space<vmem>>, vector<1x1x16xf32>,
    %81 = vector.extract_strided_slice %28 {offsets = [0, 96], sizes = [1, 16], strides = [1, 1]} : vector<1x256xf32> to vector<1x16xf32>
    %c0_48 = arith.constant 0 : index
    %c9 = arith.constant 9 : index
    %c3_49 = arith.constant 3 : index
    %82 = vector.load %arg7[%c0_48, %c9, %c3_49] : memref<2x22x22xf32, #tpu.memory_space<vmem>>, vector<1x1x16xf32>
    %83 = vector.shape_cast %82 : vector<1x1x16xf32> to vector<1x16xf32>
    %84 = vector.shape_cast %81 : vector<1x16xf32> to vector<1x1x16xf32>
    tpu.vector_store %arg7[%c0_48, %c9, %c3_49], %84 {strides = array<i32>} : memref<2x22x22xf32, #tpu.memory_space<vmem>>, vector<1x1x16xf32>,
    %85 = vector.extract_strided_slice %30 {offsets = [0, 96], sizes = [1, 16], strides = [1, 1]} : vector<1x256xf32> to vector<1x16xf32>
    %c1_50 = arith.constant 1 : index
    %c9_51 = arith.constant 9 : index
    %c3_52 = arith.constant 3 : index
    %86 = vector.load %arg7[%c1_50, %c9_51, %c3_52] : memref<2x22x22xf32, #tpu.memory_space<vmem>>, vector<1x1x16xf32>
    %87 = vector.shape_cast %86 : vector<1x1x16xf32> to vector<1x16xf32>
    %88 = vector.shape_cast %85 : vector<1x16xf32> to vector<1x1x16xf32>
    tpu.vector_store %arg7[%c1_50, %c9_51, %c3_52], %88 {strides = array<i32>} : memref<2x22x22xf32, #tpu.memory_space<vmem>>, vector<1x1x16xf32>,
    %89 = vector.extract_strided_slice %28 {offsets = [0, 112], sizes = [1, 16], strides = [1, 1]} : vector<1x256xf32> to vector<1x16xf32>
    %c0_53 = arith.constant 0 : index
    %c10 = arith.constant 10 : index
    %c3_54 = arith.constant 3 : index
    %90 = vector.load %arg7[%c0_53, %c10, %c3_54] : memref<2x22x22xf32, #tpu.memory_space<vmem>>, vector<1x1x16xf32>
    %91 = vector.shape_cast %90 : vector<1x1x16xf32> to vector<1x16xf32>
    %92 = vector.shape_cast %89 : vector<1x16xf32> to vector<1x1x16xf32>
    tpu.vector_store %arg7[%c0_53, %c10, %c3_54], %92 {strides = array<i32>} : memref<2x22x22xf32, #tpu.memory_space<vmem>>, vector<1x1x16xf32>,
    %93 = vector.extract_strided_slice %30 {offsets = [0, 112], sizes = [1, 16], strides = [1, 1]} : vector<1x256xf32> to vector<1x16xf32>
    %c1_55 = arith.constant 1 : index
    %c10_56 = arith.constant 10 : index
    %c3_57 = arith.constant 3 : index
    %94 = vector.load %arg7[%c1_55, %c10_56, %c3_57] : memref<2x22x22xf32, #tpu.memory_space<vmem>>, vector<1x1x16xf32>
    %95 = vector.shape_cast %94 : vector<1x1x16xf32> to vector<1x16xf32>
    %96 = vector.shape_cast %93 : vector<1x16xf32> to vector<1x1x16xf32>
    tpu.vector_store %arg7[%c1_55, %c10_56, %c3_57], %96 {strides = array<i32>} : memref<2x22x22xf32, #tpu.memory_space<vmem>>, vector<1x1x16xf32>,
    %97 = vector.extract_strided_slice %28 {offsets = [0, 128], sizes = [1, 16], strides = [1, 1]} : vector<1x256xf32> to vector<1x16xf32>
    %c0_58 = arith.constant 0 : index
    %c11 = arith.constant 11 : index
    %c3_59 = arith.constant 3 : index
    %98 = vector.load %arg7[%c0_58, %c11, %c3_59] : memref<2x22x22xf32, #tpu.memory_space<vmem>>, vector<1x1x16xf32>
    %99 = vector.shape_cast %98 : vector<1x1x16xf32> to vector<1x16xf32>
    %100 = vector.shape_cast %97 : vector<1x16xf32> to vector<1x1x16xf32>
    tpu.vector_store %arg7[%c0_58, %c11, %c3_59], %100 {strides = array<i32>} : memref<2x22x22xf32, #tpu.memory_space<vmem>>, vector<1x1x16xf32>,
    %101 = vector.extract_strided_slice %30 {offsets = [0, 128], sizes = [1, 16], strides = [1, 1]} : vector<1x256xf32> to vector<1x16xf32>
    %c1_60 = arith.constant 1 : index
    %c11_61 = arith.constant 11 : index
    %c3_62 = arith.constant 3 : index
    %102 = vector.load %arg7[%c1_60, %c11_61, %c3_62] : memref<2x22x22xf32, #tpu.memory_space<vmem>>, vector<1x1x16xf32>
    %103 = vector.shape_cast %102 : vector<1x1x16xf32> to vector<1x16xf32>
    %104 = vector.shape_cast %101 : vector<1x16xf32> to vector<1x1x16xf32>
    tpu.vector_store %arg7[%c1_60, %c11_61, %c3_62], %104 {strides = array<i32>} : memref<2x22x22xf32, #tpu.memory_space<vmem>>, vector<1x1x16xf32>,
    %105 = vector.extract_strided_slice %28 {offsets = [0, 144], sizes = [1, 16], strides = [1, 1]} : vector<1x256xf32> to vector<1x16xf32>
    %c0_63 = arith.constant 0 : index
    %c12 = arith.constant 12 : index
    %c3_64 = arith.constant 3 : index
    %106 = vector.load %arg7[%c0_63, %c12, %c3_64] : memref<2x22x22xf32, #tpu.memory_space<vmem>>, vector<1x1x16xf32>
    %107 = vector.shape_cast %106 : vector<1x1x16xf32> to vector<1x16xf32>
    %108 = vector.shape_cast %105 : vector<1x16xf32> to vector<1x1x16xf32>
    tpu.vector_store %arg7[%c0_63, %c12, %c3_64], %108 {strides = array<i32>} : memref<2x22x22xf32, #tpu.memory_space<vmem>>, vector<1x1x16xf32>,
    %109 = vector.extract_strided_slice %30 {offsets = [0, 144], sizes = [1, 16], strides = [1, 1]} : vector<1x256xf32> to vector<1x16xf32>
    %c1_65 = arith.constant 1 : index
    %c12_66 = arith.constant 12 : index
    %c3_67 = arith.constant 3 : index
    %110 = vector.load %arg7[%c1_65, %c12_66, %c3_67] : memref<2x22x22xf32, #tpu.memory_space<vmem>>, vector<1x1x16xf32>
    %111 = vector.shape_cast %110 : vector<1x1x16xf32> to vector<1x16xf32>
    %112 = vector.shape_cast %109 : vector<1x16xf32> to vector<1x1x16xf32>
    tpu.vector_store %arg7[%c1_65, %c12_66, %c3_67], %112 {strides = array<i32>} : memref<2x22x22xf32, #tpu.memory_space<vmem>>, vector<1x1x16xf32>,
    %113 = vector.extract_strided_slice %28 {offsets = [0, 160], sizes = [1, 16], strides = [1, 1]} : vector<1x256xf32> to vector<1x16xf32>
    %c0_68 = arith.constant 0 : index
    %c13 = arith.constant 13 : index
    %c3_69 = arith.constant 3 : index
    %114 = vector.load %arg7[%c0_68, %c13, %c3_69] : memref<2x22x22xf32, #tpu.memory_space<vmem>>, vector<1x1x16xf32>
    %115 = vector.shape_cast %114 : vector<1x1x16xf32> to vector<1x16xf32>
    %116 = vector.shape_cast %113 : vector<1x16xf32> to vector<1x1x16xf32>
    tpu.vector_store %arg7[%c0_68, %c13, %c3_69], %116 {strides = array<i32>} : memref<2x22x22xf32, #tpu.memory_space<vmem>>, vector<1x1x16xf32>,
    %117 = vector.extract_strided_slice %30 {offsets = [0, 160], sizes = [1, 16], strides = [1, 1]} : vector<1x256xf32> to vector<1x16xf32>
    %c1_70 = arith.constant 1 : index
    %c13_71 = arith.constant 13 : index
    %c3_72 = arith.constant 3 : index
    %118 = vector.load %arg7[%c1_70, %c13_71, %c3_72] : memref<2x22x22xf32, #tpu.memory_space<vmem>>, vector<1x1x16xf32>
    %119 = vector.shape_cast %118 : vector<1x1x16xf32> to vector<1x16xf32>
    %120 = vector.shape_cast %117 : vector<1x16xf32> to vector<1x1x16xf32>
    tpu.vector_store %arg7[%c1_70, %c13_71, %c3_72], %120 {strides = array<i32>} : memref<2x22x22xf32, #tpu.memory_space<vmem>>, vector<1x1x16xf32>,
    %121 = vector.extract_strided_slice %28 {offsets = [0, 176], sizes = [1, 16], strides = [1, 1]} : vector<1x256xf32> to vector<1x16xf32>
    %c0_73 = arith.constant 0 : index
    %c14 = arith.constant 14 : index
    %c3_74 = arith.constant 3 : index
    %122 = vector.load %arg7[%c0_73, %c14, %c3_74] : memref<2x22x22xf32, #tpu.memory_space<vmem>>, vector<1x1x16xf32>
    %123 = vector.shape_cast %122 : vector<1x1x16xf32> to vector<1x16xf32>
    %124 = vector.shape_cast %121 : vector<1x16xf32> to vector<1x1x16xf32>
    tpu.vector_store %arg7[%c0_73, %c14, %c3_74], %124 {strides = array<i32>} : memref<2x22x22xf32, #tpu.memory_space<vmem>>, vector<1x1x16xf32>,
    %125 = vector.extract_strided_slice %30 {offsets = [0, 176], sizes = [1, 16], strides = [1, 1]} : vector<1x256xf32> to vector<1x16xf32>
    %c1_75 = arith.constant 1 : index
    %c14_76 = arith.constant 14 : index
    %c3_77 = arith.constant 3 : index
    %126 = vector.load %arg7[%c1_75, %c14_76, %c3_77] : memref<2x22x22xf32, #tpu.memory_space<vmem>>, vector<1x1x16xf32>
    %127 = vector.shape_cast %126 : vector<1x1x16xf32> to vector<1x16xf32>
    %128 = vector.shape_cast %125 : vector<1x16xf32> to vector<1x1x16xf32>
    tpu.vector_store %arg7[%c1_75, %c14_76, %c3_77], %128 {strides = array<i32>} : memref<2x22x22xf32, #tpu.memory_space<vmem>>, vector<1x1x16xf32>,
    %129 = vector.extract_strided_slice %28 {offsets = [0, 192], sizes = [1, 16], strides = [1, 1]} : vector<1x256xf32> to vector<1x16xf32>
    %c0_78 = arith.constant 0 : index
    %c15 = arith.constant 15 : index
    %c3_79 = arith.constant 3 : index
    %130 = vector.load %arg7[%c0_78, %c15, %c3_79] : memref<2x22x22xf32, #tpu.memory_space<vmem>>, vector<1x1x16xf32>
    %131 = vector.shape_cast %130 : vector<1x1x16xf32> to vector<1x16xf32>
    %132 = vector.shape_cast %129 : vector<1x16xf32> to vector<1x1x16xf32>
    tpu.vector_store %arg7[%c0_78, %c15, %c3_79], %132 {strides = array<i32>} : memref<2x22x22xf32, #tpu.memory_space<vmem>>, vector<1x1x16xf32>,
    %133 = vector.extract_strided_slice %30 {offsets = [0, 192], sizes = [1, 16], strides = [1, 1]} : vector<1x256xf32> to vector<1x16xf32>
    %c1_80 = arith.constant 1 : index
    %c15_81 = arith.constant 15 : index
    %c3_82 = arith.constant 3 : index
    %134 = vector.load %arg7[%c1_80, %c15_81, %c3_82] : memref<2x22x22xf32, #tpu.memory_space<vmem>>, vector<1x1x16xf32>
    %135 = vector.shape_cast %134 : vector<1x1x16xf32> to vector<1x16xf32>
    %136 = vector.shape_cast %133 : vector<1x16xf32> to vector<1x1x16xf32>
    tpu.vector_store %arg7[%c1_80, %c15_81, %c3_82], %136 {strides = array<i32>} : memref<2x22x22xf32, #tpu.memory_space<vmem>>, vector<1x1x16xf32>,
    %137 = vector.extract_strided_slice %28 {offsets = [0, 208], sizes = [1, 16], strides = [1, 1]} : vector<1x256xf32> to vector<1x16xf32>
    %c0_83 = arith.constant 0 : index
    %c16 = arith.constant 16 : index
    %c3_84 = arith.constant 3 : index
    %138 = vector.load %arg7[%c0_83, %c16, %c3_84] : memref<2x22x22xf32, #tpu.memory_space<vmem>>, vector<1x1x16xf32>
    %139 = vector.shape_cast %138 : vector<1x1x16xf32> to vector<1x16xf32>
    %140 = vector.shape_cast %137 : vector<1x16xf32> to vector<1x1x16xf32>
    tpu.vector_store %arg7[%c0_83, %c16, %c3_84], %140 {strides = array<i32>} : memref<2x22x22xf32, #tpu.memory_space<vmem>>, vector<1x1x16xf32>,
    %141 = vector.extract_strided_slice %30 {offsets = [0, 208], sizes = [1, 16], strides = [1, 1]} : vector<1x256xf32> to vector<1x16xf32>
    %c1_85 = arith.constant 1 : index
    %c16_86 = arith.constant 16 : index
    %c3_87 = arith.constant 3 : index
    %142 = vector.load %arg7[%c1_85, %c16_86, %c3_87] : memref<2x22x22xf32, #tpu.memory_space<vmem>>, vector<1x1x16xf32>
    %143 = vector.shape_cast %142 : vector<1x1x16xf32> to vector<1x16xf32>
    %144 = vector.shape_cast %141 : vector<1x16xf32> to vector<1x1x16xf32>
    tpu.vector_store %arg7[%c1_85, %c16_86, %c3_87], %144 {strides = array<i32>} : memref<2x22x22xf32, #tpu.memory_space<vmem>>, vector<1x1x16xf32>,
    %145 = vector.extract_strided_slice %28 {offsets = [0, 224], sizes = [1, 16], strides = [1, 1]} : vector<1x256xf32> to vector<1x16xf32>
    %c0_88 = arith.constant 0 : index
    %c17 = arith.constant 17 : index
    %c3_89 = arith.constant 3 : index
    %146 = vector.load %arg7[%c0_88, %c17, %c3_89] : memref<2x22x22xf32, #tpu.memory_space<vmem>>, vector<1x1x16xf32>
    %147 = vector.shape_cast %146 : vector<1x1x16xf32> to vector<1x16xf32>
    %148 = vector.shape_cast %145 : vector<1x16xf32> to vector<1x1x16xf32>
    tpu.vector_store %arg7[%c0_88, %c17, %c3_89], %148 {strides = array<i32>} : memref<2x22x22xf32, #tpu.memory_space<vmem>>, vector<1x1x16xf32>,
    %149 = vector.extract_strided_slice %30 {offsets = [0, 224], sizes = [1, 16], strides = [1, 1]} : vector<1x256xf32> to vector<1x16xf32>
    %c1_90 = arith.constant 1 : index
    %c17_91 = arith.constant 17 : index
    %c3_92 = arith.constant 3 : index
    %150 = vector.load %arg7[%c1_90, %c17_91, %c3_92] : memref<2x22x22xf32, #tpu.memory_space<vmem>>, vector<1x1x16xf32>
    %151 = vector.shape_cast %150 : vector<1x1x16xf32> to vector<1x16xf32>
    %152 = vector.shape_cast %149 : vector<1x16xf32> to vector<1x1x16xf32>
    tpu.vector_store %arg7[%c1_90, %c17_91, %c3_92], %152 {strides = array<i32>} : memref<2x22x22xf32, #tpu.memory_space<vmem>>, vector<1x1x16xf32>,
    %153 = vector.extract_strided_slice %28 {offsets = [0, 240], sizes = [1, 16], strides = [1, 1]} : vector<1x256xf32> to vector<1x16xf32>
    %c0_93 = arith.constant 0 : index
    %c18 = arith.constant 18 : index
    %c3_94 = arith.constant 3 : index
    %154 = vector.load %arg7[%c0_93, %c18, %c3_94] : memref<2x22x22xf32, #tpu.memory_space<vmem>>, vector<1x1x16xf32>
    %155 = vector.shape_cast %154 : vector<1x1x16xf32> to vector<1x16xf32>
    %156 = vector.shape_cast %153 : vector<1x16xf32> to vector<1x1x16xf32>
    tpu.vector_store %arg7[%c0_93, %c18, %c3_94], %156 {strides = array<i32>} : memref<2x22x22xf32, #tpu.memory_space<vmem>>, vector<1x1x16xf32>,
    %157 = vector.extract_strided_slice %30 {offsets = [0, 240], sizes = [1, 16], strides = [1, 1]} : vector<1x256xf32> to vector<1x16xf32>
    %c1_95 = arith.constant 1 : index
    %c18_96 = arith.constant 18 : index
    %c3_97 = arith.constant 3 : index
    %158 = vector.load %arg7[%c1_95, %c18_96, %c3_97] : memref<2x22x22xf32, #tpu.memory_space<vmem>>, vector<1x1x16xf32>
    %159 = vector.shape_cast %158 : vector<1x1x16xf32> to vector<1x16xf32>
    %160 = vector.shape_cast %157 : vector<1x16xf32> to vector<1x1x16xf32>
    tpu.vector_store %arg7[%c1_95, %c18_96, %c3_97], %160 {strides = array<i32>} : memref<2x22x22xf32, #tpu.memory_space<vmem>>, vector<1x1x16xf32>,
    %c0_98 = arith.constant 0 : index
    %161 = memref.load %arg4[%c0_98] : memref<98xf32, #tpu.memory_space<smem>>
    %c1_99 = arith.constant 1 : index
    %162 = memref.load %arg4[%c1_99] : memref<98xf32, #tpu.memory_space<smem>>
    %c2 = arith.constant 2 : index
    %163 = memref.load %arg4[%c2] : memref<98xf32, #tpu.memory_space<smem>>
    %c3_100 = arith.constant 3 : index
    %164 = memref.load %arg4[%c3_100] : memref<98xf32, #tpu.memory_space<smem>>
    %c4_101 = arith.constant 4 : index
    %165 = memref.load %arg4[%c4_101] : memref<98xf32, #tpu.memory_space<smem>>
    %c5_102 = arith.constant 5 : index
    %166 = memref.load %arg4[%c5_102] : memref<98xf32, #tpu.memory_space<smem>>
    %c6_103 = arith.constant 6 : index
    %167 = memref.load %arg4[%c6_103] : memref<98xf32, #tpu.memory_space<smem>>
    %c7_104 = arith.constant 7 : index
    %168 = memref.load %arg4[%c7_104] : memref<98xf32, #tpu.memory_space<smem>>
    %c8_105 = arith.constant 8 : index
    %169 = memref.load %arg4[%c8_105] : memref<98xf32, #tpu.memory_space<smem>>
    %c9_106 = arith.constant 9 : index
    %170 = memref.load %arg4[%c9_106] : memref<98xf32, #tpu.memory_space<smem>>
    %c10_107 = arith.constant 10 : index
    %171 = memref.load %arg4[%c10_107] : memref<98xf32, #tpu.memory_space<smem>>
    %c11_108 = arith.constant 11 : index
    %172 = memref.load %arg4[%c11_108] : memref<98xf32, #tpu.memory_space<smem>>
    %c12_109 = arith.constant 12 : index
    %173 = memref.load %arg4[%c12_109] : memref<98xf32, #tpu.memory_space<smem>>
    %c13_110 = arith.constant 13 : index
    %174 = memref.load %arg4[%c13_110] : memref<98xf32, #tpu.memory_space<smem>>
    %c14_111 = arith.constant 14 : index
    %175 = memref.load %arg4[%c14_111] : memref<98xf32, #tpu.memory_space<smem>>
    %c15_112 = arith.constant 15 : index
    %176 = memref.load %arg4[%c15_112] : memref<98xf32, #tpu.memory_space<smem>>
    %c16_113 = arith.constant 16 : index
    %177 = memref.load %arg4[%c16_113] : memref<98xf32, #tpu.memory_space<smem>>
    %c17_114 = arith.constant 17 : index
    %178 = memref.load %arg4[%c17_114] : memref<98xf32, #tpu.memory_space<smem>>
    %c18_115 = arith.constant 18 : index
    %179 = memref.load %arg4[%c18_115] : memref<98xf32, #tpu.memory_space<smem>>
    %c19 = arith.constant 19 : index
    %180 = memref.load %arg4[%c19] : memref<98xf32, #tpu.memory_space<smem>>
    %c20 = arith.constant 20 : index
    %181 = memref.load %arg4[%c20] : memref<98xf32, #tpu.memory_space<smem>>
    %c21 = arith.constant 21 : index
    %182 = memref.load %arg4[%c21] : memref<98xf32, #tpu.memory_space<smem>>
    %c22 = arith.constant 22 : index
    %183 = memref.load %arg4[%c22] : memref<98xf32, #tpu.memory_space<smem>>
    %c23 = arith.constant 23 : index
    %184 = memref.load %arg4[%c23] : memref<98xf32, #tpu.memory_space<smem>>
    %c24 = arith.constant 24 : index
    %185 = memref.load %arg4[%c24] : memref<98xf32, #tpu.memory_space<smem>>
    %c25 = arith.constant 25 : index
    %186 = memref.load %arg4[%c25] : memref<98xf32, #tpu.memory_space<smem>>
    %c26 = arith.constant 26 : index
    %187 = memref.load %arg4[%c26] : memref<98xf32, #tpu.memory_space<smem>>
    %c27 = arith.constant 27 : index
    %188 = memref.load %arg4[%c27] : memref<98xf32, #tpu.memory_space<smem>>
    %c28 = arith.constant 28 : index
    %189 = memref.load %arg4[%c28] : memref<98xf32, #tpu.memory_space<smem>>
    %c29 = arith.constant 29 : index
    %190 = memref.load %arg4[%c29] : memref<98xf32, #tpu.memory_space<smem>>
    %c30 = arith.constant 30 : index
    %191 = memref.load %arg4[%c30] : memref<98xf32, #tpu.memory_space<smem>>
    %c31 = arith.constant 31 : index
    %192 = memref.load %arg4[%c31] : memref<98xf32, #tpu.memory_space<smem>>
    %c32 = arith.constant 32 : index
    %193 = memref.load %arg4[%c32] : memref<98xf32, #tpu.memory_space<smem>>
    %c33 = arith.constant 33 : index
    %194 = memref.load %arg4[%c33] : memref<98xf32, #tpu.memory_space<smem>>
    %c34 = arith.constant 34 : index
    %195 = memref.load %arg4[%c34] : memref<98xf32, #tpu.memory_space<smem>>
    %c35 = arith.constant 35 : index
    %196 = memref.load %arg4[%c35] : memref<98xf32, #tpu.memory_space<smem>>
    %c36 = arith.constant 36 : index
    %197 = memref.load %arg4[%c36] : memref<98xf32, #tpu.memory_space<smem>>
    %c37 = arith.constant 37 : index
    %198 = memref.load %arg4[%c37] : memref<98xf32, #tpu.memory_space<smem>>
    %c38 = arith.constant 38 : index
    %199 = memref.load %arg4[%c38] : memref<98xf32, #tpu.memory_space<smem>>
    %c39 = arith.constant 39 : index
    %200 = memref.load %arg4[%c39] : memref<98xf32, #tpu.memory_space<smem>>
    %c40 = arith.constant 40 : index
    %201 = memref.load %arg4[%c40] : memref<98xf32, #tpu.memory_space<smem>>
    %c41 = arith.constant 41 : index
    %202 = memref.load %arg4[%c41] : memref<98xf32, #tpu.memory_space<smem>>
    %c42 = arith.constant 42 : index
    %203 = memref.load %arg4[%c42] : memref<98xf32, #tpu.memory_space<smem>>
    %c43 = arith.constant 43 : index
    %204 = memref.load %arg4[%c43] : memref<98xf32, #tpu.memory_space<smem>>
    %c44 = arith.constant 44 : index
    %205 = memref.load %arg4[%c44] : memref<98xf32, #tpu.memory_space<smem>>
    %c45 = arith.constant 45 : index
    %206 = memref.load %arg4[%c45] : memref<98xf32, #tpu.memory_space<smem>>
    %c46 = arith.constant 46 : index
    %207 = memref.load %arg4[%c46] : memref<98xf32, #tpu.memory_space<smem>>
    %c47 = arith.constant 47 : index
    %208 = memref.load %arg4[%c47] : memref<98xf32, #tpu.memory_space<smem>>
    %c48 = arith.constant 48 : index
    %209 = memref.load %arg4[%c48] : memref<98xf32, #tpu.memory_space<smem>>
    %c49 = arith.constant 49 : index
    %210 = memref.load %arg4[%c49] : memref<98xf32, #tpu.memory_space<smem>>
    %c50 = arith.constant 50 : index
    %211 = memref.load %arg4[%c50] : memref<98xf32, #tpu.memory_space<smem>>
    %c51 = arith.constant 51 : index
    %212 = memref.load %arg4[%c51] : memref<98xf32, #tpu.memory_space<smem>>
    %c52 = arith.constant 52 : index
    %213 = memref.load %arg4[%c52] : memref<98xf32, #tpu.memory_space<smem>>
    %c53 = arith.constant 53 : index
    %214 = memref.load %arg4[%c53] : memref<98xf32, #tpu.memory_space<smem>>
    %c54 = arith.constant 54 : index
    %215 = memref.load %arg4[%c54] : memref<98xf32, #tpu.memory_space<smem>>
    %c55 = arith.constant 55 : index
    %216 = memref.load %arg4[%c55] : memref<98xf32, #tpu.memory_space<smem>>
    %c56 = arith.constant 56 : index
    %217 = memref.load %arg4[%c56] : memref<98xf32, #tpu.memory_space<smem>>
    %c57 = arith.constant 57 : index
    %218 = memref.load %arg4[%c57] : memref<98xf32, #tpu.memory_space<smem>>
    %c58 = arith.constant 58 : index
    %219 = memref.load %arg4[%c58] : memref<98xf32, #tpu.memory_space<smem>>
    %c59 = arith.constant 59 : index
    %220 = memref.load %arg4[%c59] : memref<98xf32, #tpu.memory_space<smem>>
    %c60 = arith.constant 60 : index
    %221 = memref.load %arg4[%c60] : memref<98xf32, #tpu.memory_space<smem>>
    %c61 = arith.constant 61 : index
    %222 = memref.load %arg4[%c61] : memref<98xf32, #tpu.memory_space<smem>>
    %c62 = arith.constant 62 : index
    %223 = memref.load %arg4[%c62] : memref<98xf32, #tpu.memory_space<smem>>
    %c63 = arith.constant 63 : index
    %224 = memref.load %arg4[%c63] : memref<98xf32, #tpu.memory_space<smem>>
    %c64 = arith.constant 64 : index
    %225 = memref.load %arg4[%c64] : memref<98xf32, #tpu.memory_space<smem>>
    %c65 = arith.constant 65 : index
    %226 = memref.load %arg4[%c65] : memref<98xf32, #tpu.memory_space<smem>>
    %c66 = arith.constant 66 : index
    %227 = memref.load %arg4[%c66] : memref<98xf32, #tpu.memory_space<smem>>
    %c67 = arith.constant 67 : index
    %228 = memref.load %arg4[%c67] : memref<98xf32, #tpu.memory_space<smem>>
    %c68 = arith.constant 68 : index
    %229 = memref.load %arg4[%c68] : memref<98xf32, #tpu.memory_space<smem>>
    %c69 = arith.constant 69 : index
    %230 = memref.load %arg4[%c69] : memref<98xf32, #tpu.memory_space<smem>>
    %c70 = arith.constant 70 : index
    %231 = memref.load %arg4[%c70] : memref<98xf32, #tpu.memory_space<smem>>
    %c71 = arith.constant 71 : index
    %232 = memref.load %arg4[%c71] : memref<98xf32, #tpu.memory_space<smem>>
    %c72 = arith.constant 72 : index
    %233 = memref.load %arg4[%c72] : memref<98xf32, #tpu.memory_space<smem>>
    %c73 = arith.constant 73 : index
    %234 = memref.load %arg4[%c73] : memref<98xf32, #tpu.memory_space<smem>>
    %c74 = arith.constant 74 : index
    %235 = memref.load %arg4[%c74] : memref<98xf32, #tpu.memory_space<smem>>
    %c75 = arith.constant 75 : index
    %236 = memref.load %arg4[%c75] : memref<98xf32, #tpu.memory_space<smem>>
    %c76 = arith.constant 76 : index
    %237 = memref.load %arg4[%c76] : memref<98xf32, #tpu.memory_space<smem>>
    %c77 = arith.constant 77 : index
    %238 = memref.load %arg4[%c77] : memref<98xf32, #tpu.memory_space<smem>>
    %c78 = arith.constant 78 : index
    %239 = memref.load %arg4[%c78] : memref<98xf32, #tpu.memory_space<smem>>
    %c79 = arith.constant 79 : index
    %240 = memref.load %arg4[%c79] : memref<98xf32, #tpu.memory_space<smem>>
    %c80 = arith.constant 80 : index
    %241 = memref.load %arg4[%c80] : memref<98xf32, #tpu.memory_space<smem>>
    %c81 = arith.constant 81 : index
    %242 = memref.load %arg4[%c81] : memref<98xf32, #tpu.memory_space<smem>>
    %c82 = arith.constant 82 : index
    %243 = memref.load %arg4[%c82] : memref<98xf32, #tpu.memory_space<smem>>
    %c83 = arith.constant 83 : index
    %244 = memref.load %arg4[%c83] : memref<98xf32, #tpu.memory_space<smem>>
    %c84 = arith.constant 84 : index
    %245 = memref.load %arg4[%c84] : memref<98xf32, #tpu.memory_space<smem>>
    %c85 = arith.constant 85 : index
    %246 = memref.load %arg4[%c85] : memref<98xf32, #tpu.memory_space<smem>>
    %c86 = arith.constant 86 : index
    %247 = memref.load %arg4[%c86] : memref<98xf32, #tpu.memory_space<smem>>
    %c87 = arith.constant 87 : index
    %248 = memref.load %arg4[%c87] : memref<98xf32, #tpu.memory_space<smem>>
    %c88 = arith.constant 88 : index
    %249 = memref.load %arg4[%c88] : memref<98xf32, #tpu.memory_space<smem>>
    %c89 = arith.constant 89 : index
    %250 = memref.load %arg4[%c89] : memref<98xf32, #tpu.memory_space<smem>>
    %c90 = arith.constant 90 : index
    %251 = memref.load %arg4[%c90] : memref<98xf32, #tpu.memory_space<smem>>
    %c91 = arith.constant 91 : index
    %252 = memref.load %arg4[%c91] : memref<98xf32, #tpu.memory_space<smem>>
    %c92 = arith.constant 92 : index
    %253 = memref.load %arg4[%c92] : memref<98xf32, #tpu.memory_space<smem>>
    %c93 = arith.constant 93 : index
    %254 = memref.load %arg4[%c93] : memref<98xf32, #tpu.memory_space<smem>>
    %c94 = arith.constant 94 : index
    %255 = memref.load %arg4[%c94] : memref<98xf32, #tpu.memory_space<smem>>
    %c95 = arith.constant 95 : index
    %256 = memref.load %arg4[%c95] : memref<98xf32, #tpu.memory_space<smem>>
    %c96 = arith.constant 96 : index
    %257 = memref.load %arg4[%c96] : memref<98xf32, #tpu.memory_space<smem>>
    %c97 = arith.constant 97 : index
    %258 = memref.load %arg4[%c97] : memref<98xf32, #tpu.memory_space<smem>>
    %c0_116 = arith.constant 0 : index
    %259 = memref.load %arg5[%c0_116] : memref<1xf32, #tpu.memory_space<smem>>
    %c0_117 = arith.constant 0 : index
    %c0_118 = arith.constant 0 : index
    %c0_119 = arith.constant 0 : index
    %260 = vector.load %arg7[%c0_117, %c0_118, %c0_119] : memref<2x22x22xf32, #tpu.memory_space<vmem>>, vector<2x22x22xf32>
    %261 = vector.extract_strided_slice %260 {offsets = [0, 0, 0], sizes = [1, 22, 16], strides = [1, 1, 1]} : vector<2x22x22xf32> to vector<1x22x16xf32>
    %262 = vector.shape_cast %261 : vector<1x22x16xf32> to vector<22x16xf32>
    %263 = vector.extract_strided_slice %260 {offsets = [0, 0, 1], sizes = [1, 22, 16], strides = [1, 1, 1]} : vector<2x22x22xf32> to vector<1x22x16xf32>
    %264 = vector.shape_cast %263 : vector<1x22x16xf32> to vector<22x16xf32>
    %265 = vector.extract_strided_slice %260 {offsets = [0, 0, 2], sizes = [1, 22, 16], strides = [1, 1, 1]} : vector<2x22x22xf32> to vector<1x22x16xf32>
    %266 = vector.shape_cast %265 : vector<1x22x16xf32> to vector<22x16xf32>
    %267 = vector.extract_strided_slice %260 {offsets = [0, 0, 3], sizes = [1, 22, 16], strides = [1, 1, 1]} : vector<2x22x22xf32> to vector<1x22x16xf32>
    %268 = vector.shape_cast %267 : vector<1x22x16xf32> to vector<22x16xf32>
    %269 = vector.extract_strided_slice %260 {offsets = [0, 0, 4], sizes = [1, 22, 16], strides = [1, 1, 1]} : vector<2x22x22xf32> to vector<1x22x16xf32>
    %270 = vector.shape_cast %269 : vector<1x22x16xf32> to vector<22x16xf32>
    %271 = vector.extract_strided_slice %260 {offsets = [0, 0, 5], sizes = [1, 22, 16], strides = [1, 1, 1]} : vector<2x22x22xf32> to vector<1x22x16xf32>
    %272 = vector.shape_cast %271 : vector<1x22x16xf32> to vector<22x16xf32>
    %273 = vector.extract_strided_slice %260 {offsets = [0, 0, 6], sizes = [1, 22, 16], strides = [1, 1, 1]} : vector<2x22x22xf32> to vector<1x22x16xf32>
    %274 = vector.shape_cast %273 : vector<1x22x16xf32> to vector<22x16xf32>
    %275 = vector.extract_strided_slice %260 {offsets = [1, 0, 0], sizes = [1, 22, 16], strides = [1, 1, 1]} : vector<2x22x22xf32> to vector<1x22x16xf32>
    %276 = vector.shape_cast %275 : vector<1x22x16xf32> to vector<22x16xf32>
    %277 = vector.extract_strided_slice %260 {offsets = [1, 0, 1], sizes = [1, 22, 16], strides = [1, 1, 1]} : vector<2x22x22xf32> to vector<1x22x16xf32>
    %278 = vector.shape_cast %277 : vector<1x22x16xf32> to vector<22x16xf32>
    %279 = vector.extract_strided_slice %260 {offsets = [1, 0, 2], sizes = [1, 22, 16], strides = [1, 1, 1]} : vector<2x22x22xf32> to vector<1x22x16xf32>
    %280 = vector.shape_cast %279 : vector<1x22x16xf32> to vector<22x16xf32>
    %281 = vector.extract_strided_slice %260 {offsets = [1, 0, 3], sizes = [1, 22, 16], strides = [1, 1, 1]} : vector<2x22x22xf32> to vector<1x22x16xf32>
    %282 = vector.shape_cast %281 : vector<1x22x16xf32> to vector<22x16xf32>
    %283 = vector.extract_strided_slice %260 {offsets = [1, 0, 4], sizes = [1, 22, 16], strides = [1, 1, 1]} : vector<2x22x22xf32> to vector<1x22x16xf32>
    %284 = vector.shape_cast %283 : vector<1x22x16xf32> to vector<22x16xf32>
    %285 = vector.extract_strided_slice %260 {offsets = [1, 0, 5], sizes = [1, 22, 16], strides = [1, 1, 1]} : vector<2x22x22xf32> to vector<1x22x16xf32>
    %286 = vector.shape_cast %285 : vector<1x22x16xf32> to vector<22x16xf32>
    %287 = vector.extract_strided_slice %260 {offsets = [1, 0, 6], sizes = [1, 22, 16], strides = [1, 1, 1]} : vector<2x22x22xf32> to vector<1x22x16xf32>
    %288 = vector.shape_cast %287 : vector<1x22x16xf32> to vector<22x16xf32>
    %cst_120 = arith.constant 0.000000e+00 : f32
    %289 = vector.broadcast %cst_120 : f32 to vector<16x16xf32>
    %cst_121 = arith.constant 0.000000e+00 : f32
    %290 = vector.broadcast %cst_121 : f32 to vector<22x16xf32>
    %291 = vector.broadcast %161 : f32 to vector<22x16xf32>
    %292 = arith.mulf %291, %262 : vector<22x16xf32>
    %293 = arith.addf %290, %292 : vector<22x16xf32>
    %294 = vector.broadcast %162 : f32 to vector<22x16xf32>
    %295 = arith.mulf %294, %264 : vector<22x16xf32>
    %296 = arith.addf %293, %295 : vector<22x16xf32>
    %297 = vector.broadcast %163 : f32 to vector<22x16xf32>
    %298 = arith.mulf %297, %266 : vector<22x16xf32>
    %299 = arith.addf %296, %298 : vector<22x16xf32>
    %300 = vector.broadcast %164 : f32 to vector<22x16xf32>
    %301 = arith.mulf %300, %268 : vector<22x16xf32>
    %302 = arith.addf %299, %301 : vector<22x16xf32>
    %303 = vector.broadcast %165 : f32 to vector<22x16xf32>
    %304 = arith.mulf %303, %270 : vector<22x16xf32>
    %305 = arith.addf %302, %304 : vector<22x16xf32>
    %306 = vector.broadcast %166 : f32 to vector<22x16xf32>
    %307 = arith.mulf %306, %272 : vector<22x16xf32>
    %308 = arith.addf %305, %307 : vector<22x16xf32>
    %309 = vector.broadcast %167 : f32 to vector<22x16xf32>
    %310 = arith.mulf %309, %274 : vector<22x16xf32>
    %311 = arith.addf %308, %310 : vector<22x16xf32>
    %312 = vector.broadcast %210 : f32 to vector<22x16xf32>
    %313 = arith.mulf %312, %276 : vector<22x16xf32>
    %314 = arith.addf %311, %313 : vector<22x16xf32>
    %315 = vector.broadcast %211 : f32 to vector<22x16xf32>
    %316 = arith.mulf %315, %278 : vector<22x16xf32>
    %317 = arith.addf %314, %316 : vector<22x16xf32>
    %318 = vector.broadcast %212 : f32 to vector<22x16xf32>
    %319 = arith.mulf %318, %280 : vector<22x16xf32>
    %320 = arith.addf %317, %319 : vector<22x16xf32>
    %321 = vector.broadcast %213 : f32 to vector<22x16xf32>
    %322 = arith.mulf %321, %282 : vector<22x16xf32>
    %323 = arith.addf %320, %322 : vector<22x16xf32>
    %324 = vector.broadcast %214 : f32 to vector<22x16xf32>
    %325 = arith.mulf %324, %284 : vector<22x16xf32>
    %326 = arith.addf %323, %325 : vector<22x16xf32>
    %327 = vector.broadcast %215 : f32 to vector<22x16xf32>
    %328 = arith.mulf %327, %286 : vector<22x16xf32>
    %329 = arith.addf %326, %328 : vector<22x16xf32>
    %330 = vector.broadcast %216 : f32 to vector<22x16xf32>
    %331 = arith.mulf %330, %288 : vector<22x16xf32>
    %332 = arith.addf %329, %331 : vector<22x16xf32>
    %333 = vector.extract_strided_slice %332 {offsets = [0, 0], sizes = [16, 16], strides = [1, 1]} : vector<22x16xf32> to vector<16x16xf32>
    %334 = arith.addf %289, %333 : vector<16x16xf32>
    %cst_122 = arith.constant 0.000000e+00 : f32
    %335 = vector.broadcast %cst_122 : f32 to vector<22x16xf32>
    %336 = vector.broadcast %168 : f32 to vector<22x16xf32>
    %337 = arith.mulf %336, %262 : vector<22x16xf32>
    %338 = arith.addf %335, %337 : vector<22x16xf32>
    %339 = vector.broadcast %169 : f32 to vector<22x16xf32>
    %340 = arith.mulf %339, %264 : vector<22x16xf32>
    %341 = arith.addf %338, %340 : vector<22x16xf32>
    %342 = vector.broadcast %170 : f32 to vector<22x16xf32>
    %343 = arith.mulf %342, %266 : vector<22x16xf32>
    %344 = arith.addf %341, %343 : vector<22x16xf32>
    %345 = vector.broadcast %171 : f32 to vector<22x16xf32>
    %346 = arith.mulf %345, %268 : vector<22x16xf32>
    %347 = arith.addf %344, %346 : vector<22x16xf32>
    %348 = vector.broadcast %172 : f32 to vector<22x16xf32>
    %349 = arith.mulf %348, %270 : vector<22x16xf32>
    %350 = arith.addf %347, %349 : vector<22x16xf32>
    %351 = vector.broadcast %173 : f32 to vector<22x16xf32>
    %352 = arith.mulf %351, %272 : vector<22x16xf32>
    %353 = arith.addf %350, %352 : vector<22x16xf32>
    %354 = vector.broadcast %174 : f32 to vector<22x16xf32>
    %355 = arith.mulf %354, %274 : vector<22x16xf32>
    %356 = arith.addf %353, %355 : vector<22x16xf32>
    %357 = vector.broadcast %217 : f32 to vector<22x16xf32>
    %358 = arith.mulf %357, %276 : vector<22x16xf32>
    %359 = arith.addf %356, %358 : vector<22x16xf32>
    %360 = vector.broadcast %218 : f32 to vector<22x16xf32>
    %361 = arith.mulf %360, %278 : vector<22x16xf32>
    %362 = arith.addf %359, %361 : vector<22x16xf32>
    %363 = vector.broadcast %219 : f32 to vector<22x16xf32>
    %364 = arith.mulf %363, %280 : vector<22x16xf32>
    %365 = arith.addf %362, %364 : vector<22x16xf32>
    %366 = vector.broadcast %220 : f32 to vector<22x16xf32>
    %367 = arith.mulf %366, %282 : vector<22x16xf32>
    %368 = arith.addf %365, %367 : vector<22x16xf32>
    %369 = vector.broadcast %221 : f32 to vector<22x16xf32>
    %370 = arith.mulf %369, %284 : vector<22x16xf32>
    %371 = arith.addf %368, %370 : vector<22x16xf32>
    %372 = vector.broadcast %222 : f32 to vector<22x16xf32>
    %373 = arith.mulf %372, %286 : vector<22x16xf32>
    %374 = arith.addf %371, %373 : vector<22x16xf32>
    %375 = vector.broadcast %223 : f32 to vector<22x16xf32>
    %376 = arith.mulf %375, %288 : vector<22x16xf32>
    %377 = arith.addf %374, %376 : vector<22x16xf32>
    %378 = vector.extract_strided_slice %377 {offsets = [1, 0], sizes = [16, 16], strides = [1, 1]} : vector<22x16xf32> to vector<16x16xf32>
    %379 = arith.addf %334, %378 : vector<16x16xf32>
    %cst_123 = arith.constant 0.000000e+00 : f32
    %380 = vector.broadcast %cst_123 : f32 to vector<22x16xf32>
    %381 = vector.broadcast %175 : f32 to vector<22x16xf32>
    %382 = arith.mulf %381, %262 : vector<22x16xf32>
    %383 = arith.addf %380, %382 : vector<22x16xf32>
    %384 = vector.broadcast %176 : f32 to vector<22x16xf32>
    %385 = arith.mulf %384, %264 : vector<22x16xf32>
    %386 = arith.addf %383, %385 : vector<22x16xf32>
    %387 = vector.broadcast %177 : f32 to vector<22x16xf32>
    %388 = arith.mulf %387, %266 : vector<22x16xf32>
    %389 = arith.addf %386, %388 : vector<22x16xf32>
    %390 = vector.broadcast %178 : f32 to vector<22x16xf32>
    %391 = arith.mulf %390, %268 : vector<22x16xf32>
    %392 = arith.addf %389, %391 : vector<22x16xf32>
    %393 = vector.broadcast %179 : f32 to vector<22x16xf32>
    %394 = arith.mulf %393, %270 : vector<22x16xf32>
    %395 = arith.addf %392, %394 : vector<22x16xf32>
    %396 = vector.broadcast %180 : f32 to vector<22x16xf32>
    %397 = arith.mulf %396, %272 : vector<22x16xf32>
    %398 = arith.addf %395, %397 : vector<22x16xf32>
    %399 = vector.broadcast %181 : f32 to vector<22x16xf32>
    %400 = arith.mulf %399, %274 : vector<22x16xf32>
    %401 = arith.addf %398, %400 : vector<22x16xf32>
    %402 = vector.broadcast %224 : f32 to vector<22x16xf32>
    %403 = arith.mulf %402, %276 : vector<22x16xf32>
    %404 = arith.addf %401, %403 : vector<22x16xf32>
    %405 = vector.broadcast %225 : f32 to vector<22x16xf32>
    %406 = arith.mulf %405, %278 : vector<22x16xf32>
    %407 = arith.addf %404, %406 : vector<22x16xf32>
    %408 = vector.broadcast %226 : f32 to vector<22x16xf32>
    %409 = arith.mulf %408, %280 : vector<22x16xf32>
    %410 = arith.addf %407, %409 : vector<22x16xf32>
    %411 = vector.broadcast %227 : f32 to vector<22x16xf32>
    %412 = arith.mulf %411, %282 : vector<22x16xf32>
    %413 = arith.addf %410, %412 : vector<22x16xf32>
    %414 = vector.broadcast %228 : f32 to vector<22x16xf32>
    %415 = arith.mulf %414, %284 : vector<22x16xf32>
    %416 = arith.addf %413, %415 : vector<22x16xf32>
    %417 = vector.broadcast %229 : f32 to vector<22x16xf32>
    %418 = arith.mulf %417, %286 : vector<22x16xf32>
    %419 = arith.addf %416, %418 : vector<22x16xf32>
    %420 = vector.broadcast %230 : f32 to vector<22x16xf32>
    %421 = arith.mulf %420, %288 : vector<22x16xf32>
    %422 = arith.addf %419, %421 : vector<22x16xf32>
    %423 = vector.extract_strided_slice %422 {offsets = [2, 0], sizes = [16, 16], strides = [1, 1]} : vector<22x16xf32> to vector<16x16xf32>
    %424 = arith.addf %379, %423 : vector<16x16xf32>
    %cst_124 = arith.constant 0.000000e+00 : f32
    %425 = vector.broadcast %cst_124 : f32 to vector<22x16xf32>
    %426 = vector.broadcast %182 : f32 to vector<22x16xf32>
    %427 = arith.mulf %426, %262 : vector<22x16xf32>
    %428 = arith.addf %425, %427 : vector<22x16xf32>
    %429 = vector.broadcast %183 : f32 to vector<22x16xf32>
    %430 = arith.mulf %429, %264 : vector<22x16xf32>
    %431 = arith.addf %428, %430 : vector<22x16xf32>
    %432 = vector.broadcast %184 : f32 to vector<22x16xf32>
    %433 = arith.mulf %432, %266 : vector<22x16xf32>
    %434 = arith.addf %431, %433 : vector<22x16xf32>
    %435 = vector.broadcast %185 : f32 to vector<22x16xf32>
    %436 = arith.mulf %435, %268 : vector<22x16xf32>
    %437 = arith.addf %434, %436 : vector<22x16xf32>
    %438 = vector.broadcast %186 : f32 to vector<22x16xf32>
    %439 = arith.mulf %438, %270 : vector<22x16xf32>
    %440 = arith.addf %437, %439 : vector<22x16xf32>
    %441 = vector.broadcast %187 : f32 to vector<22x16xf32>
    %442 = arith.mulf %441, %272 : vector<22x16xf32>
    %443 = arith.addf %440, %442 : vector<22x16xf32>
    %444 = vector.broadcast %188 : f32 to vector<22x16xf32>
    %445 = arith.mulf %444, %274 : vector<22x16xf32>
    %446 = arith.addf %443, %445 : vector<22x16xf32>
    %447 = vector.broadcast %231 : f32 to vector<22x16xf32>
    %448 = arith.mulf %447, %276 : vector<22x16xf32>
    %449 = arith.addf %446, %448 : vector<22x16xf32>
    %450 = vector.broadcast %232 : f32 to vector<22x16xf32>
    %451 = arith.mulf %450, %278 : vector<22x16xf32>
    %452 = arith.addf %449, %451 : vector<22x16xf32>
    %453 = vector.broadcast %233 : f32 to vector<22x16xf32>
    %454 = arith.mulf %453, %280 : vector<22x16xf32>
    %455 = arith.addf %452, %454 : vector<22x16xf32>
    %456 = vector.broadcast %234 : f32 to vector<22x16xf32>
    %457 = arith.mulf %456, %282 : vector<22x16xf32>
    %458 = arith.addf %455, %457 : vector<22x16xf32>
    %459 = vector.broadcast %235 : f32 to vector<22x16xf32>
    %460 = arith.mulf %459, %284 : vector<22x16xf32>
    %461 = arith.addf %458, %460 : vector<22x16xf32>
    %462 = vector.broadcast %236 : f32 to vector<22x16xf32>
    %463 = arith.mulf %462, %286 : vector<22x16xf32>
    %464 = arith.addf %461, %463 : vector<22x16xf32>
    %465 = vector.broadcast %237 : f32 to vector<22x16xf32>
    %466 = arith.mulf %465, %288 : vector<22x16xf32>
    %467 = arith.addf %464, %466 : vector<22x16xf32>
    %468 = vector.extract_strided_slice %467 {offsets = [3, 0], sizes = [16, 16], strides = [1, 1]} : vector<22x16xf32> to vector<16x16xf32>
    %469 = arith.addf %424, %468 : vector<16x16xf32>
    %cst_125 = arith.constant 0.000000e+00 : f32
    %470 = vector.broadcast %cst_125 : f32 to vector<22x16xf32>
    %471 = vector.broadcast %189 : f32 to vector<22x16xf32>
    %472 = arith.mulf %471, %262 : vector<22x16xf32>
    %473 = arith.addf %470, %472 : vector<22x16xf32>
    %474 = vector.broadcast %190 : f32 to vector<22x16xf32>
    %475 = arith.mulf %474, %264 : vector<22x16xf32>
    %476 = arith.addf %473, %475 : vector<22x16xf32>
    %477 = vector.broadcast %191 : f32 to vector<22x16xf32>
    %478 = arith.mulf %477, %266 : vector<22x16xf32>
    %479 = arith.addf %476, %478 : vector<22x16xf32>
    %480 = vector.broadcast %192 : f32 to vector<22x16xf32>
    %481 = arith.mulf %480, %268 : vector<22x16xf32>
    %482 = arith.addf %479, %481 : vector<22x16xf32>
    %483 = vector.broadcast %193 : f32 to vector<22x16xf32>
    %484 = arith.mulf %483, %270 : vector<22x16xf32>
    %485 = arith.addf %482, %484 : vector<22x16xf32>
    %486 = vector.broadcast %194 : f32 to vector<22x16xf32>
    %487 = arith.mulf %486, %272 : vector<22x16xf32>
    %488 = arith.addf %485, %487 : vector<22x16xf32>
    %489 = vector.broadcast %195 : f32 to vector<22x16xf32>
    %490 = arith.mulf %489, %274 : vector<22x16xf32>
    %491 = arith.addf %488, %490 : vector<22x16xf32>
    %492 = vector.broadcast %238 : f32 to vector<22x16xf32>
    %493 = arith.mulf %492, %276 : vector<22x16xf32>
    %494 = arith.addf %491, %493 : vector<22x16xf32>
    %495 = vector.broadcast %239 : f32 to vector<22x16xf32>
    %496 = arith.mulf %495, %278 : vector<22x16xf32>
    %497 = arith.addf %494, %496 : vector<22x16xf32>
    %498 = vector.broadcast %240 : f32 to vector<22x16xf32>
    %499 = arith.mulf %498, %280 : vector<22x16xf32>
    %500 = arith.addf %497, %499 : vector<22x16xf32>
    %501 = vector.broadcast %241 : f32 to vector<22x16xf32>
    %502 = arith.mulf %501, %282 : vector<22x16xf32>
    %503 = arith.addf %500, %502 : vector<22x16xf32>
    %504 = vector.broadcast %242 : f32 to vector<22x16xf32>
    %505 = arith.mulf %504, %284 : vector<22x16xf32>
    %506 = arith.addf %503, %505 : vector<22x16xf32>
    %507 = vector.broadcast %243 : f32 to vector<22x16xf32>
    %508 = arith.mulf %507, %286 : vector<22x16xf32>
    %509 = arith.addf %506, %508 : vector<22x16xf32>
    %510 = vector.broadcast %244 : f32 to vector<22x16xf32>
    %511 = arith.mulf %510, %288 : vector<22x16xf32>
    %512 = arith.addf %509, %511 : vector<22x16xf32>
    %513 = vector.extract_strided_slice %512 {offsets = [4, 0], sizes = [16, 16], strides = [1, 1]} : vector<22x16xf32> to vector<16x16xf32>
    %514 = arith.addf %469, %513 : vector<16x16xf32>
    %cst_126 = arith.constant 0.000000e+00 : f32
    %515 = vector.broadcast %cst_126 : f32 to vector<22x16xf32>
    %516 = vector.broadcast %196 : f32 to vector<22x16xf32>
    %517 = arith.mulf %516, %262 : vector<22x16xf32>
    %518 = arith.addf %515, %517 : vector<22x16xf32>
    %519 = vector.broadcast %197 : f32 to vector<22x16xf32>
    %520 = arith.mulf %519, %264 : vector<22x16xf32>
    %521 = arith.addf %518, %520 : vector<22x16xf32>
    %522 = vector.broadcast %198 : f32 to vector<22x16xf32>
    %523 = arith.mulf %522, %266 : vector<22x16xf32>
    %524 = arith.addf %521, %523 : vector<22x16xf32>
    %525 = vector.broadcast %199 : f32 to vector<22x16xf32>
    %526 = arith.mulf %525, %268 : vector<22x16xf32>
    %527 = arith.addf %524, %526 : vector<22x16xf32>
    %528 = vector.broadcast %200 : f32 to vector<22x16xf32>
    %529 = arith.mulf %528, %270 : vector<22x16xf32>
    %530 = arith.addf %527, %529 : vector<22x16xf32>
    %531 = vector.broadcast %201 : f32 to vector<22x16xf32>
    %532 = arith.mulf %531, %272 : vector<22x16xf32>
    %533 = arith.addf %530, %532 : vector<22x16xf32>
    %534 = vector.broadcast %202 : f32 to vector<22x16xf32>
    %535 = arith.mulf %534, %274 : vector<22x16xf32>
    %536 = arith.addf %533, %535 : vector<22x16xf32>
    %537 = vector.broadcast %245 : f32 to vector<22x16xf32>
    %538 = arith.mulf %537, %276 : vector<22x16xf32>
    %539 = arith.addf %536, %538 : vector<22x16xf32>
    %540 = vector.broadcast %246 : f32 to vector<22x16xf32>
    %541 = arith.mulf %540, %278 : vector<22x16xf32>
    %542 = arith.addf %539, %541 : vector<22x16xf32>
    %543 = vector.broadcast %247 : f32 to vector<22x16xf32>
    %544 = arith.mulf %543, %280 : vector<22x16xf32>
    %545 = arith.addf %542, %544 : vector<22x16xf32>
    %546 = vector.broadcast %248 : f32 to vector<22x16xf32>
    %547 = arith.mulf %546, %282 : vector<22x16xf32>
    %548 = arith.addf %545, %547 : vector<22x16xf32>
    %549 = vector.broadcast %249 : f32 to vector<22x16xf32>
    %550 = arith.mulf %549, %284 : vector<22x16xf32>
    %551 = arith.addf %548, %550 : vector<22x16xf32>
    %552 = vector.broadcast %250 : f32 to vector<22x16xf32>
    %553 = arith.mulf %552, %286 : vector<22x16xf32>
    %554 = arith.addf %551, %553 : vector<22x16xf32>
    %555 = vector.broadcast %251 : f32 to vector<22x16xf32>
    %556 = arith.mulf %555, %288 : vector<22x16xf32>
    %557 = arith.addf %554, %556 : vector<22x16xf32>
    %558 = vector.extract_strided_slice %557 {offsets = [5, 0], sizes = [16, 16], strides = [1, 1]} : vector<22x16xf32> to vector<16x16xf32>
    %559 = arith.addf %514, %558 : vector<16x16xf32>
    %cst_127 = arith.constant 0.000000e+00 : f32
    %560 = vector.broadcast %cst_127 : f32 to vector<22x16xf32>
    %561 = vector.broadcast %203 : f32 to vector<22x16xf32>
    %562 = arith.mulf %561, %262 : vector<22x16xf32>
    %563 = arith.addf %560, %562 : vector<22x16xf32>
    %564 = vector.broadcast %204 : f32 to vector<22x16xf32>
    %565 = arith.mulf %564, %264 : vector<22x16xf32>
    %566 = arith.addf %563, %565 : vector<22x16xf32>
    %567 = vector.broadcast %205 : f32 to vector<22x16xf32>
    %568 = arith.mulf %567, %266 : vector<22x16xf32>
    %569 = arith.addf %566, %568 : vector<22x16xf32>
    %570 = vector.broadcast %206 : f32 to vector<22x16xf32>
    %571 = arith.mulf %570, %268 : vector<22x16xf32>
    %572 = arith.addf %569, %571 : vector<22x16xf32>
    %573 = vector.broadcast %207 : f32 to vector<22x16xf32>
    %574 = arith.mulf %573, %270 : vector<22x16xf32>
    %575 = arith.addf %572, %574 : vector<22x16xf32>
    %576 = vector.broadcast %208 : f32 to vector<22x16xf32>
    %577 = arith.mulf %576, %272 : vector<22x16xf32>
    %578 = arith.addf %575, %577 : vector<22x16xf32>
    %579 = vector.broadcast %209 : f32 to vector<22x16xf32>
    %580 = arith.mulf %579, %274 : vector<22x16xf32>
    %581 = arith.addf %578, %580 : vector<22x16xf32>
    %582 = vector.broadcast %252 : f32 to vector<22x16xf32>
    %583 = arith.mulf %582, %276 : vector<22x16xf32>
    %584 = arith.addf %581, %583 : vector<22x16xf32>
    %585 = vector.broadcast %253 : f32 to vector<22x16xf32>
    %586 = arith.mulf %585, %278 : vector<22x16xf32>
    %587 = arith.addf %584, %586 : vector<22x16xf32>
    %588 = vector.broadcast %254 : f32 to vector<22x16xf32>
    %589 = arith.mulf %588, %280 : vector<22x16xf32>
    %590 = arith.addf %587, %589 : vector<22x16xf32>
    %591 = vector.broadcast %255 : f32 to vector<22x16xf32>
    %592 = arith.mulf %591, %282 : vector<22x16xf32>
    %593 = arith.addf %590, %592 : vector<22x16xf32>
    %594 = vector.broadcast %256 : f32 to vector<22x16xf32>
    %595 = arith.mulf %594, %284 : vector<22x16xf32>
    %596 = arith.addf %593, %595 : vector<22x16xf32>
    %597 = vector.broadcast %257 : f32 to vector<22x16xf32>
    %598 = arith.mulf %597, %286 : vector<22x16xf32>
    %599 = arith.addf %596, %598 : vector<22x16xf32>
    %600 = vector.broadcast %258 : f32 to vector<22x16xf32>
    %601 = arith.mulf %600, %288 : vector<22x16xf32>
    %602 = arith.addf %599, %601 : vector<22x16xf32>
    %603 = vector.extract_strided_slice %602 {offsets = [6, 0], sizes = [16, 16], strides = [1, 1]} : vector<22x16xf32> to vector<16x16xf32>
    %604 = arith.addf %559, %603 : vector<16x16xf32>
    %605 = vector.broadcast %259 : f32 to vector<16x16xf32>
    %606 = arith.addf %604, %605 : vector<16x16xf32>
    %607 = arith.negf %606 : vector<16x16xf32>
    %608 = math.exp %607 : vector<16x16xf32>
    %cst_128 = arith.constant 1.000000e+00 : f32
    %609 = vector.broadcast %cst_128 : f32 to vector<16x16xf32>
    %610 = arith.addf %609, %608 : vector<16x16xf32>
    %611 = arith.divf %609, %610 : vector<16x16xf32>
    %612 = vector.extract_strided_slice %611 {offsets = [0, 0], sizes = [1, 16], strides = [1, 1]} : vector<16x16xf32> to vector<1x16xf32>
    %c0_129 = arith.constant 0 : index
    %c0_130 = arith.constant 0 : index
    %613 = vector.load %arg8[%c0_129, %c0_130] : memref<1x256xf32, #tpu.memory_space<vmem>>, vector<1x16xf32>
    tpu.vector_store %arg8[%c0_129, %c0_130], %612 {strides = array<i32>} : memref<1x256xf32, #tpu.memory_space<vmem>>, vector<1x16xf32>,
    %614 = vector.extract_strided_slice %611 {offsets = [1, 0], sizes = [1, 16], strides = [1, 1]} : vector<16x16xf32> to vector<1x16xf32>
    %c0_131 = arith.constant 0 : index
    %c16_132 = arith.constant 16 : index
    %615 = vector.load %arg8[%c0_131, %c16_132] : memref<1x256xf32, #tpu.memory_space<vmem>>, vector<1x16xf32>
    tpu.vector_store %arg8[%c0_131, %c16_132], %614 {strides = array<i32>} : memref<1x256xf32, #tpu.memory_space<vmem>>, vector<1x16xf32>,
    %616 = vector.extract_strided_slice %611 {offsets = [2, 0], sizes = [1, 16], strides = [1, 1]} : vector<16x16xf32> to vector<1x16xf32>
    %c0_133 = arith.constant 0 : index
    %c32_134 = arith.constant 32 : index
    %617 = vector.load %arg8[%c0_133, %c32_134] : memref<1x256xf32, #tpu.memory_space<vmem>>, vector<1x16xf32>
    tpu.vector_store %arg8[%c0_133, %c32_134], %616 {strides = array<i32>} : memref<1x256xf32, #tpu.memory_space<vmem>>, vector<1x16xf32>,
    %618 = vector.extract_strided_slice %611 {offsets = [3, 0], sizes = [1, 16], strides = [1, 1]} : vector<16x16xf32> to vector<1x16xf32>
    %c0_135 = arith.constant 0 : index
    %c48_136 = arith.constant 48 : index
    %619 = vector.load %arg8[%c0_135, %c48_136] : memref<1x256xf32, #tpu.memory_space<vmem>>, vector<1x16xf32>
    tpu.vector_store %arg8[%c0_135, %c48_136], %618 {strides = array<i32>} : memref<1x256xf32, #tpu.memory_space<vmem>>, vector<1x16xf32>,
    %620 = vector.extract_strided_slice %611 {offsets = [4, 0], sizes = [1, 16], strides = [1, 1]} : vector<16x16xf32> to vector<1x16xf32>
    %c0_137 = arith.constant 0 : index
    %c64_138 = arith.constant 64 : index
    %621 = vector.load %arg8[%c0_137, %c64_138] : memref<1x256xf32, #tpu.memory_space<vmem>>, vector<1x16xf32>
    tpu.vector_store %arg8[%c0_137, %c64_138], %620 {strides = array<i32>} : memref<1x256xf32, #tpu.memory_space<vmem>>, vector<1x16xf32>,
    %622 = vector.extract_strided_slice %611 {offsets = [5, 0], sizes = [1, 16], strides = [1, 1]} : vector<16x16xf32> to vector<1x16xf32>
    %c0_139 = arith.constant 0 : index
    %c80_140 = arith.constant 80 : index
    %623 = vector.load %arg8[%c0_139, %c80_140] : memref<1x256xf32, #tpu.memory_space<vmem>>, vector<1x16xf32>
    tpu.vector_store %arg8[%c0_139, %c80_140], %622 {strides = array<i32>} : memref<1x256xf32, #tpu.memory_space<vmem>>, vector<1x16xf32>,
    %624 = vector.extract_strided_slice %611 {offsets = [6, 0], sizes = [1, 16], strides = [1, 1]} : vector<16x16xf32> to vector<1x16xf32>
    %c0_141 = arith.constant 0 : index
    %c96_142 = arith.constant 96 : index
    %625 = vector.load %arg8[%c0_141, %c96_142] : memref<1x256xf32, #tpu.memory_space<vmem>>, vector<1x16xf32>
    tpu.vector_store %arg8[%c0_141, %c96_142], %624 {strides = array<i32>} : memref<1x256xf32, #tpu.memory_space<vmem>>, vector<1x16xf32>,
    %626 = vector.extract_strided_slice %611 {offsets = [7, 0], sizes = [1, 16], strides = [1, 1]} : vector<16x16xf32> to vector<1x16xf32>
    %c0_143 = arith.constant 0 : index
    %c112 = arith.constant 112 : index
    %627 = vector.load %arg8[%c0_143, %c112] : memref<1x256xf32, #tpu.memory_space<vmem>>, vector<1x16xf32>
    tpu.vector_store %arg8[%c0_143, %c112], %626 {strides = array<i32>} : memref<1x256xf32, #tpu.memory_space<vmem>>, vector<1x16xf32>,
    %628 = vector.extract_strided_slice %611 {offsets = [8, 0], sizes = [1, 16], strides = [1, 1]} : vector<16x16xf32> to vector<1x16xf32>
    %c0_144 = arith.constant 0 : index
    %c128 = arith.constant 128 : index
    %629 = vector.load %arg8[%c0_144, %c128] : memref<1x256xf32, #tpu.memory_space<vmem>>, vector<1x16xf32>
    tpu.vector_store %arg8[%c0_144, %c128], %628 {strides = array<i32>} : memref<1x256xf32, #tpu.memory_space<vmem>>, vector<1x16xf32>,
    %630 = vector.extract_strided_slice %611 {offsets = [9, 0], sizes = [1, 16], strides = [1, 1]} : vector<16x16xf32> to vector<1x16xf32>
    %c0_145 = arith.constant 0 : index
    %c144 = arith.constant 144 : index
    %631 = vector.load %arg8[%c0_145, %c144] : memref<1x256xf32, #tpu.memory_space<vmem>>, vector<1x16xf32>
    tpu.vector_store %arg8[%c0_145, %c144], %630 {strides = array<i32>} : memref<1x256xf32, #tpu.memory_space<vmem>>, vector<1x16xf32>,
    %632 = vector.extract_strided_slice %611 {offsets = [10, 0], sizes = [1, 16], strides = [1, 1]} : vector<16x16xf32> to vector<1x16xf32>
    %c0_146 = arith.constant 0 : index
    %c160 = arith.constant 160 : index
    %633 = vector.load %arg8[%c0_146, %c160] : memref<1x256xf32, #tpu.memory_space<vmem>>, vector<1x16xf32>
    tpu.vector_store %arg8[%c0_146, %c160], %632 {strides = array<i32>} : memref<1x256xf32, #tpu.memory_space<vmem>>, vector<1x16xf32>,
    %634 = vector.extract_strided_slice %611 {offsets = [11, 0], sizes = [1, 16], strides = [1, 1]} : vector<16x16xf32> to vector<1x16xf32>
    %c0_147 = arith.constant 0 : index
    %c176 = arith.constant 176 : index
    %635 = vector.load %arg8[%c0_147, %c176] : memref<1x256xf32, #tpu.memory_space<vmem>>, vector<1x16xf32>
    tpu.vector_store %arg8[%c0_147, %c176], %634 {strides = array<i32>} : memref<1x256xf32, #tpu.memory_space<vmem>>, vector<1x16xf32>,
    %636 = vector.extract_strided_slice %611 {offsets = [12, 0], sizes = [1, 16], strides = [1, 1]} : vector<16x16xf32> to vector<1x16xf32>
    %c0_148 = arith.constant 0 : index
    %c192 = arith.constant 192 : index
    %637 = vector.load %arg8[%c0_148, %c192] : memref<1x256xf32, #tpu.memory_space<vmem>>, vector<1x16xf32>
    tpu.vector_store %arg8[%c0_148, %c192], %636 {strides = array<i32>} : memref<1x256xf32, #tpu.memory_space<vmem>>, vector<1x16xf32>,
    %638 = vector.extract_strided_slice %611 {offsets = [13, 0], sizes = [1, 16], strides = [1, 1]} : vector<16x16xf32> to vector<1x16xf32>
    %c0_149 = arith.constant 0 : index
    %c208 = arith.constant 208 : index
    %639 = vector.load %arg8[%c0_149, %c208] : memref<1x256xf32, #tpu.memory_space<vmem>>, vector<1x16xf32>
    tpu.vector_store %arg8[%c0_149, %c208], %638 {strides = array<i32>} : memref<1x256xf32, #tpu.memory_space<vmem>>, vector<1x16xf32>,
    %640 = vector.extract_strided_slice %611 {offsets = [14, 0], sizes = [1, 16], strides = [1, 1]} : vector<16x16xf32> to vector<1x16xf32>
    %c0_150 = arith.constant 0 : index
    %c224 = arith.constant 224 : index
    %641 = vector.load %arg8[%c0_150, %c224] : memref<1x256xf32, #tpu.memory_space<vmem>>, vector<1x16xf32>
    tpu.vector_store %arg8[%c0_150, %c224], %640 {strides = array<i32>} : memref<1x256xf32, #tpu.memory_space<vmem>>, vector<1x16xf32>,
    %642 = vector.extract_strided_slice %611 {offsets = [15, 0], sizes = [1, 16], strides = [1, 1]} : vector<16x16xf32> to vector<1x16xf32>
    %c0_151 = arith.constant 0 : index
    %c240 = arith.constant 240 : index
    %643 = vector.load %arg8[%c0_151, %c240] : memref<1x256xf32, #tpu.memory_space<vmem>>, vector<1x16xf32>
    tpu.vector_store %arg8[%c0_151, %c240], %642 {strides = array<i32>} : memref<1x256xf32, #tpu.memory_space<vmem>>, vector<1x16xf32>,
    %c0_152 = arith.constant 0 : index
    %c0_153 = arith.constant 0 : index
    %644 = vector.load %arg8[%c0_152, %c0_153] : memref<1x256xf32, #tpu.memory_space<vmem>>, vector<1x256xf32>
    %645 = vector.broadcast %644 : vector<1x256xf32> to vector<32x256xf32>
    %646 = arith.mulf %24, %645 : vector<32x256xf32>
    %c0_154 = arith.constant 0 : index
    %c0_155 = arith.constant 0 : index
    %c0_156 = arith.constant 0 : index
    %647 = vector.load %arg6[%c0_154, %c0_155, %c0_156] : memref<1x32x256xf32, #tpu.memory_space<vmem>>, vector<1x32x256xf32>
    %648 = vector.shape_cast %647 : vector<1x32x256xf32> to vector<32x256xf32>
    %649 = vector.shape_cast %646 : vector<32x256xf32> to vector<1x32x256xf32>
    tpu.vector_store %arg6[%c0_154, %c0_155, %c0_156], %649 {strides = array<i32>} : memref<1x32x256xf32, #tpu.memory_space<vmem>>, vector<1x32x256xf32>,
    return
  }
  func.func @transform_0(%arg0: i32) -> (i32, i32, i32) {
    %c0_i32 = arith.constant 0 : i32
    %c0_i32_0 = arith.constant 0 : i32
    %c0_i32_1 = arith.constant 0 : i32
    return %arg0, %c0_i32, %c0_i32_0 : i32, i32, i32
  }
  func.func @transform_1(%arg0: i32) -> (i32, i32) {
    %c0_i32 = arith.constant 0 : i32
    %c0_i32_0 = arith.constant 0 : i32
    %c0_i32_1 = arith.constant 0 : i32
    return %c0_i32, %c0_i32_0 : i32, i32
  }
  func.func @transform_2(%arg0: i32) -> (i32, i32) {
    %c0_i32 = arith.constant 0 : i32
    %c0_i32_0 = arith.constant 0 : i32
    %c0_i32_1 = arith.constant 0 : i32
    return %c0_i32, %c0_i32_0 : i32, i32
  }
  func.func @transform_3(%arg0: i32) -> i32 {
    %c0_i32 = arith.constant 0 : i32
    %c0_i32_0 = arith.constant 0 : i32
    return %c0_i32 : i32
  }
  func.func @transform_4(%arg0: i32) -> i32 {
    %c0_i32 = arith.constant 0 : i32
    %c0_i32_0 = arith.constant 0 : i32
    return %c0_i32 : i32
  }
  func.func @transform_5(%arg0: i32) -> (i32, i32, i32) {
    %c0_i32 = arith.constant 0 : i32
    %c0_i32_0 = arith.constant 0 : i32
    %c0_i32_1 = arith.constant 0 : i32
    return %arg0, %c0_i32, %c0_i32_0 : i32, i32, i32
  }
}

</mosaic_0001>

<bundles_post_ra>
// kernel: cbam_pallas.1
= control target key start
LH: loop header
LB: loop body
LE: loop exit
PB: predicated region body
PF: predicated region fallthrough
CT: control target
= control target key end

     0   :  { %s4662_s0 = inlined_call_operand.vmem [shape: f32[2,32,256], index: 0, kind: input, shape index: {}]   ;;  %s4663_s1 = inlined_call_operand.vmem [shape: f32[2,32], index: 1, kind: input, shape index: {}]   ;;  %s4664_s2 = inlined_call_operand.vmem [shape: f32[32,2], index: 2, kind: input, shape index: {}]   ;;  %s4665_s3 = inlined_call_operand.vmem [shape: f32[98], index: 3, kind: input, shape index: {}]   ;;  %s4666_s4 = inlined_call_operand.<no memory space> [shape: f32[1], index: 4, kind: input, shape index: {}]   ;;  %s4667_s5 = inlined_call_operand.vmem [shape: f32[2,32,256], index: 5, kind: output, shape index: {}]  }
   0x1   :  { %10 = sst [smem:[#allocation4]] %s4666_s4 }
   0x2   :  { %11 = vsyncpa [#allocation6], 0  ;;  %s3028_s20 = smov 0  }
   0x3 LB: > { %s2734_s21 = sadd.s32 4294967295, %s2967_s20   ;;  %p2736_p0 = scmp.ge.s32.totalorder %s2967_s20, 1  ;;  %s2967_s20 = sphi %s3028_s20, %s17_s20  }
   0x4   : > { %p158_p1 = scmp.lt.s32.totalorder %s2967_s20, 3  ;;  %s176_s24 = sshll.u32 %s4665_s3, 4  ;;  %s177_s24 = int_to_ptr.vmem [resolvable:$true] %s176_s24 }
   0x5   : > { %p2868_p3 = scmp.eq.s32.totalorder %s2734_s21, 0  ;;  %s2969_s4 = smov [#allocation5]  }
   0x6   : > { %p159_p2 = pnand %p2736_p0, %p158_p1 }
   0x8   : > { %p2864_p4 = pneg %p159_p2  ;;  %200 = sbr.rel (%p159_p2) target bundleno = 1848 (0x738), region = 40 }
   0xa   : > { %p2865_p5 = pnand %p2868_p3, %p2864_p4 }
   0xc   : > { %2867 = dma.vmem_to_smem (!%p2865_p5), %s177_s24, 16, %s2969_s4, [#allocation6]  }
   0xd   : > { %2962 = dma.done.wait (%p2868_p3), [#allocation6], 16  }
   0xe   : > { %2964 = vsyncadd (%p2868_p3), [#allocation6], 4294967280 }
   0xf   : > { %207 = sfence }
  0x10   : > { %p230_p6 = scmp.lt.s32.totalorder %s2734_s21, 1  ;;  %v2970_v16 = vmov 256.0   ;;  %vm283_vm1 = vcmask 7168   ;;  %v288_v38 = vld [vmem:[%s4663_s1] sm:$0x3]  ;;  %vm289_vm2 = vcmask 261120  }
  0x11   : > { %2907 = vrcp.f32 %v2970_v16  ;;  %vm331_vm3 = vcmask 1041408   ;;  %v314_v42 = vld [vmem:[%s4664_s2] sm:$0xff]  ;;  %vm318_vm4 = vcmask 15360   ;;  %v315_v43 = vld [vmem:[%s4664_s2 + $0x8] sm:$0xff]  ;;  %v317_v44 = vld [vmem:[%s4664_s2 + $0x18] sm:$0xff]  ;;  %s2971_s14 = smov 127  }
  0x12   : > { %s4979_s21 = smov (!%p230_p6, %s2734_s21), 1  ;;  %v316_v45 = vld [vmem:[%s4664_s2 + $0x10] sm:$0xff]  ;;  %v2972_v50 = vmov 0   ;;  %s2973_s15 = smov 99  }
  0x13   : > { %s2856_s25 = sshll.u32 %s4979_s21, 6  ;;  %2904 = vset.pattern.permute.xlu0 %v2972_v50  ;;  %2905 = vset.pattern.permute.xlu2 %v2972_v50  ;;  %s2974_s16 = smov 115  }
  0x14   : > { %s234_s28 = scalar_lea.vmem %s4662_s0, %s2856_s25  ;;  %2906 = vset.pattern.permute.xlu1 %v2972_v50  ;;  %s2975_s17 = smov 3  }
  0x15   : > { %v3047_v0 = vld [vmem:[%s234_s28 + $0x20] sm:$0xff]  ;;  %v3049_v1 = vld [vmem:[%s234_s28 + $0x28] sm:$0xff]  ;;  %v3061_v7 = vld [vmem:[%s234_s28 + $0x30] sm:$0xff]  ;;  %s2976_s18 = smov 51   ;;  %s2977_s19 = smov 67  }
  0x16   : > { %v3051_v2 = vld [vmem:[%s234_s28] sm:$0xff]  ;;  %v254_v3 = vadd.f32 %v3049_v1, %v3047_v0  ;;  %v3055_v4 = vld [vmem:[%s234_s28 + $0x8] sm:$0xff]  ;;  %v3063_v8 = vld [vmem:[%s234_s28 + $0x38] sm:$0xff]  ;;  %v277_v15 = vmax.f32 %v3047_v0, %v3049_v1  ;;  %s2978_s22 = smov 83   ;;  %s2980_s23 = smov 19  }
  0x17   : > { %v248_v5 = vadd.f32 %v3055_v4, %v3051_v2  ;;  %v271_v6 = vmax.f32 %v3051_v2, %v3055_v4  ;;  %v3065_v9 = vld [vmem:[%s234_s28 + $0x10] sm:$0xff]  ;;  %v3067_v10 = vld [vmem:[%s234_s28 + $0x18] sm:$0xff]  ;;  %v257_v11 = vadd.f32 %v3063_v8, %v3061_v7  ;;  %v280_v14 = vmax.f32 %v3061_v7, %v3063_v8  ;;  %v2908_v17 = vpop.eup %2907  ;;  %s2981_s24 = smov 35   ;;  %s3179_s4 = sld [smem:[#allocation5 + $0x33]] }
  0x18   : > { %255 = vadd.xlane.f32.xlu1 %v254_v3  ;;  %v251_v12 = vadd.f32 %v3067_v10, %v3065_v9  ;;  %v274_v13 = vmax.f32 %v3065_v9, %v3067_v10  ;;  %v261_v18 = vmul.f32 256.0, %v2908_v17  ;;  %vm265_vm0 = vweird.f32 %v2908_v17  ;;  %s3181_s26 = sld [smem:[#allocation5 + $0x32]]  ;;  %s2983_s27 = smov 126  }
  0x19   : > { %249 = vadd.xlane.f32.xlu0 %v248_v5  ;;  %272 = vmax.xlane.f32.xlu2 %v271_v6  ;;  %s3201_s28 = sld [smem:[#allocation5 + $0x34]]  ;;  %s2984_s6 = smov 125  }
  0x1a   : > { %v262_v21 = vsub.f32 1.0, %v261_v18  ;;  %s3205_s29 = sld [smem:[#allocation5 + $0x36]]  ;;  %s2985_s8 = smov 123  }
  0x1b   : > { %s3207_s30 = sld [smem:[#allocation5 + $0x35]]  ;;  %s2986_s9 = smov 124  }
  0x1c   : > { %v263_v22 = vmul.f32 %v2908_v17, %v262_v21  ;;  %s3223_s7 = sld [smem:[#allocation5 + $0x37]]  ;;  %s2987_s12 = smov 122  }
  0x1d   : > { %s2811_s10 = sld [smem:[#allocation5 + $0x39]] }
  0x1e   : > { %v264_v26 = vadd.f32 %v2908_v17, %v263_v22  ;;  %s3240_s11 = sld [smem:[#allocation5 + $0x31]] }
  0x1f   : > { %s2810_s13 = sld [smem:[#allocation5 + $0x38]] }
  0x20   : > { %258 = vadd.xlane.f32.xlu1 %v257_v11  ;;  %v266_v27 = vsel %vm265_vm0, %v2908_v17, %v264_v26 }
  0x21   : > { %252 = vadd.xlane.f32.xlu0 %v251_v12  ;;  %275 = vmax.xlane.f32.xlu2 %v274_v13 }
  0x28   : > { %281 = vmax.xlane.f32.xlu1 %v280_v14 }
  0x29   : > { %278 = vmax.xlane.f32.xlu0 %v277_v15 }
  0x8b   : > { %v256_v19 = vpop.xlane.xlu1 %255 }
  0x8c   : > { %v250_v20 = vpop.xlane.xlu0 %249  ;;  %v273_v23 = vpop.xlane.xlu2 %272  ;;  %v269_v30 = vmul.f32 %v266_v27, %v256_v19 }
  0x8d   : > { %v267_v35 = vmul.f32 %v266_v27, %v250_v20 }
  0x8f   : > { %v284_v39 = vsel %vm283_vm1, %v267_v35, %v273_v23 }
  0x93   : > { %v259_v24 = vpop.xlane.xlu1 %258 }
  0x94   : > { %v253_v25 = vpop.xlane.xlu0 %252  ;;  %v270_v28 = vmul.f32 %v266_v27, %v259_v24  ;;  %v276_v34 = vpop.xlane.xlu2 %275 }
  0x95   : > { %v268_v31 = vmul.f32 %v266_v27, %v253_v25 }
  0x97   : > { %v285_v37 = vsel %vm283_vm1, %v268_v31, %v276_v34 }
  0x9b   : > { %v282_v29 = vpop.xlane.xlu1 %281 }
  0x9c   : > { %v279_v32 = vpop.xlane.xlu0 %278  ;;  %v287_v33 = vsel %vm283_vm1, %v270_v28, %v282_v29 }
  0x9d   : > { %305 = vmatpush.msra.mxu0 %v287_v33  ;;  %v286_v36 = vsel %vm283_vm1, %v269_v30, %v279_v32 }
  0x9f   : > { %306 = vmatpush.msra.mxu0 %v286_v36 }
  0xa1   : > { %307 = vmatpush.msra.mxu0 %v285_v37 }
  0xa3   : > { %308 = vmatpush.msra.mxu0 %v284_v39 }
  0xa4   : > { %2745 = vmatmul.msk.f32.vlgmr.msra.gmra.mxu0 %vm289_vm2, %v288_v38 }
 0x121   : > { %v310_v40 = vpop.f32.mrf.mxu0 }
 0x122   : > { %v313_v41 = vmax.f32 %v310_v40, 0.0 }
 0x124   : > { %2746 = vmatpush.msk.msra.mxu1 %vm331_vm3, %v313_v41  ;;  %2858 = vmatpush.msk.msra.mxu2 %vm331_vm3, %v313_v41 }
 0x125   : > { %2859 = vmatpush.msk.msra.mxu3 %vm331_vm3, %v313_v41  ;;  %2747 = vmatmul.msk.f32.vlgmr.msra.gmra.mxu1 %vm318_vm4, %v314_v42 }
 0x126   : > { %2748 = vmatmul.msk.f32.vlgmr.msra.gmra.mxu2 %vm318_vm4, %v315_v43  ;;  %2750 = vmatmul.msk.f32.vlgmr.msra.gmra.mxu3 %vm318_vm4, %v317_v44 }
 0x12e   : > { %2749 = vmatmul.msk.f32.gmra.mxu2 %vm318_vm4, %v316_v45 }
 0x1a2   : > { %v352_v46 = vpop.f32.mrf.mxu1 }
 0x1a3   : > { %368 = vrot.lane.b32.xlu2 %v352_v46, %s2971_s14 }
 0x1a9   : > { %v355_v47 = vpop.f32.mrf.mxu2  ;;  %v361_v48 = vpop.f32.mrf.mxu3 }
 0x1aa   : > { %370 = vrot.lane.b32.xlu0 %v355_v47, %s2971_s14 }
 0x1ab   : > { %374 = vrot.lane.b32.xlu2 %v361_v48, %s2971_s14 }
 0x1b1   : > { %v358_v49 = vpop.f32.mrf.mxu2 }
 0x1b2   : > { %372 = vrot.lane.b32.xlu1 %v358_v49, %s2971_s14 }
 0x1fd   : > { %v369_v51 = vpop.permute.xlu2 %368 }
 0x1fe   : > { %v380_v52 = vadd.f32 %v369_v51, %v352_v46 }
 0x200   : > { %v2751_v53 = vmul.f32 -1.442695, %v380_v52 }
 0x202   : > { %2909 = vpow2.f32 %v2751_v53 }
 0x205   : > { %v375_v56 = vpop.permute.xlu2 %374 }
 0x206   : > { %v383_v58 = vadd.f32 %v375_v56, %v361_v48 }
 0x208   : > { %v2910_v54 = vpop.eup %2909  ;;  %v2754_v61 = vmul.f32 -1.442695, %v383_v58 }
 0x209   : > { %v396_v55 = vadd.f32 1.0, %v2910_v54 }
 0x20b   : > { %2911 = vrcp.f32 %v396_v55  ;;  %v411_v62 = vand.u32 2147483648, %v396_v55  ;;  %v409_v3 = vand.u32 2147483647, %v396_v55  ;;  %vm405_vm6 = vweird.f32 %v396_v55 }
 0x20c   : > { %2913 = vpow2.f32 %v2754_v61 }
 0x20d   : > { %v412_v6 = vor.u32 1.1754944e-38, %v411_v62  ;;  %vm410_vm8 = vcmp.eq.f32.partialorder %v409_v3, 8.507059e+37 }
 0x211   : > { %v2912_v57 = vpop.eup %2911 }
 0x212   : > { %v401_v59 = vmul.f32 %v2912_v57, %v396_v55  ;;  %vm406_vm5 = vweird.f32 %v2912_v57  ;;  %v2914_v15 = vpop.eup %2913 }
 0x213   : > { %vm407_vm7 = vmor %vm405_vm6, %vm406_vm5  ;;  %v399_v17 = vadd.f32 1.0, %v2914_v15 }
 0x214   : > { %v402_v60 = vsub.f32 1.0, %v401_v59 }
 0x215   : > { %vm450_vm14 = vweird.f32 %v399_v17  ;;  %v456_v44 = vand.u32 2147483648, %v399_v17 }
 0x216   : > { %v403_v63 = vmul.f32 %v2912_v57, %v402_v60 }
 0x217   : > { %v457_v51 = vor.u32 1.1754944e-38, %v456_v44 }
 0x218   : > { %v404_v5 = vadd.f32 %v2912_v57, %v403_v63 }
 0x21a   : > { %v408_v11 = vsel %vm407_vm7, %v2912_v57, %v404_v5  ;;  %vm533_vm7 = vcmask 179200  }
 0x21b   : > { %v413_v12 = vsel %vm410_vm8, %v412_v6, %v408_v11  ;;  %vm536_vm8 = vcmask 177152  }
 0x21c   : > { %v371_v13 = vpop.permute.xlu0 %370  ;;  %462 = vperm.xlu0 %2904, %v413_v12  }
 0x21d   : > { %v381_v14 = vadd.f32 %v371_v13, %v355_v47  ;;  %v454_v47 = vand.u32 2147483647, %v399_v17 }
 0x21f   : > { %v2752_v16 = vmul.f32 -1.442695, %v381_v14  ;;  %vm455_vm5 = vcmp.eq.f32.partialorder %v454_v47, 8.507059e+37 }
 0x221   : > { %2915 = vpow2.f32 %v2752_v16 }
 0x222   : > { %2917 = vrcp.f32 %v399_v17 }
 0x224   : > { %v373_v18 = vpop.permute.xlu1 %372 }
 0x225   : > { %v382_v19 = vadd.f32 %v373_v18, %v358_v49 }
 0x227   : > { %v2916_v20 = vpop.eup %2915  ;;  %v2753_v21 = vmul.f32 -1.442695, %v382_v19 }
 0x228   : > { %v397_v22 = vadd.f32 1.0, %v2916_v20  ;;  %v2918_v23 = vpop.eup %2917 }
 0x229   : > { %2919 = vpow2.f32 %v2753_v21  ;;  %v446_v25 = vmul.f32 %v2918_v23, %v399_v17  ;;  %vm451_vm13 = vweird.f32 %v2918_v23  ;;  %v2979_v21 = vmov 32.0  }
 0x22a   : > { %2921 = vrcp.f32 %v397_v22  ;;  %v426_v31 = vand.u32 2147483648, %v397_v22  ;;  %v424_v33 = vand.u32 2147483647, %v397_v22  ;;  %vm420_vm10 = vweird.f32 %v397_v22  ;;  %vm452_vm0 = vmor %vm450_vm14, %vm451_vm13 }
 0x22b   : > { %v447_v30 = vsub.f32 1.0, %v446_v25  ;;  %vm1958_vm13 = vcmask 1043456   ;;  %vm2213_vm14 = vcmask 1042432  }
 0x22c   : > { %v427_v37 = vor.u32 1.1754944e-38, %v426_v31  ;;  %vm425_vm12 = vcmp.eq.f32.partialorder %v424_v33, 8.507059e+37 }
 0x22d   : > { %v448_v35 = vmul.f32 %v2918_v23, %v447_v30 }
 0x22f   : > { %v2920_v24 = vpop.eup %2919  ;;  %v449_v42 = vadd.f32 %v2918_v23, %v448_v35 }
 0x230   : > { %v2922_v26 = vpop.eup %2921  ;;  %v398_v27 = vadd.f32 1.0, %v2920_v24 }
 0x231   : > { %v416_v28 = vmul.f32 %v2922_v26, %v397_v22  ;;  %vm421_vm9 = vweird.f32 %v2922_v26  ;;  %v453_v49 = vsel %vm452_vm0, %v2918_v23, %v449_v42 }
 0x232   : > { %2923 = vrcp.f32 %v398_v27  ;;  %vm422_vm11 = vmor %vm420_vm10, %vm421_vm9  ;;  %v441_v43 = vand.u32 2147483648, %v398_v27  ;;  %v439_v46 = vand.u32 2147483647, %v398_v27  ;;  %vm435_vm1 = vweird.f32 %v398_v27 }
 0x233   : > { %v417_v29 = vsub.f32 1.0, %v416_v28  ;;  %v458_v54 = vsel %vm455_vm5, %v457_v51, %v453_v49  ;;  %2925 = vrcp.f32 %v2979_v21  ;;  %vm545_vm9 = vcmask 147480  }
 0x234   : > { %v442_v50 = vor.u32 1.1754944e-38, %v441_v43  ;;  %vm440_vm4 = vcmp.eq.f32.partialorder %v439_v46, 8.507059e+37  ;;  %vm1193_vm10 = vcmask 1046528  }
 0x235   : > { %v418_v32 = vmul.f32 %v2922_v26, %v417_v29 }
 0x237   : > { %v419_v34 = vadd.f32 %v2922_v26, %v418_v32 }
 0x238   : > { %v2924_v36 = vpop.eup %2923 }
 0x239   : > { %v423_v38 = vsel %vm422_vm11, %v2922_v26, %v419_v34  ;;  %v431_v39 = vmul.f32 %v2924_v36, %v398_v27  ;;  %vm436_vm15 = vweird.f32 %v2924_v36  ;;  %v2926_v26 = vpop.eup %2925  ;;  %vm1448_vm11 = vcmask 1045504  }
 0x23a   : > { %v428_v40 = vsel %vm425_vm12, %v427_v37, %v423_v38  ;;  %vm437_vm2 = vmor %vm435_vm1, %vm436_vm15  ;;  %v507_v28 = vmul.f32 32.0, %v2926_v26  ;;  %vm511_vm6 = vweird.f32 %v2926_v26  ;;  %vm1703_vm12 = vcmask 1044480  }
 0x23b   : > { %467 = vperm.xlu2 %2905, %v428_v40   ;;  %v432_v41 = vsub.f32 1.0, %v431_v39 }
 0x23c   : > { %v508_v30 = vsub.f32 1.0, %v507_v28 }
 0x23d   : > { %v433_v45 = vmul.f32 %v2924_v36, %v432_v41 }
 0x23e   : > { %v509_v32 = vmul.f32 %v2926_v26, %v508_v30 }
 0x23f   : > { %v434_v48 = vadd.f32 %v2924_v36, %v433_v45  ;;  %v2982_v45 = vmov 0.0  }
 0x240   : > { %538 = vst.msk [vmem:[#allocation2 + $0x18] sm:$0xff] %vm533_vm7, %v2982_v45 }
 0x241   : > { %v438_v52 = vsel %vm437_vm2, %v2924_v36, %v434_v48  ;;  %v510_v36 = vadd.f32 %v2926_v26, %v509_v32  ;;  %534 = vst.msk [vmem:[#allocation2] sm:$0xff] %vm533_vm7, %v2982_v45 }
 0x242   : > { %v443_v53 = vsel %vm440_vm4, %v442_v50, %v438_v52  ;;  %535 = vst.msk [vmem:[#allocation2 + $0x8] sm:$0xff] %vm533_vm7, %v2982_v45 }
 0x243   : > { %472 = vperm.xlu1 %2906, %v443_v53   ;;  %477 = vperm.xlu2 %2905, %v458_v54   ;;  %v512_v39 = vsel %vm511_vm6, %v2926_v26, %v510_v36  ;;  %539 = vst.msk [vmem:[#allocation2 + $0x20] sm:$0xff] %vm533_vm7, %v2982_v45 }
 0x244   : > { %540 = vst.msk [vmem:[#allocation2 + $0x28] sm:$0x3f] %vm536_vm8, %v2982_v45 }
 0x245   : > { %537 = vst.msk [vmem:[#allocation2 + $0x10] sm:$0x3f] %vm536_vm8, %v2982_v45  ;;  %v4668_v45 = vstv %s3240_s11 }
 0x28e   : > { %v463_v57 = vpop.permute.xlu0 %462 }
 0x28f   : > { %v3105_v60 = vmul.f32 %v463_v57, %v3051_v2  ;;  %v3117_v3 = vmul.f32 %v463_v57, %v3055_v4 }
 0x291   : > { %4714 = vst [vmem:[#allocation9_spill] sm:$0xff] %v3105_v60 }
 0x292   : > { %4718 = vst [vmem:[#allocation13_spill] sm:$0xff] %v3117_v3 }
 0x295   : > { %v468_v55 = vpop.permute.xlu2 %467 }
 0x296   : > { %v3108_v61 = vmul.f32 %v468_v55, %v3065_v9  ;;  %v3127_v9 = vmul.f32 %v468_v55, %v3067_v10 }
 0x298   : > { %4715 = vst [vmem:[#allocation10_spill] sm:$0xff] %v3108_v61  ;;  %v488_v18 = vadd.f32 %v3108_v61, %v3105_v60  ;;  %v497_v33 = vadd.f32 %v3127_v9, %v3117_v3 }
 0x299   : > { %4720 = vst [vmem:[#allocation15_spill] sm:$0xff] %v3127_v9 }
 0x29d   : > { %v478_v56 = vpop.permute.xlu2 %477 }
 0x29e   : > { %v3102_v58 = vmul.f32 %v478_v56, %v3061_v7  ;;  %v3120_v5 = vmul.f32 %v478_v56, %v3063_v8 }
 0x2a0   : > { %4713 = vst [vmem:[#allocation8_spill] sm:$0xff] %v3102_v58  ;;  %v516_v7 = vmax.f32 %v3108_v61, %v3102_v58  ;;  %v525_v4 = vmax.f32 %v3127_v9, %v3120_v5 }
 0x2a1   : > { %4719 = vst [vmem:[#allocation14_spill] sm:$0xff] %v3120_v5 }
 0x2b5   : > { %v473_v59 = vpop.permute.xlu1 %472 }
 0x2b6   : > { %v3111_v62 = vmul.f32 %v473_v59, %v3047_v0  ;;  %v3114_v63 = vmul.f32 %v473_v59, %v3049_v1 }
 0x2b8   : > { %4716 = vst [vmem:[#allocation11_spill] sm:$0xff] %v3111_v62  ;;  %v515_v2 = vmax.f32 %v3105_v60, %v3111_v62  ;;  %v524_v1 = vmax.f32 %v3117_v3, %v3114_v63  ;;  %v489_v19 = vadd.f32 %v488_v18, %v3111_v62  ;;  %v498_v35 = vadd.f32 %v497_v33, %v3114_v63 }
 0x2b9   : > { %4717 = vst [vmem:[#allocation12_spill] sm:$0xff] %v3114_v63 }
 0x2ba   : > { %v517_v0 = vmax.f32 %v515_v2, %v516_v7  ;;  %v526_v8 = vmax.f32 %v524_v1, %v525_v4  ;;  %v490_v22 = vadd.f32 %v489_v19, %v3102_v58  ;;  %v499_v38 = vadd.f32 %v498_v35, %v3120_v5 }
 0x2bb   : > { %v881_v2 = vstv %s3179_s4  ;;  %s2775_s4 = sld [smem:[#allocation5 + $0x15]] }
 0x2bc   : > { %v518_v6 = vrot.slane %v517_v0, 4  ;;  %v527_v14 = vrot.slane %v526_v8, 4  ;;  %v491_v24 = vrot.slane %v490_v22, 4  ;;  %v500_v40 = vrot.slane %v499_v38, 4 }
 0x2be   : > { %v519_v11 = vmax.f32 %v517_v0, %v518_v6  ;;  %v528_v17 = vmax.f32 %v526_v8, %v527_v14  ;;  %v492_v27 = vadd.f32 %v491_v24, %v490_v22  ;;  %v501_v42 = vadd.f32 %v500_v40, %v499_v38 }
 0x2bf   : > { %v868_v0 = vstv %s3181_s26  ;;  %v920_v24 = vstv %s3205_s29  ;;  %s2816_s26 = sld [smem:[#allocation5 + $0x3e]] }
 0x2c0   : > { %v520_v12 = vrot.slane %v519_v11, 2  ;;  %v529_v10 = vrot.slane %v528_v17, 2  ;;  %v493_v29 = vrot.slane %v492_v27, 2  ;;  %v502_v43 = vrot.slane %v501_v42, 2  ;;  %s2851_s29 = sld [smem:[#allocation5 + $0x61]] }
 0x2c2   : > { %v521_v13 = vmax.f32 %v519_v11, %v520_v12  ;;  %v530_v20 = vmax.f32 %v528_v17, %v529_v10  ;;  %v494_v31 = vadd.f32 %v493_v29, %v492_v27  ;;  %v503_v44 = vadd.f32 %v502_v43, %v501_v42 }
 0x2c4   : > { %v522_v15 = vrot.slane %v521_v13, 1  ;;  %v531_v23 = vrot.slane %v530_v20, 1  ;;  %v495_v34 = vrot.slane %v494_v31, 1  ;;  %v504_v46 = vrot.slane %v503_v44, 1 }
 0x2c6   : > { %v523_v16 = vmax.f32 %v521_v13, %v522_v15  ;;  %v532_v25 = vmax.f32 %v530_v20, %v531_v23  ;;  %v496_v37 = vadd.f32 %v495_v34, %v494_v31  ;;  %v505_v47 = vadd.f32 %v504_v46, %v503_v44 }
 0x2c7   : > { %v894_v20 = vstv %s3201_s28  ;;  %v933_v34 = vstv %s3223_s7  ;;  %s2831_s28 = sld [smem:[#allocation5 + $0x4d]] }
 0x2c8   : > { %565 = vrot.lane.b32.xlu2 %v523_v16, %s2973_s15  ;;  %557 = vrot.lane.b32.xlu1 %v523_v16, %s2974_s16  ;;  %v513_v41 = vmul.f32 %v512_v39, %v496_v37  ;;  %v514_v48 = vmul.f32 %v512_v39, %v505_v47  ;;  %v1076_v39 = vstv %s2811_s10  ;;  %v3261_v47 = vstv %s2810_s13  ;;  %s2845_s7 = sld [smem:[#allocation5 + $0x5b]] }
 0x2c9   : > { %548 = vrot.lane.b32.xlu0 %v523_v16, %s2975_s17  ;;  %s2782_s10 = sld [smem:[#allocation5 + $0x1c]] }
 0x2ca   : > { %s2818_s13 = sld [smem:[#allocation5 + $0x40]] }
 0x2d0   : > { %589 = vrot.lane.b32.xlu2 %v523_v16, %s2976_s18  ;;  %581 = vrot.lane.b32.xlu1 %v523_v16, %s2977_s19 }
 0x2d1   : > { %573 = vrot.lane.b32.xlu0 %v523_v16, %s2978_s22 }
 0x2d8   : > { %615 = vrot.lane.b32.xlu2 %v532_v25, %s2975_s17  ;;  %605 = vrot.lane.b32.xlu1 %v523_v16, %s2980_s23 }
 0x2d9   : > { %597 = vrot.lane.b32.xlu0 %v523_v16, %s2981_s24 }
 0x2e0   : > { %639 = vrot.lane.b32.xlu2 %v532_v25, %s2978_s22  ;;  %631 = vrot.lane.b32.xlu1 %v532_v25, %s2973_s15 }
 0x2e1   : > { %623 = vrot.lane.b32.xlu0 %v532_v25, %s2974_s16 }
 0x2e8   : > { %663 = vrot.lane.b32.xlu2 %v532_v25, %s2981_s24  ;;  %655 = vrot.lane.b32.xlu1 %v532_v25, %s2976_s18 }
 0x2e9   : > { %647 = vrot.lane.b32.xlu0 %v532_v25, %s2977_s19 }
 0x2f0   : > { %553 = vrot.lane.b32.xlu2 %v513_v41, %s2974_s16  ;;  %542 = vrot.lane.b32.xlu1 %v513_v41, %s2975_s17 }
 0x2f1   : > { %671 = vrot.lane.b32.xlu0 %v532_v25, %s2980_s23  ;;  %v907_v25 = vstv %s3207_s30  ;;  %s2838_s30 = sld [smem:[#allocation5 + $0x54]] }
 0x2f8   : > { %577 = vrot.lane.b32.xlu2 %v513_v41, %s2977_s19  ;;  %569 = vrot.lane.b32.xlu1 %v513_v41, %s2978_s22 }
 0x2f9   : > { %561 = vrot.lane.b32.xlu0 %v513_v41, %s2973_s15 }
 0x300   : > { %601 = vrot.lane.b32.xlu2 %v513_v41, %s2980_s23  ;;  %593 = vrot.lane.b32.xlu1 %v513_v41, %s2981_s24 }
 0x301   : > { %585 = vrot.lane.b32.xlu0 %v513_v41, %s2976_s18 }
 0x308   : > { %627 = vrot.lane.b32.xlu2 %v514_v48, %s2973_s15  ;;  %619 = vrot.lane.b32.xlu1 %v514_v48, %s2974_s16  ;;  %s2812_s15 = sld [smem:[#allocation5 + $0x3a]] }
 0x309   : > { %610 = vrot.lane.b32.xlu0 %v514_v48, %s2975_s17  ;;  %s2817_s16 = sld [smem:[#allocation5 + $0x3f]] }
 0x30a   : > { %s2813_s17 = sld [smem:[#allocation5 + $0x3b]] }
 0x310   : > { %651 = vrot.lane.b32.xlu2 %v514_v48, %s2976_s18  ;;  %643 = vrot.lane.b32.xlu1 %v514_v48, %s2977_s19  ;;  %s3281_s18 = sld [smem:[#allocation5]] }
 0x311   : > { %635 = vrot.lane.b32.xlu0 %v514_v48, %s2978_s22  ;;  %s2814_s19 = sld [smem:[#allocation5 + $0x3c]] }
 0x312   : > { %s2761_s22 = sld [smem:[#allocation5 + $0x7]] }
 0x318   : > { %667 = vrot.lane.b32.xlu1 %v514_v48, %s2980_s23  ;;  %s2768_s23 = sld [smem:[#allocation5 + $0xe]] }
 0x319   : > { %659 = vrot.lane.b32.xlu0 %v514_v48, %s2981_s24  ;;  %v1095_v48 = vstv %s2812_s15  ;;  %s2815_s24 = sld [smem:[#allocation5 + $0x3d]] }
 0x31a   : > { %s2819_s15 = sld [smem:[#allocation5 + $0x41]] }
 0x322   : > { %v566_v49 = vpop.permute.xlu2 %565 }
 0x323   : > { %568 = vst.msk [vmem:[#allocation2 + $0x1d] sm:$0x1] %vm545_vm9, %v566_v49 }
 0x32a   : > { %v590_v50 = vpop.permute.xlu2 %589 }
 0x32b   : > { %592 = vst.msk [vmem:[#allocation2 + $0x20] sm:$0x1] %vm545_vm9, %v590_v50 }
 0x332   : > { %v616_v51 = vpop.permute.xlu2 %615 }
 0x333   : > { %618 = vst.msk [vmem:[#allocation2 + $0x23] sm:$0x1] %vm545_vm9, %v616_v51 }
 0x33a   : > { %v640_v52 = vpop.permute.xlu2 %639  ;;  %v558_v53 = vpop.permute.xlu1 %557 }
 0x33b   : > { %642 = vst.msk [vmem:[#allocation2 + $0x26] sm:$0x1] %vm545_vm9, %v640_v52  ;;  %v549_v54 = vpop.permute.xlu0 %548 }
 0x33c   : > { %560 = vst.msk [vmem:[#allocation2 + $0x1c] sm:$0x1] %vm545_vm9, %v558_v53 }
 0x33d   : > { %552 = vst.msk [vmem:[#allocation2 + $0x1b] sm:$0x1] %vm545_vm9, %v549_v54  ;;  %v3271_v54 = vstv %s2817_s16  ;;  %s2820_s16 = sld [smem:[#allocation5 + $0x42]] }
 0x342   : > { %v664_v55 = vpop.permute.xlu2 %663  ;;  %v582_v56 = vpop.permute.xlu1 %581 }
 0x343   : > { %666 = vst.msk [vmem:[#allocation2 + $0x29] sm:$0x1] %vm545_vm9, %v664_v55  ;;  %v574_v57 = vpop.permute.xlu0 %573 }
 0x344   : > { %584 = vst.msk [vmem:[#allocation2 + $0x1f] sm:$0x1] %vm545_vm9, %v582_v56 }
 0x345   : > { %576 = vst.msk [vmem:[#allocation2 + $0x1e] sm:$0x1] %vm545_vm9, %v574_v57  ;;  %v1114_v57 = vstv %s2813_s17  ;;  %s2821_s17 = sld [smem:[#allocation5 + $0x43]] }
 0x34a   : > { %v606_v59 = vpop.permute.xlu1 %605  ;;  %v554_v7 = vpop.permute.xlu2 %553 }
 0x34b   : > { %608 = vst.msk [vmem:[#allocation2 + $0x22] sm:$0x1] %vm545_vm9, %v606_v59  ;;  %v598_v1 = vpop.permute.xlu0 %597 }
 0x34c   : > { %v3189_v4 = vld [vmem:[#allocation2 + $0x18] sm:$0xff]  ;;  %600 = vst.msk [vmem:[#allocation2 + $0x21] sm:$0x1] %vm545_vm9, %v598_v1 }
 0x34d   : > { %556 = vst.msk [vmem:[#allocation2 + $0x4] sm:$0x1] %vm545_vm9, %v554_v7  ;;  %v882_v6 = vmul.f32 %v881_v2, %v3189_v4  ;;  %v869_v11 = vmul.f32 %v868_v0, %v3189_v4  ;;  %v921_v29 = vmul.f32 %v920_v24, %v3189_v4  ;;  %v908_v30 = vmul.f32 %v907_v25, %v3189_v4 }
 0x34e   : > { %v895_v31 = vmul.f32 %v894_v20, %v3189_v4  ;;  %v1077_v43 = vmul.f32 %v1076_v39, %v3189_v4  ;;  %v934_v44 = vmul.f32 %v933_v34, %v3189_v4  ;;  %v1096_v53 = vmul.f32 %v1095_v48, %v3189_v4 }
 0x34f   : > { %886 = vrot.lane.b32.xlu0 %v882_v6, %s2983_s27  ;;  %873 = vrot.lane.b32.xlu2 %v869_v11, %s2971_s14  ;;  %v4669_v11 = vstv %s3281_s18 }
 0x352   : > { %v632_v8 = vpop.permute.xlu1 %631  ;;  %v578_v12 = vpop.permute.xlu2 %577 }
 0x353   : > { %634 = vst.msk [vmem:[#allocation2 + $0x25] sm:$0x1] %vm545_vm9, %v632_v8  ;;  %v624_v13 = vpop.permute.xlu0 %623 }
 0x354   : > { %626 = vst.msk [vmem:[#allocation2 + $0x24] sm:$0x1] %vm545_vm9, %v624_v13 }
 0x355   : > { %580 = vst.msk [vmem:[#allocation2 + $0x7] sm:$0x1] %vm545_vm9, %v578_v12  ;;  %v1133_v12 = vstv %s2814_s19  ;;  %s2822_s19 = sld [smem:[#allocation5 + $0x44]] }
 0x35a   : > { %v656_v14 = vpop.permute.xlu1 %655  ;;  %v602_v15 = vpop.permute.xlu2 %601 }
 0x35b   : > { %658 = vst.msk [vmem:[#allocation2 + $0x28] sm:$0x1] %vm545_vm9, %v656_v14  ;;  %v648_v16 = vpop.permute.xlu0 %647  ;;  %v1134_v14 = vmul.f32 %v1133_v12, %v3189_v4 }
 0x35c   : > { %650 = vst.msk [vmem:[#allocation2 + $0x27] sm:$0x1] %vm545_vm9, %v648_v16 }
 0x35d   : > { %604 = vst.msk [vmem:[#allocation2 + $0xa] sm:$0x1] %vm545_vm9, %v602_v15 }
 0x362   : > { %v628_v17 = vpop.permute.xlu2 %627  ;;  %v543_v10 = vpop.permute.xlu1 %542 }
 0x363   : > { %v3209_v18 = vld [vmem:[#allocation2 + $0x20] sm:$0xff]  ;;  %v672_v19 = vpop.permute.xlu0 %671  ;;  %630 = vst.msk [vmem:[#allocation2 + $0xd] sm:$0x1] %vm545_vm9, %v628_v17  ;;  %v3307_v17 = vstv %s2761_s22  ;;  %s2801_s22 = sld [smem:[#allocation5 + $0x2f]] }
 0x364   : > { %674 = vst.msk [vmem:[#allocation2 + $0x2a] sm:$0x1] %vm545_vm9, %v672_v19  ;;  %v896_v21 = vmul.f32 %v894_v20, %v3209_v18  ;;  %v883_v22 = vmul.f32 %v881_v2, %v3209_v18  ;;  %v870_v23 = vmul.f32 %v868_v0, %v3209_v18  ;;  %v935_v35 = vmul.f32 %v933_v34, %v3209_v18 }
 0x365   : > { %546 = vst.msk [vmem:[#allocation2 + $0x3] sm:$0x1] %vm545_vm9, %v543_v10  ;;  %v922_v36 = vmul.f32 %v920_v24, %v3209_v18  ;;  %v909_v37 = vmul.f32 %v907_v25, %v3209_v18  ;;  %v3258_v46 = vmul.f32 %v4668_v45, %v3209_v18  ;;  %v1078_v55 = vmul.f32 %v1076_v39, %v3209_v18 }
 0x366   : > { %901 = vrot.lane.b32.xlu0 %v896_v21, %s2984_s6  ;;  %888 = vrot.lane.b32.xlu2 %v883_v22, %s2983_s27  ;;  %v1115_v0 = vmul.f32 %v1114_v57, %v3189_v4  ;;  %v1097_v6 = vmul.f32 %v1095_v48, %v3209_v18  ;;  %v1116_v16 = vmul.f32 %v1114_v57, %v3209_v18  ;;  %v3313_v19 = vstv %s2768_s23  ;;  %s2795_s23 = sld [smem:[#allocation5 + $0x29]] }
 0x367   : > { %875 = vrot.lane.b32.xlu1 %v870_v23, %s2971_s14  ;;  %v1152_v20 = vstv %s2815_s24  ;;  %v3319_v22 = vstv %s2775_s4  ;;  %s2802_s24 = sld [smem:[#allocation5 + $0x30]] }
 0x368   : > { %v1153_v24 = vmul.f32 %v1152_v20, %v3189_v4  ;;  %s2796_s4 = sld [smem:[#allocation5 + $0x2a]] }
 0x36a   : > { %v652_v26 = vpop.permute.xlu2 %651  ;;  %v570_v27 = vpop.permute.xlu1 %569 }
 0x36b   : > { %v562_v28 = vpop.permute.xlu0 %561  ;;  %654 = vst.msk [vmem:[#allocation2 + $0x10] sm:$0x1] %vm545_vm9, %v652_v26  ;;  %v3245_v38 = vld [vmem:[#allocation2 + $0x28] sm:$0x3f]  ;;  %v1135_v26 = vmul.f32 %v1133_v12, %v3209_v18 }
 0x36c   : > { %564 = vst.msk [vmem:[#allocation2 + $0x5] sm:$0x1] %vm545_vm9, %v562_v28  ;;  %v1079_v42 = vmul.f32 %v1076_v39, %v3245_v38  ;;  %v3265_v49 = vmul.f32 %v3261_v47, %v3245_v38  ;;  %v1098_v52 = vmul.f32 %v1095_v48, %v3245_v38  ;;  %v3276_v56 = vmul.f32 %v3271_v54, %v3245_v38 }
 0x36d   : > { %572 = vst.msk [vmem:[#allocation2 + $0x6] sm:$0x1] %vm545_vm9, %v570_v27  ;;  %v1117_v2 = vmul.f32 %v1114_v57, %v3245_v38  ;;  %v1136_v13 = vmul.f32 %v1133_v12, %v3245_v38  ;;  %v1155_v23 = vmul.f32 %v1152_v20, %v3245_v38  ;;  %v3331_v27 = vstv %s2831_s28  ;;  %s2823_s28 = sld [smem:[#allocation5 + $0x45]] }
 0x36e   : > { %925 = vrot.lane.b32.xlu0 %v921_v29, %s2985_s8  ;;  %912 = vrot.lane.b32.xlu2 %v908_v30, %s2986_s9  ;;  %4721 = vst [vmem:[#allocation16_spill] sm:$0xff] %v3331_v27  ;;  %v1171_v28 = vstv %s2816_s26  ;;  %v3333_v29 = vstv %s2851_s29  ;;  %v3337_v30 = vmul.f32 %v3331_v27, %v3245_v38  ;;  %v1154_v39 = vmul.f32 %v1152_v20, %v3209_v18  ;;  %s2789_s26 = sld [smem:[#allocation5 + $0x23]] }
 0x36f   : > { %899 = vrot.lane.b32.xlu1 %v895_v31, %s2984_s6  ;;  %4722 = vst [vmem:[#allocation17_spill] sm:$0xff] %v3333_v29  ;;  %v3341_v31 = vmul.f32 %v3333_v29, %v3245_v38  ;;  %v1174_v34 = vmul.f32 %v1171_v28, %v3245_v38  ;;  %v1173_v48 = vmul.f32 %v1171_v28, %v3209_v18  ;;  %v1369_v57 = vstv %s2820_s16  ;;  %s2825_s29 = sld [smem:[#allocation5 + $0x47]] }
 0x370   : > { %4723 = vst [vmem:[#allocation18_spill] sm:$0xff] %v3337_v30  ;;  %v1407_v20 = vstv %s2822_s19  ;;  %s2832_s16 = sld [smem:[#allocation5 + $0x4e]] }
 0x371   : > { %4724 = vst [vmem:[#allocation19_spill] sm:$0xff] %v3341_v31  ;;  %s2834_s19 = sld [smem:[#allocation5 + $0x50]] }
 0x372   : > { %v594_v32 = vpop.permute.xlu1 %593 }
 0x373   : > { %v586_v33 = vpop.permute.xlu0 %585  ;;  %596 = vst.msk [vmem:[#allocation2 + $0x9] sm:$0x1] %vm545_vm9, %v594_v32  ;;  %v3343_v32 = vstv %s2838_s30  ;;  %s2826_s30 = sld [smem:[#allocation5 + $0x48]] }
 0x374   : > { %588 = vst.msk [vmem:[#allocation2 + $0x8] sm:$0x1] %vm545_vm9, %v586_v33  ;;  %v3345_v33 = vstv %s2845_s7  ;;  %s2827_s7 = sld [smem:[#allocation5 + $0x49]] }
 0x375   : > { %4725 = vst [vmem:[#allocation20_spill] sm:$0xff] %v3343_v32 }
 0x376   : > { %940 = vrot.lane.b32.xlu0 %v935_v35, %s2987_s12  ;;  %927 = vrot.lane.b32.xlu2 %v922_v36, %s2985_s8  ;;  %4726 = vst [vmem:[#allocation21_spill] sm:$0xff] %v3345_v33  ;;  %v1172_v35 = vmul.f32 %v1171_v28, %v3189_v4  ;;  %v3351_v36 = vmul.f32 %v3343_v32, %v3245_v38  ;;  %v3403_v28 = vstv %s2796_s4  ;;  %s2839_s4 = sld [smem:[#allocation5 + $0x55]] }
 0x377   : > { %914 = vrot.lane.b32.xlu1 %v909_v37, %s2986_s9  ;;  %v3355_v37 = vmul.f32 %v3345_v33, %v3245_v38  ;;  %4733 = vst [vmem:[#allocation28_spill] sm:$0xff] %v3403_v28  ;;  %v1841_v33 = vstv %s2832_s16  ;;  %v1879_v27 = vstv %s2834_s19  ;;  %s2849_s16 = sld [smem:[#allocation5 + $0x5f]] }
 0x378   : > { %4727 = vst [vmem:[#allocation22_spill] sm:$0xff] %v3351_v36  ;;  %v1844_v32 = vmul.f32 %v1841_v33, %v3245_v38  ;;  %s2756_s19 = sld [smem:[#allocation5 + $0x2]] }
 0x379   : > { %4728 = vst [vmem:[#allocation23_spill] sm:$0xff] %v3355_v37 }
 0x37a   : > { %v620_v40 = vpop.permute.xlu1 %619  ;;  %v1624_v5 = vstv %s2827_s7  ;;  %s2847_s7 = sld [smem:[#allocation5 + $0x5d]] }
 0x37b   : > { %v611_v41 = vpop.permute.xlu0 %610  ;;  %622 = vst.msk [vmem:[#allocation2 + $0xc] sm:$0x1] %vm545_vm9, %v620_v40  ;;  %v3358_v40 = vstv %s2782_s10  ;;  %s2828_s10 = sld [smem:[#allocation5 + $0x4a]]  ;;  %v1627_v58 = vmul.f32 %v1624_v5, %v3245_v38  ;;  %v1625_v63 = vmul.f32 %v1624_v5, %v3189_v4 }
 0x37c   : > { %613 = vst.msk [vmem:[#allocation2 + $0xb] sm:$0x1] %vm545_vm9, %v611_v41 }
 0x37e   : > { %1087 = vrot.lane.b32.xlu0 %v1079_v42, %s2971_s14  ;;  %1083 = vrot.lane.b32.xlu2 %v1077_v43, %s2971_s14  ;;  %v1331_v42 = vstv %s2818_s13  ;;  %s2829_s13 = sld [smem:[#allocation5 + $0x4b]] }
 0x37f   : > { %938 = vrot.lane.b32.xlu1 %v934_v44, %s2987_s12  ;;  %v1334_v43 = vmul.f32 %v1331_v42, %v3245_v38  ;;  %v1332_v44 = vmul.f32 %v1331_v42, %v3189_v4 }
 0x381   : > { %v1643_v62 = vstv %s2828_s10  ;;  %s2848_s10 = sld [smem:[#allocation5 + $0x5e]] }
 0x382   : > { %v644_v50 = vpop.permute.xlu1 %643  ;;  %v1646_v9 = vmul.f32 %v1643_v62, %v3245_v38  ;;  %v1644_v61 = vmul.f32 %v1643_v62, %v3189_v4 }
 0x383   : > { %v636_v51 = vpop.permute.xlu0 %635  ;;  %646 = vst.msk [vmem:[#allocation2 + $0xf] sm:$0x1] %vm545_vm9, %v644_v50  ;;  %v1350_v50 = vstv %s2819_s15  ;;  %s2830_s15 = sld [smem:[#allocation5 + $0x4c]] }
 0x384   : > { %638 = vst.msk [vmem:[#allocation2 + $0xe] sm:$0x1] %vm545_vm9, %v636_v51  ;;  %v1353_v51 = vmul.f32 %v1350_v50, %v3245_v38  ;;  %v1662_v3 = vstv %s2829_s13  ;;  %s2843_s13 = sld [smem:[#allocation5 + $0x59]] }
 0x385   : > { %v1665_v60 = vmul.f32 %v1662_v3, %v3245_v38  ;;  %v1663_v37 = vmul.f32 %v1662_v3, %v3189_v4 }
 0x386   : > { %1106 = vrot.lane.b32.xlu0 %v1098_v52, %s2983_s27  ;;  %1102 = vrot.lane.b32.xlu2 %v1096_v53, %s2983_s27  ;;  %v1351_v52 = vmul.f32 %v1350_v50, %v3189_v4  ;;  %v1333_v53 = vmul.f32 %v1331_v42, %v3209_v18 }
 0x387   : > { %1085 = vrot.lane.b32.xlu1 %v1078_v55, %s2971_s14 }
 0x389   : > { %v1681_v36 = vstv %s2830_s15  ;;  %s2844_s15 = sld [smem:[#allocation5 + $0x5a]] }
 0x38a   : > { %v668_v59 = vpop.permute.xlu1 %667 }
 0x38b   : > { %v660_v7 = vpop.permute.xlu0 %659  ;;  %670 = vst.msk [vmem:[#allocation2 + $0x12] sm:$0x1] %vm545_vm9, %v668_v59  ;;  %v3287_v1 = vld [vmem:[#allocation2 + $0x8] sm:$0xff]  ;;  %v1372_v59 = vmul.f32 %v1369_v57, %v3245_v38 }
 0x38c   : > { %662 = vst.msk [vmem:[#allocation2 + $0x11] sm:$0x1] %vm545_vm9, %v660_v7  ;;  %v3297_v8 = vmul.f32 %v4669_v11, %v3287_v1  ;;  %v1370_v7 = vmul.f32 %v1369_v57, %v3189_v4 }
 0x38e   : > { %1125 = vrot.lane.b32.xlu0 %v1117_v2, %s2984_s6  ;;  %1121 = vrot.lane.b32.xlu2 %v1115_v0, %s2984_s6  ;;  %v1352_v2 = vmul.f32 %v1350_v50, %v3209_v18 }
 0x38f   : > { %1104 = vrot.lane.b32.xlu1 %v1097_v6, %s2983_s27  ;;  %v1388_v6 = vstv %s2821_s17  ;;  %s2833_s17 = sld [smem:[#allocation5 + $0x4f]] }
 0x390   : > { %v1391_v12 = vmul.f32 %v1388_v6, %v3245_v38 }
 0x393   : > { %v3301_v15 = vld [vmem:[#allocation2 + $0x10] sm:$0x3f] }
 0x394   : > { %v3311_v10 = vmul.f32 %v3307_v17, %v3301_v15  ;;  %v3317_v21 = vmul.f32 %v3313_v19, %v3301_v15  ;;  %v3325_v25 = vmul.f32 %v3319_v22, %v3301_v15  ;;  %v3364_v41 = vmul.f32 %v3358_v40, %v3301_v15 }
 0x395   : > { %v3427_v50 = vmul.f32 %v3403_v28, %v3301_v15  ;;  %v1842_v28 = vmul.f32 %v1841_v33, %v3189_v4 }
 0x396   : > { %1144 = vrot.lane.b32.xlu0 %v1136_v13, %s2986_s9  ;;  %1140 = vrot.lane.b32.xlu2 %v1134_v14, %s2986_s9  ;;  %4729 = vst [vmem:[#allocation24_spill] sm:$0xff] %v3364_v41  ;;  %v1389_v13 = vmul.f32 %v1388_v6, %v3189_v4  ;;  %v1371_v14 = vmul.f32 %v1369_v57, %v3209_v18  ;;  %v1426_v57 = vstv %s2823_s28  ;;  %s2840_s28 = sld [smem:[#allocation5 + $0x56]] }
 0x397   : > { %1123 = vrot.lane.b32.xlu1 %v1116_v16, %s2984_s6  ;;  %4739 = vst [vmem:[#allocation34_spill] sm:$0xff] %v3427_v50  ;;  %v1684_v50 = vmul.f32 %v1681_v36, %v3245_v38 }
 0x39e   : > { %1163 = vrot.lane.b32.xlu0 %v1155_v23, %s2985_s8  ;;  %1159 = vrot.lane.b32.xlu2 %v1153_v24, %s2985_s8  ;;  %v3397_v23 = vstv %s2801_s22  ;;  %v3399_v24 = vstv %s2795_s23  ;;  %s2835_s22 = sld [smem:[#allocation5 + $0x51]] }
 0x39f   : > { %1142 = vrot.lane.b32.xlu1 %v1135_v26, %s2986_s9  ;;  %4730 = vst [vmem:[#allocation25_spill] sm:$0xff] %v3397_v23  ;;  %v3401_v26 = vstv %s2802_s24  ;;  %s2836_s23 = sld [smem:[#allocation5 + $0x52]] }
 0x3a0   : > { %4731 = vst [vmem:[#allocation26_spill] sm:$0xff] %v3399_v24  ;;  %v3417_v42 = vmul.f32 %v3401_v26, %v3301_v15  ;;  %s2837_s24 = sld [smem:[#allocation5 + $0x53]] }
 0x3a1   : > { %4732 = vst [vmem:[#allocation27_spill] sm:$0xff] %v3401_v26 }
 0x3a2   : > { %4737 = vst [vmem:[#allocation32_spill] sm:$0xff] %v3417_v42 }
 0x3a4   : > { %v1898_v30 = vstv %s2835_s22  ;;  %s2755_s22 = sld [smem:[#allocation5 + $0x1]] }
 0x3a6   : > { %1182 = vrot.lane.b32.xlu0 %v1174_v34, %s2987_s12  ;;  %1178 = vrot.lane.b32.xlu2 %v1172_v35, %s2987_s12  ;;  %v3407_v34 = vmul.f32 %v3397_v23, %v3301_v15  ;;  %v3411_v35 = vmul.f32 %v3399_v24, %v3301_v15  ;;  %v3902_v23 = vld [vmem:[#allocation2 + $0x8] sm:$0xff] }
 0x3a7   : > { %1161 = vrot.lane.b32.xlu1 %v1154_v39, %s2985_s8  ;;  %v3413_v39 = vstv %s2789_s26  ;;  %s2846_s26 = sld [smem:[#allocation5 + $0x5c]] }
 0x3a8   : > { %4734 = vst [vmem:[#allocation29_spill] sm:$0xff] %v3407_v34  ;;  %v1880_v34 = vmul.f32 %v1879_v27, %v3189_v4 }
 0x3a9   : > { %v3379_v55 = vpop.permute.xlu2 %873  ;;  %4735 = vst [vmem:[#allocation30_spill] sm:$0xff] %v3411_v35  ;;  %v1882_v35 = vmul.f32 %v1879_v27, %v3245_v38 }
 0x3aa   : > { %4736 = vst [vmem:[#allocation31_spill] sm:$0xff] %v3413_v39 }
 0x3ae   : > { %1342 = vrot.lane.b32.xlu0 %v1334_v43, %s2971_s14  ;;  %1338 = vrot.lane.b32.xlu2 %v1332_v44, %s2971_s14  ;;  %v1410_v43 = vmul.f32 %v1407_v20, %v3245_v38  ;;  %v1408_v44 = vmul.f32 %v1407_v20, %v3189_v4 }
 0x3af   : > { %1180 = vrot.lane.b32.xlu1 %v1173_v48, %s2987_s12  ;;  %v3423_v48 = vmul.f32 %v3413_v39, %v3301_v15  ;;  %v1860_v39 = vstv %s2833_s17  ;;  %s2850_s17 = sld [smem:[#allocation5 + $0x60]] }
 0x3b0   : > { %v1863_v31 = vmul.f32 %v1860_v39, %v3245_v38  ;;  %v1861_v42 = vmul.f32 %v1860_v39, %v3189_v4 }
 0x3b1   : > { %4738 = vst [vmem:[#allocation33_spill] sm:$0xff] %v3423_v48  ;;  %v1682_v48 = vmul.f32 %v1681_v36, %v3189_v4 }
 0x3b6   : > { %1361 = vrot.lane.b32.xlu0 %v1353_v51, %s2983_s27  ;;  %1357 = vrot.lane.b32.xlu2 %v1351_v52, %s2983_s27  ;;  %v1390_v51 = vmul.f32 %v1388_v6, %v3209_v18 }
 0x3b7   : > { %1340 = vrot.lane.b32.xlu1 %v1333_v53, %s2971_s14 }
 0x3be   : > { %1380 = vrot.lane.b32.xlu0 %v1372_v59, %s2984_s6  ;;  %1376 = vrot.lane.b32.xlu2 %v1370_v7, %s2984_s6  ;;  %v1429_v59 = vmul.f32 %v1426_v57, %v3245_v38  ;;  %v1427_v7 = vmul.f32 %v1426_v57, %v3189_v4 }
 0x3bf   : > { %1359 = vrot.lane.b32.xlu1 %v1352_v2, %s2983_s27  ;;  %v1409_v2 = vmul.f32 %v1407_v20, %v3209_v18  ;;  %v1428_v20 = vmul.f32 %v1426_v57, %v3209_v18 }
 0x3c0   : > { %v3387_v0 = vpop.permute.xlu2 %888 }
 0x3c1   : > { %v3433_v52 = vpop.permute.xlu0 %886 }
 0x3c6   : > { %1399 = vrot.lane.b32.xlu0 %v1391_v12, %s2986_s9  ;;  %1395 = vrot.lane.b32.xlu2 %v1389_v13, %s2986_s9 }
 0x3c7   : > { %1378 = vrot.lane.b32.xlu1 %v1371_v14, %s2984_s6  ;;  %v1586_v14 = vstv %s2825_s29  ;;  %s2841_s29 = sld [smem:[#allocation5 + $0x57]] }
 0x3c8   : > { %v3395_v16 = vpop.permute.xlu2 %912  ;;  %v1588_v57 = vmul.f32 %v1586_v14, %v3209_v18 }
 0x3ce   : > { %1418 = vrot.lane.b32.xlu0 %v1410_v43, %s2985_s8  ;;  %1414 = vrot.lane.b32.xlu2 %v1408_v44, %s2985_s8  ;;  %v1589_v43 = vmul.f32 %v1586_v14, %v3245_v38  ;;  %v1587_v44 = vmul.f32 %v1586_v14, %v3189_v4 }
 0x3cf   : > { %1397 = vrot.lane.b32.xlu1 %v1390_v51, %s2986_s9 }
 0x3d0   : > { %v3435_v53 = vpop.permute.xlu2 %927 }
 0x3d6   : > { %1437 = vrot.lane.b32.xlu0 %v1429_v59, %s2987_s12  ;;  %1433 = vrot.lane.b32.xlu2 %v1427_v7, %s2987_s12 }
 0x3d7   : > { %1416 = vrot.lane.b32.xlu1 %v1409_v2, %s2985_s8  ;;  %v1605_v2 = vstv %s2826_s30  ;;  %s2842_s30 = sld [smem:[#allocation5 + $0x58]] }
 0x3d8   : > { %v3443_v6 = vpop.permute.xlu0 %901  ;;  %v3445_v12 = vpop.permute.xlu2 %1083  ;;  %v1608_v45 = vmul.f32 %v1605_v2, %v3245_v38  ;;  %v1606_v11 = vmul.f32 %v1605_v2, %v3189_v4  ;;  %v1607_v14 = vmul.f32 %v1605_v2, %v3209_v18  ;;  %v1626_v2 = vmul.f32 %v1624_v5, %v3209_v18 }
 0x3d9   : > { %v3447_v13 = vpop.permute.xlu1 %875  ;;  %v1645_v5 = vmul.f32 %v1643_v62, %v3209_v18  ;;  %v1664_v62 = vmul.f32 %v1662_v3, %v3209_v18  ;;  %v1683_v3 = vmul.f32 %v1681_v36, %v3209_v18  ;;  %v1843_v36 = vmul.f32 %v1841_v33, %v3209_v18 }
 0x3da   : > { %v1862_v33 = vmul.f32 %v1860_v39, %v3209_v18  ;;  %v1881_v39 = vmul.f32 %v1879_v27, %v3209_v18  ;;  %v1900_v27 = vmul.f32 %v1898_v30, %v3209_v18 }
 0x3de   : > { %1597 = vrot.lane.b32.xlu0 %v1589_v43, %s2971_s14  ;;  %1593 = vrot.lane.b32.xlu2 %v1587_v44, %s2971_s14 }
 0x3df   : > { %1435 = vrot.lane.b32.xlu1 %v1428_v20, %s2987_s12 }
 0x3e0   : > { %v3455_v51 = vpop.permute.xlu0 %925  ;;  %v3457_v59 = vpop.permute.xlu2 %1102 }
 0x3e1   : > { %v3459_v7 = vpop.permute.xlu1 %899 }
 0x3e6   : > { %1616 = vrot.lane.b32.xlu0 %v1608_v45, %s2983_s27  ;;  %1612 = vrot.lane.b32.xlu2 %v1606_v11, %s2983_s27 }
 0x3e7   : > { %1595 = vrot.lane.b32.xlu1 %v1588_v57, %s2971_s14 }
 0x3e8   : > { %v3467_v43 = vpop.permute.xlu0 %940  ;;  %v3469_v44 = vpop.permute.xlu2 %1121 }
 0x3e9   : > { %4740 = vst [vmem:[#allocation35_spill] sm:$0xff] %v3467_v43  ;;  %v3471_v20 = vpop.permute.xlu1 %914 }
 0x3ee   : > { %1635 = vrot.lane.b32.xlu0 %v1627_v58, %s2984_s6  ;;  %1631 = vrot.lane.b32.xlu2 %v1625_v63, %s2984_s6 }
 0x3ef   : > { %1614 = vrot.lane.b32.xlu1 %v1607_v14, %s2983_s27 }
 0x3f0   : > { %v3479_v45 = vpop.permute.xlu0 %1087  ;;  %v3481_v11 = vpop.permute.xlu2 %1140 }
 0x3f1   : > { %v3483_v57 = vpop.permute.xlu1 %938 }
 0x3f2   : > { %4741 = vst [vmem:[#allocation36_spill] sm:$0xff] %v3483_v57 }
 0x3f6   : > { %1654 = vrot.lane.b32.xlu0 %v1646_v9, %s2986_s9  ;;  %1650 = vrot.lane.b32.xlu2 %v1644_v61, %s2986_s9 }
 0x3f7   : > { %1633 = vrot.lane.b32.xlu1 %v1626_v2, %s2984_s6 }
 0x3f8   : > { %v3491_v58 = vpop.permute.xlu0 %1106  ;;  %v3493_v63 = vpop.permute.xlu2 %1159 }
 0x3f9   : > { %v3495_v14 = vpop.permute.xlu1 %1085 }
 0x3fe   : > { %1673 = vrot.lane.b32.xlu0 %v1665_v60, %s2985_s8  ;;  %1669 = vrot.lane.b32.xlu2 %v1663_v37, %s2985_s8 }
 0x3ff   : > { %1652 = vrot.lane.b32.xlu1 %v1645_v5, %s2986_s9 }
 0x400   : > { %v3503_v61 = vpop.permute.xlu0 %1125  ;;  %v3505_v9 = vpop.permute.xlu2 %1178 }
 0x401   : > { %v3507_v2 = vpop.permute.xlu1 %1104 }
 0x406   : > { %1692 = vrot.lane.b32.xlu0 %v1684_v50, %s2987_s12  ;;  %1688 = vrot.lane.b32.xlu2 %v1682_v48, %s2987_s12 }
 0x407   : > { %1671 = vrot.lane.b32.xlu1 %v1664_v62, %s2985_s8 }
 0x408   : > { %v3515_v60 = vpop.permute.xlu0 %1144  ;;  %v3517_v37 = vpop.permute.xlu2 %1338 }
 0x409   : > { %4742 = vst [vmem:[#allocation37_spill] sm:$0xff] %v3517_v37  ;;  %v3519_v5 = vpop.permute.xlu1 %1123 }
 0x40e   : > { %1852 = vrot.lane.b32.xlu0 %v1844_v32, %s2971_s14  ;;  %1848 = vrot.lane.b32.xlu2 %v1842_v28, %s2971_s14 }
 0x40f   : > { %1690 = vrot.lane.b32.xlu1 %v1683_v3, %s2987_s12 }
 0x410   : > { %v3527_v48 = vpop.permute.xlu0 %1163  ;;  %v3529_v50 = vpop.permute.xlu2 %1357 }
 0x411   : > { %4743 = vst [vmem:[#allocation38_spill] sm:$0xff] %v3529_v50  ;;  %v3531_v62 = vpop.permute.xlu1 %1142  ;;  %v1899_v50 = vmul.f32 %v1898_v30, %v3189_v4 }
 0x416   : > { %1871 = vrot.lane.b32.xlu0 %v1863_v31, %s2983_s27  ;;  %1867 = vrot.lane.b32.xlu2 %v1861_v42, %s2983_s27 }
 0x417   : > { %1850 = vrot.lane.b32.xlu1 %v1843_v36, %s2971_s14 }
 0x418   : > { %v3539_v32 = vpop.permute.xlu0 %1182  ;;  %v3541_v28 = vpop.permute.xlu2 %1376 }
 0x419   : > { %4744 = vst [vmem:[#allocation39_spill] sm:$0xff] %v3541_v28  ;;  %v3543_v3 = vpop.permute.xlu1 %1161  ;;  %v1901_v28 = vmul.f32 %v1898_v30, %v3245_v38 }
 0x41e   : > { %1890 = vrot.lane.b32.xlu0 %v1882_v35, %s2984_s6  ;;  %1886 = vrot.lane.b32.xlu2 %v1880_v34, %s2984_s6 }
 0x41f   : > { %1869 = vrot.lane.b32.xlu1 %v1862_v33, %s2983_s27 }
 0x420   : > { %v3551_v31 = vpop.permute.xlu0 %1342  ;;  %v3553_v42 = vpop.permute.xlu2 %1395 }
 0x421   : > { %4745 = vst [vmem:[#allocation40_spill] sm:$0xff] %v3551_v31  ;;  %v3555_v36 = vpop.permute.xlu1 %1180 }
 0x422   : > { %4746 = vst [vmem:[#allocation41_spill] sm:$0xff] %v3553_v42  ;;  %v1917_v42 = vstv %s2836_s23  ;;  %s2757_s23 = sld [smem:[#allocation5 + $0x3]] }
 0x423   : > { %v1920_v41 = vmul.f32 %v1917_v42, %v3245_v38  ;;  %v1918_v31 = vmul.f32 %v1917_v42, %v3189_v4  ;;  %v3583_v38 = vstv %s2839_s4  ;;  %s2758_s4 = sld [smem:[#allocation5 + $0x4]] }
 0x424   : > { %4754 = vst [vmem:[#allocation49_spill] sm:$0xff] %v3583_v38  ;;  %v2098_v30 = vmul.f32 %v3583_v38, %v3209_v18 }
 0x426   : > { %1909 = vrot.lane.b32.xlu0 %v1901_v28, %s2986_s9  ;;  %1905 = vrot.lane.b32.xlu2 %v1899_v50, %s2986_s9 }
 0x427   : > { %1888 = vrot.lane.b32.xlu1 %v1881_v39, %s2984_s6 }
 0x428   : > { %v3563_v34 = vpop.permute.xlu0 %1361  ;;  %v3565_v35 = vpop.permute.xlu2 %1414 }
 0x429   : > { %4747 = vst [vmem:[#allocation42_spill] sm:$0xff] %v3563_v34  ;;  %v3567_v33 = vpop.permute.xlu1 %1340  ;;  %v3599_v34 = vstv %s2846_s26  ;;  %s2760_s26 = sld [smem:[#allocation5 + $0x6]] }
 0x42a   : > { %4748 = vst [vmem:[#allocation43_spill] sm:$0xff] %v3565_v35  ;;  %v3581_v35 = vstv %s2837_s24  ;;  %s2759_s24 = sld [smem:[#allocation5 + $0x5]] }
 0x42b   : > { %4749 = vst [vmem:[#allocation44_spill] sm:$0xff] %v3567_v33  ;;  %v3637_v33 = vstv %s2847_s7  ;;  %s2765_s7 = sld [smem:[#allocation5 + $0xb]] }
 0x42c   : > { %4753 = vst [vmem:[#allocation48_spill] sm:$0xff] %v3581_v35 }
 0x42d   : > { %4758 = vst [vmem:[#allocation53_spill] sm:$0xff] %v3599_v34 }
 0x42e   : > { %1928 = vrot.lane.b32.xlu0 %v1920_v41, %s2985_s8  ;;  %1924 = vrot.lane.b32.xlu2 %v1918_v31, %s2985_s8  ;;  %v1937_v41 = vmul.f32 %v3581_v35, %v3189_v4  ;;  %v1919_v31 = vmul.f32 %v1917_v42, %v3209_v18  ;;  %v2352_v42 = vmul.f32 %v3599_v34, %v3189_v4 }
 0x42f   : > { %1907 = vrot.lane.b32.xlu1 %v1900_v27, %s2986_s9  ;;  %4768 = vst [vmem:[#allocation63_spill] sm:$0xff] %v3637_v33 }
 0x430   : > { %v3575_v50 = vpop.permute.xlu0 %1380  ;;  %v3577_v28 = vpop.permute.xlu2 %1433 }
 0x431   : > { %4750 = vst [vmem:[#allocation45_spill] sm:$0xff] %v3575_v50  ;;  %v3579_v39 = vpop.permute.xlu1 %1359 }
 0x432   : > { %4751 = vst [vmem:[#allocation46_spill] sm:$0xff] %v3577_v28 }
 0x433   : > { %4752 = vst [vmem:[#allocation47_spill] sm:$0xff] %v3579_v39  ;;  %v3601_v39 = vstv %s2840_s28  ;;  %s2762_s28 = sld [smem:[#allocation5 + $0x8]] }
 0x434   : > { %4759 = vst [vmem:[#allocation54_spill] sm:$0xff] %v3601_v39 }
 0x436   : > { %2105 = vrot.lane.b32.xlu0 %v2098_v30, %s2971_s14  ;;  %1943 = vrot.lane.b32.xlu2 %v1937_v41, %s2987_s12  ;;  %v2116_v30 = vmul.f32 %v3601_v39, %v3189_v4  ;;  %v2097_v41 = vmul.f32 %v3583_v38, %v3189_v4  ;;  %v4828_v38 = vstv %s3281_s18  ;;  %s2777_s18 = sld [smem:[#allocation5 + $0x17]] }
 0x437   : > { %1926 = vrot.lane.b32.xlu1 %v1919_v31, %s2985_s8 }
 0x438   : > { %v3593_v27 = vpop.permute.xlu0 %1399  ;;  %v3595_v28 = vpop.permute.xlu2 %1593 }
 0x439   : > { %4755 = vst [vmem:[#allocation50_spill] sm:$0xff] %v3593_v27  ;;  %v3597_v50 = vpop.permute.xlu1 %1378 }
 0x43a   : > { %4756 = vst [vmem:[#allocation51_spill] sm:$0xff] %v3595_v28 }
 0x43b   : > { %4757 = vst [vmem:[#allocation52_spill] sm:$0xff] %v3597_v50  ;;  %v3618_v50 = vstv %s2841_s29  ;;  %s2763_s29 = sld [smem:[#allocation5 + $0x9]] }
 0x43c   : > { %4763 = vst [vmem:[#allocation58_spill] sm:$0xff] %v3618_v50  ;;  %v2136_v37 = vmul.f32 %v3618_v50, %v3209_v18 }
 0x43e   : > { %2358 = vrot.lane.b32.xlu0 %v2352_v42, %s2971_s14  ;;  %2122 = vrot.lane.b32.xlu2 %v2116_v30, %s2983_s27  ;;  %v2353_v42 = vmul.f32 %v3599_v34, %v3209_v18  ;;  %v2117_v30 = vmul.f32 %v3601_v39, %v3209_v18 }
 0x43f   : > { %2103 = vrot.lane.b32.xlu1 %v2097_v41, %s2971_s14 }
 0x440   : > { %v3612_v31 = vpop.permute.xlu0 %1418  ;;  %v3614_v28 = vpop.permute.xlu2 %1612 }
 0x441   : > { %4760 = vst [vmem:[#allocation55_spill] sm:$0xff] %v3612_v31  ;;  %v3616_v27 = vpop.permute.xlu1 %1397 }
 0x442   : > { %4761 = vst [vmem:[#allocation56_spill] sm:$0xff] %v3614_v28 }
 0x443   : > { %4762 = vst [vmem:[#allocation57_spill] sm:$0xff] %v3616_v27  ;;  %v3635_v27 = vstv %s2842_s30  ;;  %s2764_s30 = sld [smem:[#allocation5 + $0xa]] }
 0x444   : > { %4767 = vst [vmem:[#allocation62_spill] sm:$0xff] %v3635_v27  ;;  %v2154_v34 = vmul.f32 %v3635_v27, %v3189_v4 }
 0x446   : > { %2143 = vrot.lane.b32.xlu0 %v2136_v37, %s2984_s6  ;;  %2360 = vrot.lane.b32.xlu2 %v2353_v42, %s2971_s14  ;;  %v2371_v37 = vmul.f32 %v3637_v33, %v3189_v4  ;;  %v2135_v42 = vmul.f32 %v3618_v50, %v3189_v4  ;;  %v2155_v50 = vmul.f32 %v3635_v27, %v3209_v18 }
 0x447   : > { %2124 = vrot.lane.b32.xlu1 %v2117_v30, %s2983_s27 }
 0x448   : > { %v3629_v41 = vpop.permute.xlu0 %1437  ;;  %v3631_v28 = vpop.permute.xlu2 %1631 }
 0x449   : > { %4764 = vst [vmem:[#allocation59_spill] sm:$0xff] %v3629_v41  ;;  %v3633_v31 = vpop.permute.xlu1 %1416 }
 0x44a   : > { %4765 = vst [vmem:[#allocation60_spill] sm:$0xff] %v3631_v28 }
 0x44b   : > { %4766 = vst [vmem:[#allocation61_spill] sm:$0xff] %v3633_v31  ;;  %v3654_v31 = vstv %s2848_s10  ;;  %s2766_s10 = sld [smem:[#allocation5 + $0xc]] }
 0x44c   : > { %4772 = vst [vmem:[#allocation67_spill] sm:$0xff] %v3654_v31  ;;  %v2391_v39 = vmul.f32 %v3654_v31, %v3209_v18 }
 0x44e   : > { %2160 = vrot.lane.b32.xlu0 %v2154_v34, %s2986_s9  ;;  %2377 = vrot.lane.b32.xlu2 %v2371_v37, %s2983_s27  ;;  %v2372_v34 = vmul.f32 %v3637_v33, %v3209_v18  ;;  %v785_v33 = vstv %s2755_s22  ;;  %s2773_s22 = sld [smem:[#allocation5 + $0x13]] }
 0x44f   : > { %2141 = vrot.lane.b32.xlu1 %v2135_v42, %s2984_s6 }
 0x450   : > { %v3648_v30 = vpop.permute.xlu0 %1597  ;;  %v3650_v28 = vpop.permute.xlu2 %1650 }
 0x451   : > { %4769 = vst [vmem:[#allocation64_spill] sm:$0xff] %v3648_v30  ;;  %v3652_v41 = vpop.permute.xlu1 %1435  ;;  %v3671_v30 = vstv %s2843_s13  ;;  %s2767_s13 = sld [smem:[#allocation5 + $0xd]] }
 0x452   : > { %4770 = vst [vmem:[#allocation65_spill] sm:$0xff] %v3650_v28  ;;  %v2174_v27 = vmul.f32 %v3671_v30, %v3209_v18 }
 0x453   : > { %4771 = vst [vmem:[#allocation66_spill] sm:$0xff] %v3652_v41  ;;  %v3690_v41 = vstv %s2849_s16  ;;  %s2770_s16 = sld [smem:[#allocation5 + $0x10]] }
 0x454   : > { %4776 = vst [vmem:[#allocation71_spill] sm:$0xff] %v3671_v30 }
 0x455   : > { %4781 = vst [vmem:[#allocation76_spill] sm:$0xff] %v3690_v41 }
 0x456   : > { %2398 = vrot.lane.b32.xlu0 %v2391_v39, %s2984_s6  ;;  %2162 = vrot.lane.b32.xlu2 %v2155_v50, %s2986_s9  ;;  %v1938_v39 = vmul.f32 %v3581_v35, %v3209_v18  ;;  %v2390_v50 = vmul.f32 %v3654_v31, %v3189_v4 }
 0x457   : > { %2379 = vrot.lane.b32.xlu1 %v2372_v34, %s2983_s27 }
 0x458   : > { %v3665_v37 = vpop.permute.xlu0 %1616  ;;  %v3667_v42 = vpop.permute.xlu2 %1669 }
 0x459   : > { %4773 = vst [vmem:[#allocation68_spill] sm:$0xff] %v3665_v37  ;;  %v3669_v28 = vpop.permute.xlu1 %1595 }
 0x45a   : > { %4774 = vst [vmem:[#allocation69_spill] sm:$0xff] %v3667_v42 }
 0x45b   : > { %4775 = vst [vmem:[#allocation70_spill] sm:$0xff] %v3669_v28  ;;  %v3688_v28 = vstv %s2844_s15  ;;  %s2769_s15 = sld [smem:[#allocation5 + $0xf]] }
 0x45c   : > { %4780 = vst [vmem:[#allocation75_spill] sm:$0xff] %v3688_v28  ;;  %v2192_v35 = vmul.f32 %v3688_v28, %v3189_v4 }
 0x45e   : > { %2181 = vrot.lane.b32.xlu0 %v2174_v27, %s2985_s8  ;;  %1945 = vrot.lane.b32.xlu2 %v1938_v39, %s2987_s12  ;;  %v2409_v27 = vmul.f32 %v3690_v41, %v3189_v4  ;;  %v2173_v39 = vmul.f32 %v3671_v30, %v3189_v4  ;;  %v3722_v30 = vld [vmem:[#allocation2] sm:$0xff] }
 0x45f   : > { %2396 = vrot.lane.b32.xlu1 %v2390_v50, %s2984_s6 }
 0x460   : > { %v3682_v34 = vpop.permute.xlu0 %1635  ;;  %v3684_v42 = vpop.permute.xlu2 %1688 }
 0x461   : > { %4777 = vst [vmem:[#allocation72_spill] sm:$0xff] %v3682_v34  ;;  %v3686_v37 = vpop.permute.xlu1 %1614 }
 0x462   : > { %4778 = vst [vmem:[#allocation73_spill] sm:$0xff] %v3684_v42 }
 0x463   : > { %4779 = vst [vmem:[#allocation74_spill] sm:$0xff] %v3686_v37  ;;  %v3707_v37 = vstv %s2850_s17  ;;  %s2771_s17 = sld [smem:[#allocation5 + $0x11]] }
 0x464   : > { %4785 = vst [vmem:[#allocation80_spill] sm:$0xff] %v3707_v37  ;;  %v2429_v31 = vmul.f32 %v3707_v37, %v3209_v18 }
 0x466   : > { %2198 = vrot.lane.b32.xlu0 %v2192_v35, %s2987_s12  ;;  %2415 = vrot.lane.b32.xlu2 %v2409_v27, %s2986_s9  ;;  %v2193_v35 = vmul.f32 %v3688_v28, %v3209_v18  ;;  %v2410_v27 = vmul.f32 %v3690_v41, %v3209_v18  ;;  %v786_v18 = vmul.f32 %v785_v33, %v3722_v30 }
 0x467   : > { %2179 = vrot.lane.b32.xlu1 %v2173_v39, %s2985_s8 }
 0x468   : > { %v3701_v50 = vpop.permute.xlu0 %1654  ;;  %v3703_v42 = vpop.permute.xlu2 %1848 }
 0x469   : > { %4782 = vst [vmem:[#allocation77_spill] sm:$0xff] %v3701_v50  ;;  %v3705_v34 = vpop.permute.xlu1 %1633 }
 0x46a   : > { %4783 = vst [vmem:[#allocation78_spill] sm:$0xff] %v3703_v42 }
 0x46b   : > { %4784 = vst [vmem:[#allocation79_spill] sm:$0xff] %v3705_v34  ;;  %v798_v34 = vstv %s2756_s19  ;;  %s2772_s19 = sld [smem:[#allocation5 + $0x12]] }
 0x46c   : > { %v799_v28 = vmul.f32 %v798_v34, %v3722_v30  ;;  %v800_v41 = vmul.f32 %v798_v34, %v3287_v1 }
 0x46e   : > { %2436 = vrot.lane.b32.xlu0 %v2429_v31, %s2985_s8  ;;  %2200 = vrot.lane.b32.xlu2 %v2193_v35, %s2987_s12  ;;  %v2428_v31 = vmul.f32 %v3707_v37, %v3189_v4  ;;  %v787_v4 = vmul.f32 %v785_v33, %v3287_v1 }
 0x46f   : > { %2417 = vrot.lane.b32.xlu1 %v2410_v27, %s2986_s9 }
 0x470   : > { %v3718_v39 = vpop.permute.xlu0 %1673  ;;  %v3720_v42 = vpop.permute.xlu2 %1867 }
 0x471   : > { %4786 = vst [vmem:[#allocation81_spill] sm:$0xff] %v3718_v39  ;;  %v3724_v50 = vpop.permute.xlu1 %1652  ;;  %v811_v39 = vstv %s2757_s23  ;;  %s2774_s23 = sld [smem:[#allocation5 + $0x14]] }
 0x472   : > { %4787 = vst [vmem:[#allocation82_spill] sm:$0xff] %v3720_v42  ;;  %v812_v33 = vmul.f32 %v811_v39, %v3722_v30 }
 0x473   : > { %4788 = vst [vmem:[#allocation83_spill] sm:$0xff] %v3724_v50  ;;  %v813_v50 = vmul.f32 %v811_v39, %v3287_v1 }
 0x476   : > { %803 = vrot.lane.b32.xlu0 %v799_v28, %s2983_s27  ;;  %790 = vrot.lane.b32.xlu2 %v786_v18, %s2971_s14 }
 0x477   : > { %2434 = vrot.lane.b32.xlu1 %v2428_v31, %s2985_s8  ;;  %v1305_v26 = vstv %s2774_s23  ;;  %s2798_s23 = sld [smem:[#allocation5 + $0x2c]] }
 0x478   : > { %v3733_v35 = vpop.permute.xlu0 %1692  ;;  %v3735_v27 = vpop.permute.xlu2 %1886  ;;  %v1306_v24 = vmul.f32 %v1305_v26, %v3722_v30 }
 0x479   : > { %4789 = vst [vmem:[#allocation84_spill] sm:$0xff] %v3733_v35  ;;  %v3737_v42 = vpop.permute.xlu1 %1671  ;;  %v824_v35 = vstv %s2758_s4  ;;  %s2778_s4 = sld [smem:[#allocation5 + $0x18]] }
 0x47a   : > { %4790 = vst [vmem:[#allocation85_spill] sm:$0xff] %v3735_v27  ;;  %v837_v27 = vstv %s2759_s24  ;;  %v825_v34 = vmul.f32 %v824_v35, %v3722_v30  ;;  %v826_v39 = vmul.f32 %v824_v35, %v3287_v1  ;;  %s2776_s24 = sld [smem:[#allocation5 + $0x16]] }
 0x47b   : > { %4791 = vst [vmem:[#allocation86_spill] sm:$0xff] %v3737_v42  ;;  %v838_v37 = vmul.f32 %v837_v27, %v3722_v30 }
 0x47e   : > { %818 = vrot.lane.b32.xlu0 %v813_v50, %s2984_s6  ;;  %805 = vrot.lane.b32.xlu2 %v800_v41, %s2983_s27 }
 0x47f   : > { %792 = vrot.lane.b32.xlu1 %v787_v4, %s2971_s14 }
 0x480   : > { %v3745_v28 = vpop.permute.xlu0 %1852  ;;  %v3747_v18 = vpop.permute.xlu2 %1905 }
 0x481   : > { %4792 = vst [vmem:[#allocation87_spill] sm:$0xff] %v3745_v28  ;;  %v3749_v31 = vpop.permute.xlu1 %1690  ;;  %v850_v28 = vstv %s2760_s26  ;;  %s2779_s26 = sld [smem:[#allocation5 + $0x19]] }
 0x482   : > { %4793 = vst [vmem:[#allocation88_spill] sm:$0xff] %v3747_v18  ;;  %v852_v18 = vmul.f32 %v850_v28, %v3287_v1  ;;  %v851_v35 = vmul.f32 %v850_v28, %v3722_v30 }
 0x483   : > { %4794 = vst [vmem:[#allocation89_spill] sm:$0xff] %v3749_v31  ;;  %v839_v31 = vmul.f32 %v837_v27, %v3287_v1 }
 0x486   : > { %842 = vrot.lane.b32.xlu0 %v838_v37, %s2985_s8  ;;  %829 = vrot.lane.b32.xlu2 %v825_v34, %s2986_s9 }
 0x487   : > { %816 = vrot.lane.b32.xlu1 %v812_v33, %s2984_s6 }
 0x488   : > { %v3757_v41 = vpop.permute.xlu0 %1871  ;;  %v3759_v50 = vpop.permute.xlu2 %1924 }
 0x489   : > { %4795 = vst [vmem:[#allocation90_spill] sm:$0xff] %v3757_v41  ;;  %v3761_v4 = vpop.permute.xlu1 %1850  ;;  %v955_v41 = vstv %s2762_s28  ;;  %s2780_s28 = sld [smem:[#allocation5 + $0x1a]] }
 0x48a   : > { %4796 = vst [vmem:[#allocation91_spill] sm:$0xff] %v3759_v50  ;;  %v956_v50 = vmul.f32 %v955_v41, %v3722_v30  ;;  %v958_v27 = vmul.f32 %v955_v41, %v3301_v15  ;;  %v957_v28 = vmul.f32 %v955_v41, %v3287_v1 }
 0x48b   : > { %4797 = vst [vmem:[#allocation92_spill] sm:$0xff] %v3761_v4 }
 0x48e   : > { %857 = vrot.lane.b32.xlu0 %v852_v18, %s2987_s12  ;;  %844 = vrot.lane.b32.xlu2 %v839_v31, %s2985_s8 }
 0x48f   : > { %831 = vrot.lane.b32.xlu1 %v826_v39, %s2986_s9 }
 0x490   : > { %v3769_v37 = vpop.permute.xlu0 %1890  ;;  %v3771_v34 = vpop.permute.xlu2 %1943 }
 0x491   : > { %4798 = vst [vmem:[#allocation93_spill] sm:$0xff] %v3769_v37  ;;  %v3773_v33 = vpop.permute.xlu1 %1869  ;;  %v974_v37 = vstv %s2763_s29  ;;  %s2781_s29 = sld [smem:[#allocation5 + $0x1b]] }
 0x492   : > { %4799 = vst [vmem:[#allocation94_spill] sm:$0xff] %v3771_v34  ;;  %v975_v34 = vmul.f32 %v974_v37, %v3722_v30  ;;  %v976_v41 = vmul.f32 %v974_v37, %v3287_v1 }
 0x493   : > { %4800 = vst [vmem:[#allocation95_spill] sm:$0xff] %v3773_v33  ;;  %v977_v33 = vmul.f32 %v974_v37, %v3301_v15 }
 0x496   : > { %962 = vrot.lane.b32.xlu2 %v956_v50, %s2971_s14  ;;  %966 = vrot.lane.b32.xlu0 %v958_v27, %s2971_s14 }
 0x497   : > { %855 = vrot.lane.b32.xlu1 %v851_v35, %s2987_s12 }
 0x498   : > { %v3781_v18 = vpop.permute.xlu0 %1909  ;;  %v3783_v31 = vpop.permute.xlu2 %2122 }
 0x499   : > { %4801 = vst [vmem:[#allocation96_spill] sm:$0xff] %v3781_v18  ;;  %v3785_v39 = vpop.permute.xlu1 %1888  ;;  %v993_v18 = vstv %s2764_s30  ;;  %s2783_s30 = sld [smem:[#allocation5 + $0x1d]] }
 0x49a   : > { %4802 = vst [vmem:[#allocation97_spill] sm:$0xff] %v3783_v31  ;;  %v994_v31 = vmul.f32 %v993_v18, %v3722_v30  ;;  %v995_v37 = vmul.f32 %v993_v18, %v3287_v1 }
 0x49b   : > { %4803 = vst [vmem:[#allocation98_spill] sm:$0xff] %v3785_v39  ;;  %v996_v39 = vmul.f32 %v993_v18, %v3301_v15 }
 0x49e   : > { %981 = vrot.lane.b32.xlu2 %v975_v34, %s2983_s27  ;;  %985 = vrot.lane.b32.xlu0 %v977_v33, %s2983_s27 }
 0x49f   : > { %964 = vrot.lane.b32.xlu1 %v957_v28, %s2971_s14 }
 0x4a0   : > { %v3793_v50 = vpop.permute.xlu0 %1928  ;;  %v3795_v27 = vpop.permute.xlu2 %2360 }
 0x4a1   : > { %4804 = vst [vmem:[#allocation99_spill] sm:$0xff] %v3793_v50  ;;  %v3797_v35 = vpop.permute.xlu1 %1907  ;;  %v1012_v50 = vstv %s2765_s7  ;;  %s2784_s7 = sld [smem:[#allocation5 + $0x1e]] }
 0x4a2   : > { %4805 = vst [vmem:[#allocation100_spill] sm:$0xff] %v3795_v27  ;;  %v1013_v27 = vmul.f32 %v1012_v50, %v3722_v30  ;;  %v1014_v18 = vmul.f32 %v1012_v50, %v3287_v1 }
 0x4a3   : > { %4806 = vst [vmem:[#allocation101_spill] sm:$0xff] %v3797_v35  ;;  %v1015_v35 = vmul.f32 %v1012_v50, %v3301_v15 }
 0x4a6   : > { %1000 = vrot.lane.b32.xlu2 %v994_v31, %s2984_s6  ;;  %1004 = vrot.lane.b32.xlu0 %v996_v39, %s2984_s6 }
 0x4a7   : > { %983 = vrot.lane.b32.xlu1 %v976_v41, %s2983_s27 }
 0x4a8   : > { %v3805_v34 = vpop.permute.xlu0 %2105  ;;  %v3807_v33 = vpop.permute.xlu2 %2377 }
 0x4a9   : > { %4807 = vst [vmem:[#allocation102_spill] sm:$0xff] %v3805_v34  ;;  %v3809_v28 = vpop.permute.xlu1 %1926 }
 0x4aa   : > { %4808 = vst [vmem:[#allocation103_spill] sm:$0xff] %v3807_v33  ;;  %v1031_v33 = vstv %s2766_s10  ;;  %s2785_s10 = sld [smem:[#allocation5 + $0x1f]] }
 0x4ab   : > { %4809 = vst [vmem:[#allocation104_spill] sm:$0xff] %v3809_v28  ;;  %v1032_v34 = vmul.f32 %v1031_v33, %v3722_v30  ;;  %v1034_v28 = vmul.f32 %v1031_v33, %v3301_v15  ;;  %v1033_v50 = vmul.f32 %v1031_v33, %v3287_v1 }
 0x4ae   : > { %1019 = vrot.lane.b32.xlu2 %v1013_v27, %s2986_s9  ;;  %1023 = vrot.lane.b32.xlu0 %v1015_v35, %s2986_s9 }
 0x4af   : > { %1002 = vrot.lane.b32.xlu1 %v995_v37, %s2984_s6 }
 0x4b0   : > { %v3817_v31 = vpop.permute.xlu0 %2358  ;;  %v3819_v39 = vpop.permute.xlu2 %2162 }
 0x4b1   : > { %4810 = vst [vmem:[#allocation105_spill] sm:$0xff] %v3817_v31  ;;  %v3821_v41 = vpop.permute.xlu1 %2103 }
 0x4b2   : > { %4811 = vst [vmem:[#allocation106_spill] sm:$0xff] %v3819_v39 }
 0x4b3   : > { %4812 = vst [vmem:[#allocation107_spill] sm:$0xff] %v3821_v41  ;;  %v1050_v41 = vstv %s2767_s13  ;;  %s2786_s13 = sld [smem:[#allocation5 + $0x20]] }
 0x4b4   : > { %v1051_v39 = vmul.f32 %v1050_v41, %v3722_v30  ;;  %v1053_v31 = vmul.f32 %v1050_v41, %v3301_v15  ;;  %v1052_v33 = vmul.f32 %v1050_v41, %v3287_v1 }
 0x4b6   : > { %1038 = vrot.lane.b32.xlu2 %v1032_v34, %s2985_s8  ;;  %1042 = vrot.lane.b32.xlu0 %v1034_v28, %s2985_s8 }
 0x4b7   : > { %1021 = vrot.lane.b32.xlu1 %v1014_v18, %s2986_s9 }
 0x4b8   : > { %v3829_v27 = vpop.permute.xlu0 %2143  ;;  %v3831_v35 = vpop.permute.xlu2 %1945 }
 0x4b9   : > { %4813 = vst [vmem:[#allocation108_spill] sm:$0xff] %v3829_v27  ;;  %v3833_v37 = vpop.permute.xlu1 %2124  ;;  %v1210_v27 = vstv %s2769_s15  ;;  %s2787_s15 = sld [smem:[#allocation5 + $0x21]] }
 0x4ba   : > { %4814 = vst [vmem:[#allocation109_spill] sm:$0xff] %v3831_v35  ;;  %v1213_v35 = vmul.f32 %v1210_v27, %v3301_v15  ;;  %v1212_v41 = vmul.f32 %v1210_v27, %v3287_v1 }
 0x4bb   : > { %4815 = vst [vmem:[#allocation110_spill] sm:$0xff] %v3833_v37  ;;  %v1211_v37 = vmul.f32 %v1210_v27, %v3722_v30 }
 0x4be   : > { %1057 = vrot.lane.b32.xlu2 %v1051_v39, %s2987_s12  ;;  %1061 = vrot.lane.b32.xlu0 %v1053_v31, %s2987_s12 }
 0x4bf   : > { %1040 = vrot.lane.b32.xlu1 %v1033_v50, %s2985_s8 }
 0x4c0   : > { %v3841_v34 = vpop.permute.xlu0 %2160  ;;  %v3843_v28 = vpop.permute.xlu2 %2415 }
 0x4c1   : > { %4816 = vst [vmem:[#allocation111_spill] sm:$0xff] %v3841_v34  ;;  %v3845_v18 = vpop.permute.xlu1 %2141 }
 0x4c2   : > { %4817 = vst [vmem:[#allocation112_spill] sm:$0xff] %v3843_v28  ;;  %v1229_v28 = vstv %s2770_s16  ;;  %s2788_s16 = sld [smem:[#allocation5 + $0x22]] }
 0x4c3   : > { %4818 = vst [vmem:[#allocation113_spill] sm:$0xff] %v3845_v18  ;;  %v1230_v34 = vmul.f32 %v1229_v28, %v3722_v30  ;;  %v1232_v18 = vmul.f32 %v1229_v28, %v3301_v15  ;;  %v1231_v42 = vmul.f32 %v1229_v28, %v3287_v1 }
 0x4c6   : > { %1217 = vrot.lane.b32.xlu2 %v1211_v37, %s2971_s14  ;;  %1221 = vrot.lane.b32.xlu0 %v1213_v35, %s2971_s14 }
 0x4c7   : > { %1059 = vrot.lane.b32.xlu1 %v1052_v33, %s2987_s12 }
 0x4c8   : > { %v3853_v31 = vpop.permute.xlu0 %2398  ;;  %v3855_v39 = vpop.permute.xlu2 %2200 }
 0x4c9   : > { %4819 = vst [vmem:[#allocation114_spill] sm:$0xff] %v3853_v31  ;;  %v3857_v50 = vpop.permute.xlu1 %2379  ;;  %v1248_v31 = vstv %s2771_s17  ;;  %s2791_s17 = sld [smem:[#allocation5 + $0x25]] }
 0x4ca   : > { %4820 = vst [vmem:[#allocation115_spill] sm:$0xff] %v3855_v39  ;;  %v1251_v39 = vmul.f32 %v1248_v31, %v3301_v15  ;;  %v1250_v28 = vmul.f32 %v1248_v31, %v3287_v1 }
 0x4cb   : > { %4821 = vst [vmem:[#allocation116_spill] sm:$0xff] %v3857_v50  ;;  %v1249_v50 = vmul.f32 %v1248_v31, %v3722_v30  ;;  %v781_v31 = vmul.f32 %v4828_v38, %v3722_v30  ;;  %v1308_v38 = vmul.f32 %v1305_v26, %v3301_v15 }
 0x4ce   : > { %1236 = vrot.lane.b32.xlu2 %v1230_v34, %s2983_s27  ;;  %1240 = vrot.lane.b32.xlu0 %v1232_v18, %s2983_s27 }
 0x4cf   : > { %1219 = vrot.lane.b32.xlu1 %v1212_v41, %s2971_s14  ;;  %v1267_v41 = vstv %s2772_s19  ;;  %s2790_s19 = sld [smem:[#allocation5 + $0x24]] }
 0x4d0   : > { %v3865_v35 = vpop.permute.xlu0 %2181  ;;  %v791_v37 = vpop.permute.xlu2 %790 }
 0x4d1   : > { %4822 = vst [vmem:[#allocation117_spill] sm:$0xff] %v3865_v35  ;;  %v3867_v33 = vpop.permute.xlu1 %2396  ;;  %v1270_v35 = vmul.f32 %v1267_v41, %v3301_v15 }
 0x4d2   : > { %4823 = vst [vmem:[#allocation118_spill] sm:$0xff] %v3867_v33  ;;  %v1268_v33 = vmul.f32 %v1267_v41, %v3722_v30 }
 0x4d6   : > { %1255 = vrot.lane.b32.xlu2 %v1249_v50, %s2984_s6  ;;  %1259 = vrot.lane.b32.xlu0 %v1251_v39, %s2984_s6 }
 0x4d7   : > { %1238 = vrot.lane.b32.xlu1 %v1231_v42, %s2983_s27 }
 0x4d8   : > { %v3875_v27 = vpop.permute.xlu0 %2198  ;;  %v806_v34 = vpop.permute.xlu2 %805 }
 0x4d9   : > { %4824 = vst [vmem:[#allocation119_spill] sm:$0xff] %v3875_v27  ;;  %v3877_v18 = vpop.permute.xlu1 %2179  ;;  %v1286_v27 = vstv %s2773_s22  ;;  %s2797_s22 = sld [smem:[#allocation5 + $0x2b]] }
 0x4da   : > { %4825 = vst [vmem:[#allocation120_spill] sm:$0xff] %v3877_v18  ;;  %v1287_v18 = vmul.f32 %v1286_v27, %v3722_v30  ;;  %v1289_v4 = vmul.f32 %v1286_v27, %v3301_v15 }
 0x4de   : > { %1274 = vrot.lane.b32.xlu2 %v1268_v33, %s2986_s9  ;;  %1278 = vrot.lane.b32.xlu0 %v1270_v35, %s2986_s9  ;;  %v1269_v33 = vmul.f32 %v1267_v41, %v3287_v1  ;;  %v796_v35 = vadd.f32 %v791_v37, %v781_v31  ;;  %v1288_v1 = vmul.f32 %v3902_v23, %v1286_v27 }
 0x4df   : > { %1257 = vrot.lane.b32.xlu1 %v1250_v28, %s2984_s6 }
 0x4e0   : > { %v3885_v42 = vpop.permute.xlu0 %2436  ;;  %v830_v39 = vpop.permute.xlu2 %829 }
 0x4e1   : > { %4826 = vst [vmem:[#allocation121_spill] sm:$0xff] %v3885_v42  ;;  %v3887_v50 = vpop.permute.xlu1 %2417 }
 0x4e2   : > { %4827 = vst [vmem:[#allocation122_spill] sm:$0xff] %v3887_v50 }
 0x4e6   : > { %1293 = vrot.lane.b32.xlu2 %v1287_v18, %s2985_s8  ;;  %1297 = vrot.lane.b32.xlu0 %v1289_v4, %s2985_s8  ;;  %v949_v4 = vmul.f32 %v3307_v17, %v3722_v30 }
 0x4e7   : > { %1276 = vrot.lane.b32.xlu1 %v1269_v33, %s2986_s9  ;;  %v1465_v33 = vstv %s2776_s24  ;;  %s2792_s24 = sld [smem:[#allocation5 + $0x26]] }
 0x4e8   : > { %v804_v28 = vpop.permute.xlu0 %803  ;;  %v845_v42 = vpop.permute.xlu2 %844  ;;  %v1466_v27 = vmul.f32 %v1465_v33, %v3722_v30 }
 0x4e9   : > { %v809_v50 = vadd.f32 %v804_v28, %v796_v35  ;;  %v3898_v29 = vpop.permute.xlu1 %2434  ;;  %v3912_v28 = vld [vmem:[#allocation2 + $0x10] sm:$0x3f] }
 0x4ea   : > { %4829 = vst [vmem:[#allocation123_spill] sm:$0xff] %v3898_v29 }
 0x4ee   : > { %1312 = vrot.lane.b32.xlu2 %v1306_v24, %s2987_s12  ;;  %1316 = vrot.lane.b32.xlu0 %v1308_v38, %s2987_s12  ;;  %v1468_v24 = vmul.f32 %v3912_v28, %v1465_v33  ;;  %v1307_v38 = vmul.f32 %v3902_v23, %v1305_v26  ;;  %v1467_v26 = vmul.f32 %v3902_v23, %v1465_v33 }
 0x4ef   : > { %1295 = vrot.lane.b32.xlu1 %v1288_v1, %s2985_s8 }
 0x4f0   : > { %v819_v37 = vpop.permute.xlu0 %818  ;;  %v963_v18 = vpop.permute.xlu2 %962 }
 0x4f1   : > { %v971_v41 = vadd.f32 %v963_v18, %v949_v4  ;;  %v793_v31 = vpop.permute.xlu1 %792 }
 0x4f2   : > { %v797_v15 = vadd.f32 %v793_v31, %v3297_v8 }
 0x4f4   : > { %v810_v35 = vadd.f32 %v806_v34, %v797_v15  ;;  %v1484_v34 = vstv %s2777_s18  ;;  %s2793_s18 = sld [smem:[#allocation5 + $0x27]] }
 0x4f5   : > { %v1485_v43 = vmul.f32 %v1484_v34, %v3722_v30  ;;  %v1487_v57 = vmul.f32 %v3912_v28, %v1484_v34  ;;  %v1486_v33 = vmul.f32 %v3902_v23, %v1484_v34 }
 0x4f6   : > { %1472 = vrot.lane.b32.xlu2 %v1466_v27, %s2971_s14  ;;  %1476 = vrot.lane.b32.xlu0 %v1468_v24, %s2971_s14  ;;  %v823_v1 = vadd.f32 %v819_v37, %v810_v35 }
 0x4f7   : > { %1314 = vrot.lane.b32.xlu1 %v1307_v38, %s2987_s12  ;;  %v1503_v38 = vstv %s2778_s4  ;;  %s2794_s4 = sld [smem:[#allocation5 + $0x28]] }
 0x4f8   : > { %v843_v4 = vpop.permute.xlu0 %842  ;;  %v982_v18 = vpop.permute.xlu2 %981 }
 0x4f9   : > { %v990_v29 = vadd.f32 %v982_v18, %v971_v41  ;;  %v817_v8 = vpop.permute.xlu1 %816  ;;  %v1504_v18 = vmul.f32 %v1503_v38, %v3722_v30 }
 0x4fa   : > { %v822_v31 = vadd.f32 %v817_v8, %v809_v50  ;;  %v1506_v8 = vmul.f32 %v3912_v28, %v1503_v38 }
 0x4fc   : > { %v835_v15 = vadd.f32 %v830_v39, %v822_v31 }
 0x4fe   : > { %1491 = vrot.lane.b32.xlu2 %v1485_v43, %s2983_s27  ;;  %1495 = vrot.lane.b32.xlu0 %v1487_v57, %s2983_s27  ;;  %v848_v37 = vadd.f32 %v843_v4, %v835_v15  ;;  %v1522_v15 = vstv %s2779_s26  ;;  %s2800_s26 = sld [smem:[#allocation5 + $0x2e]] }
 0x4ff   : > { %1474 = vrot.lane.b32.xlu1 %v1467_v26, %s2971_s14  ;;  %v1523_v34 = vmul.f32 %v1522_v15, %v3722_v30 }
 0x500   : > { %v858_v35 = vpop.permute.xlu0 %857  ;;  %v1001_v41 = vpop.permute.xlu2 %1000 }
 0x501   : > { %v1009_v27 = vadd.f32 %v1001_v41, %v990_v29  ;;  %v832_v24 = vpop.permute.xlu1 %831  ;;  %v1505_v41 = vmul.f32 %v3902_v23, %v1503_v38 }
 0x502   : > { %v836_v39 = vadd.f32 %v832_v24, %v823_v1 }
 0x504   : > { %v849_v50 = vadd.f32 %v845_v42, %v836_v39 }
 0x506   : > { %v862_v43 = vadd.f32 %v858_v35, %v849_v50  ;;  %1510 = vrot.lane.b32.xlu2 %v1504_v18, %s2984_s6  ;;  %1514 = vrot.lane.b32.xlu0 %v1506_v8, %s2984_s6  ;;  %v1525_v35 = vmul.f32 %v3912_v28, %v1522_v15  ;;  %v1541_v50 = vstv %s2780_s28  ;;  %s2824_s28 = sld [smem:[#allocation5 + $0x46]] }
 0x507   : > { %1493 = vrot.lane.b32.xlu1 %v1486_v33, %s2983_s27  ;;  %v1542_v8 = vmul.f32 %v1541_v50, %v3722_v30  ;;  %v1544_v38 = vmul.f32 %v3912_v28, %v1541_v50  ;;  %v1524_v33 = vmul.f32 %v3902_v23, %v1522_v15  ;;  %v1543_v15 = vmul.f32 %v3902_v23, %v1541_v50 }
 0x508   : > { %v1020_v57 = vpop.permute.xlu2 %1019  ;;  %v967_v29 = vpop.permute.xlu0 %966  ;;  %v3932_v4 = vadd.f32 %v3258_v46, %v862_v43 }
 0x509   : > { %v1028_v1 = vadd.f32 %v1020_v57, %v1009_v27  ;;  %v973_v42 = vadd.f32 %v967_v29, %v3311_v10  ;;  %v856_v31 = vpop.permute.xlu1 %855  ;;  %v950_v10 = vmul.f32 %v3902_v23, %v3307_v17 }
 0x50a   : > { %v3935_v26 = vadd.f32 %v856_v31, %v848_v37 }
 0x50e   : > { %1529 = vrot.lane.b32.xlu2 %v1523_v34, %s2986_s9  ;;  %1533 = vrot.lane.b32.xlu0 %v1525_v35, %s2986_s9 }
 0x50f   : > { %1512 = vrot.lane.b32.xlu1 %v1505_v41, %s2984_s6  ;;  %v1204_v41 = vmul.f32 %v3313_v19, %v3722_v30 }
 0x510   : > { %v1039_v46 = vpop.permute.xlu2 %1038  ;;  %v986_v27 = vpop.permute.xlu0 %985 }
 0x511   : > { %v1047_v24 = vadd.f32 %v1039_v46, %v1028_v1  ;;  %v992_v37 = vadd.f32 %v986_v27, %v973_v42  ;;  %v965_v39 = vpop.permute.xlu1 %964  ;;  %v1560_v42 = vstv %s2781_s29  ;;  %s2993_s29 = smov 96  }
 0x512   : > { %v972_v18 = vadd.f32 %v965_v39, %v950_v10  ;;  %v1561_v34 = vmul.f32 %v1560_v42, %v3722_v30  ;;  %v1563_v35 = vmul.f32 %v3912_v28, %v1560_v42  ;;  %v1720_v39 = vstv %s2783_s30  ;;  %s2994_s30 = smov 112  }
 0x513   : > { %v1723_v50 = vmul.f32 %v3912_v28, %v1720_v39 }
 0x516   : > { %1548 = vrot.lane.b32.xlu2 %v1542_v8, %s2985_s8  ;;  %1552 = vrot.lane.b32.xlu0 %v1544_v38, %s2985_s8  ;;  %v1721_v8 = vmul.f32 %v1720_v39, %v3722_v30  ;;  %v1562_v38 = vmul.f32 %v3902_v23, %v1560_v42  ;;  %v1722_v42 = vmul.f32 %v3902_v23, %v1720_v39 }
 0x517   : > { %1531 = vrot.lane.b32.xlu1 %v1524_v33, %s2986_s9 }
 0x518   : > { %v1058_v43 = vpop.permute.xlu2 %1057  ;;  %v1005_v17 = vpop.permute.xlu0 %1004 }
 0x519   : > { %v3951_v57 = vadd.f32 %v1058_v43, %v1047_v24  ;;  %v1011_v29 = vadd.f32 %v1005_v17, %v992_v37  ;;  %v984_v1 = vpop.permute.xlu1 %983 }
 0x51a   : > { %v991_v31 = vadd.f32 %v984_v1, %v972_v18 }
 0x51e   : > { %1567 = vrot.lane.b32.xlu2 %v1561_v34, %s2987_s12  ;;  %1571 = vrot.lane.b32.xlu0 %v1563_v35, %s2987_s12  ;;  %v1739_v34 = vstv %s2784_s7 }
 0x51f   : > { %1550 = vrot.lane.b32.xlu1 %v1543_v15, %s2985_s8  ;;  %v1740_v35 = vmul.f32 %v1739_v34, %v3722_v30  ;;  %v1742_v15 = vmul.f32 %v3912_v28, %v1739_v34 }
 0x520   : > { %v1218_v46 = vpop.permute.xlu2 %1217  ;;  %v1024_v27 = vpop.permute.xlu0 %1023 }
 0x521   : > { %v1226_v10 = vadd.f32 %v1218_v46, %v1204_v41  ;;  %v1030_v24 = vadd.f32 %v1024_v27, %v1011_v29  ;;  %v1003_v37 = vpop.permute.xlu1 %1002 }
 0x522   : > { %v1010_v18 = vadd.f32 %v1003_v37, %v991_v31  ;;  %v1758_v37 = vstv %s2785_s10 }
 0x523   : > { %v1761_v39 = vmul.f32 %v3912_v28, %v1758_v37 }
 0x526   : > { %1727 = vrot.lane.b32.xlu2 %v1721_v8, %s2971_s14  ;;  %1731 = vrot.lane.b32.xlu0 %v1723_v50, %s2971_s14  ;;  %v1759_v50 = vmul.f32 %v1758_v37, %v3722_v30 }
 0x527   : > { %1569 = vrot.lane.b32.xlu1 %v1562_v38, %s2987_s12  ;;  %v1741_v38 = vmul.f32 %v3902_v23, %v1739_v34 }
 0x528   : > { %v1237_v33 = vpop.permute.xlu2 %1236  ;;  %v1043_v43 = vpop.permute.xlu0 %1042 }
 0x529   : > { %v1245_v17 = vadd.f32 %v1237_v33, %v1226_v10  ;;  %v1049_v29 = vadd.f32 %v1043_v43, %v1030_v24  ;;  %v1022_v1 = vpop.permute.xlu1 %1021 }
 0x52a   : > { %v1029_v31 = vadd.f32 %v1022_v1, %v1010_v18 }
 0x52e   : > { %1746 = vrot.lane.b32.xlu2 %v1740_v35, %s2983_s27  ;;  %1750 = vrot.lane.b32.xlu0 %v1742_v15, %s2983_s27 }
 0x52f   : > { %1729 = vrot.lane.b32.xlu1 %v1722_v42, %s2971_s14 }
 0x530   : > { %v1256_v41 = vpop.permute.xlu2 %1255  ;;  %v1062_v46 = vpop.permute.xlu0 %1061 }
 0x531   : > { %v1264_v27 = vadd.f32 %v1256_v41, %v1245_v17  ;;  %v1068_v10 = vadd.f32 %v1062_v46, %v1049_v29  ;;  %v1041_v24 = vpop.permute.xlu1 %1040  ;;  %v1760_v46 = vmul.f32 %v3902_v23, %v1758_v37 }
 0x532   : > { %v1048_v18 = vadd.f32 %v1041_v24, %v1029_v31  ;;  %v3983_v31 = vld [vmem:[#allocation2 + $0x20] sm:$0xff] }
 0x533   : > { %v3974_v8 = vadd.f32 %v3265_v49, %v1068_v10  ;;  %v1777_v49 = vstv %s2786_s13  ;;  %v1071_v35 = vmul.f32 %v3983_v31, %v3261_v47  ;;  %v1205_v10 = vmul.f32 %v3902_v23, %v3313_v19  ;;  %s239_s13 = scalar_lea.vmem %s4667_s5, %s2856_s25 }
 0x534   : > { %v1778_v42 = vmul.f32 %v1777_v49, %v3722_v30  ;;  %v1780_v41 = vmul.f32 %v3912_v28, %v1777_v49 }
 0x536   : > { %1765 = vrot.lane.b32.xlu2 %v1759_v50, %s2984_s6  ;;  %1769 = vrot.lane.b32.xlu0 %v1761_v39, %s2984_s6  ;;  %v1796_v39 = vstv %s2787_s15 }
 0x537   : > { %1748 = vrot.lane.b32.xlu1 %v1741_v38, %s2983_s27  ;;  %v1799_v37 = vmul.f32 %v3912_v28, %v1796_v39 }
 0x538   : > { %v1275_v33 = vpop.permute.xlu2 %1274  ;;  %v1222_v43 = vpop.permute.xlu0 %1221 }
 0x539   : > { %v1283_v17 = vadd.f32 %v1275_v33, %v1264_v27  ;;  %v1228_v29 = vadd.f32 %v1222_v43, %v3317_v21  ;;  %v1060_v1 = vpop.permute.xlu1 %1059  ;;  %v1797_v33 = vmul.f32 %v1796_v39, %v3722_v30  ;;  %v1779_v43 = vmul.f32 %v3902_v23, %v1777_v49 }
 0x53a   : > { %v1067_v34 = vadd.f32 %v1060_v1, %v1048_v18 }
 0x53c   : > { %v3987_v15 = vadd.f32 %v1071_v35, %v1067_v34  ;;  %v1815_v34 = vstv %s2788_s16 }
 0x53d   : > { %v1818_v49 = vmul.f32 %v3912_v28, %v1815_v34 }
 0x53e   : > { %1784 = vrot.lane.b32.xlu2 %v1778_v42, %s2986_s9  ;;  %1788 = vrot.lane.b32.xlu0 %v1780_v41, %s2986_s9  ;;  %v1816_v41 = vmul.f32 %v1815_v34, %v3722_v30 }
 0x53f   : > { %1767 = vrot.lane.b32.xlu1 %v1760_v46, %s2984_s6  ;;  %v1798_v46 = vmul.f32 %v3902_v23, %v1796_v39 }
 0x540   : > { %v1294_v21 = vpop.permute.xlu2 %1293  ;;  %v1241_v27 = vpop.permute.xlu0 %1240 }
 0x541   : > { %v1302_v24 = vadd.f32 %v1294_v21, %v1283_v17  ;;  %v1247_v18 = vadd.f32 %v1241_v27, %v1228_v29  ;;  %v1220_v50 = vpop.permute.xlu1 %1219  ;;  %v1459_v21 = vmul.f32 %v3319_v22, %v3722_v30 }
 0x542   : > { %v1227_v38 = vadd.f32 %v1220_v50, %v1205_v10 }
 0x546   : > { %1803 = vrot.lane.b32.xlu2 %v1797_v33, %s2985_s8  ;;  %1807 = vrot.lane.b32.xlu0 %v1799_v37, %s2985_s8  ;;  %v4015_v37 = vstv %s2790_s19 }
 0x547   : > { %1786 = vrot.lane.b32.xlu1 %v1779_v43, %s2986_s9  ;;  %v1977_v43 = vmul.f32 %v3902_v23, %v4015_v37 }
 0x548   : > { %v1313_v1 = vpop.permute.xlu2 %1312  ;;  %v1260_v19 = vpop.permute.xlu0 %1259 }
 0x549   : > { %v4003_v17 = vadd.f32 %v1313_v1, %v1302_v24  ;;  %v1266_v29 = vadd.f32 %v1260_v19, %v1247_v18  ;;  %v1239_v35 = vpop.permute.xlu1 %1238  ;;  %v1817_v1 = vmul.f32 %v3902_v23, %v1815_v34 }
 0x54a   : > { %v1246_v42 = vadd.f32 %v1239_v35, %v1227_v38  ;;  %v4013_v38 = vstv %s2791_s17 }
 0x54b   : > { %v1995_v39 = vmul.f32 %v4013_v38, %v3722_v30 }
 0x54e   : > { %1822 = vrot.lane.b32.xlu2 %v1816_v41, %s2987_s12  ;;  %1826 = vrot.lane.b32.xlu0 %v1818_v49, %s2987_s12  ;;  %v4025_v49 = vstv %s2797_s22 }
 0x54f   : > { %1805 = vrot.lane.b32.xlu1 %v1798_v46, %s2985_s8  ;;  %v2231_v34 = vmul.f32 %v4025_v49, %v3722_v30 }
 0x550   : > { %v1473_v27 = vpop.permute.xlu2 %1472  ;;  %v1279_v10 = vpop.permute.xlu0 %1278 }
 0x551   : > { %v1481_v24 = vadd.f32 %v1473_v27, %v1459_v21  ;;  %v1285_v18 = vadd.f32 %v1279_v10, %v1266_v29  ;;  %v1258_v50 = vpop.permute.xlu1 %1257  ;;  %v2232_v21 = vmul.f32 %v3902_v23, %v4025_v49  ;;  %v1976_v27 = vmul.f32 %v4015_v37, %v3722_v30 }
 0x552   : > { %v1265_v33 = vadd.f32 %v1258_v50, %v1246_v42 }
 0x556   : > { %2001 = vrot.lane.b32.xlu2 %v1995_v39, %s2983_s27  ;;  %1984 = vrot.lane.b32.xlu0 %v1977_v43, %s2971_s14  ;;  %v4036_v39 = vstv %s2798_s23 }
 0x557   : > { %1824 = vrot.lane.b32.xlu1 %v1817_v1, %s2987_s12  ;;  %v4038_v1 = vld [vmem:[#allocation2 + $0x18] sm:$0xff] }
 0x558   : > { %v1492_v19 = vpop.permute.xlu2 %1491  ;;  %v1298_v29 = vpop.permute.xlu0 %1297 }
 0x559   : > { %v1500_v35 = vadd.f32 %v1492_v19, %v1481_v24  ;;  %v1304_v42 = vadd.f32 %v1298_v29, %v1285_v18  ;;  %v1277_v41 = vpop.permute.xlu1 %1276  ;;  %v1070_v19 = vmul.f32 %v4038_v1, %v3261_v47  ;;  %v1093_v47 = vadd.f32 %v3495_v14, %v3987_v15 }
 0x55a   : > { %v1284_v46 = vadd.f32 %v1277_v41, %v1265_v33  ;;  %v4045_v41 = vstv %s2792_s24  ;;  %v1326_v15 = vmul.f32 %v3983_v31, %v3271_v54 }
 0x55e   : > { %2239 = vrot.lane.b32.xlu2 %v2232_v21, %s2971_s14  ;;  %2237 = vrot.lane.b32.xlu0 %v2231_v34, %s2971_s14  ;;  %v2250_v21 = vmul.f32 %v4036_v39, %v3722_v30 }
 0x55f   : > { %1982 = vrot.lane.b32.xlu1 %v1976_v27, %s2971_s14 }
 0x560   : > { %v1511_v10 = vpop.permute.xlu2 %1510  ;;  %v1317_v24 = vpop.permute.xlu0 %1316 }
 0x561   : > { %v1519_v18 = vadd.f32 %v1511_v10, %v1500_v35  ;;  %v1323_v50 = vadd.f32 %v1317_v24, %v1304_v42  ;;  %v1296_v33 = vpop.permute.xlu1 %1295  ;;  %v2015_v35 = vmul.f32 %v3902_v23, %v4045_v41  ;;  %v1073_v42 = vadd.f32 %v1070_v19, %v3951_v57 }
 0x562   : > { %v1303_v43 = vadd.f32 %v1296_v33, %v1284_v46  ;;  %v1996_v46 = vmul.f32 %v3902_v23, %v4013_v38  ;;  %v4062_v24 = vstv %s2793_s18 }
 0x563   : > { %v4043_v29 = vadd.f32 %v3276_v56, %v1323_v50  ;;  %v4830_v56 = vstv %s3240_s11  ;;  %v1092_v57 = vadd.f32 %v3445_v12, %v1073_v42  ;;  %v1094_v50 = vadd.f32 %v3479_v45, %v3974_v8  ;;  %s2799_s11 = sld [smem:[#allocation5 + $0x2d]] }
 0x564   : > { %v864_v34 = vmul.f32 %v4038_v1, %v4830_v56  ;;  %v2034_v12 = vmul.f32 %v3902_v23, %v4062_v24  ;;  %v2033_v45 = vmul.f32 %v4062_v24, %v3722_v30 }
 0x565   : > { %v1113_v8 = vadd.f32 %v3491_v58, %v1094_v50  ;;  %v1460_v58 = vmul.f32 %v3902_v23, %v3319_v22 }
 0x566   : > { %2256 = vrot.lane.b32.xlu2 %v2250_v21, %s2983_s27  ;;  %2022 = vrot.lane.b32.xlu0 %v2015_v35, %s2984_s6  ;;  %v866_v14 = vadd.f32 %v864_v34, %v3935_v26  ;;  %v2014_v26 = vmul.f32 %v4045_v41, %v3722_v30 }
 0x567   : > { %2003 = vrot.lane.b32.xlu1 %v1996_v46, %s2983_s27  ;;  %v1112_v46 = vadd.f32 %v3507_v2, %v1093_v47  ;;  %v4091_v47 = vstv %s2794_s4 }
 0x568   : > { %v1530_v27 = vpop.permute.xlu2 %1529  ;;  %v1477_v10 = vpop.permute.xlu0 %1476  ;;  %v879_v2 = vadd.f32 %v3379_v55, %v866_v14  ;;  %v1132_v55 = vadd.f32 %v3503_v61, %v1113_v8  ;;  %v2052_v22 = vmul.f32 %v4091_v47, %v3722_v30 }
 0x569   : > { %v1538_v33 = vadd.f32 %v1530_v27, %v1519_v18  ;;  %v1483_v19 = vadd.f32 %v1477_v10, %v3325_v25  ;;  %v1315_v21 = vpop.permute.xlu1 %1314  ;;  %v1111_v25 = vadd.f32 %v3457_v59, %v1092_v57  ;;  %v880_v18 = vadd.f32 %v3447_v13, %v3932_v4 }
 0x56a   : > { %v1322_v35 = vadd.f32 %v1315_v21, %v1303_v43  ;;  %v1131_v43 = vadd.f32 %v3519_v5, %v1112_v46  ;;  %v892_v5 = vadd.f32 %v3433_v52, %v879_v2  ;;  %v4098_v21 = vstv %s2799_s11 }
 0x56b   : > { %v1130_v13 = vadd.f32 %v3469_v44, %v1111_v25  ;;  %v893_v10 = vadd.f32 %v3387_v0, %v880_v18  ;;  %v2270_v44 = vmul.f32 %v3902_v23, %v4098_v21  ;;  %v2251_v0 = vmul.f32 %v3902_v23, %v4036_v39 }
 0x56c   : > { %v4072_v56 = vadd.f32 %v1326_v15, %v1322_v35  ;;  %v1150_v50 = vadd.f32 %v3531_v62, %v1131_v43  ;;  %v2269_v18 = vmul.f32 %v4098_v21, %v3722_v30  ;;  %v1714_v2 = vmul.f32 %v3358_v40, %v3722_v30 }
 0x56d   : > { %v1149_v61 = vadd.f32 %v3481_v11, %v1130_v13  ;;  %v906_v52 = vadd.f32 %v3443_v6, %v893_v10  ;;  %v4114_v11 = vstv %s2800_s26 }
 0x56e   : > { %2041 = vrot.lane.b32.xlu2 %v2034_v12, %s2986_s9  ;;  %2039 = vrot.lane.b32.xlu0 %v2033_v45, %s2986_s9  ;;  %v1169_v62 = vadd.f32 %v3543_v3, %v1150_v50  ;;  %v2289_v8 = vmul.f32 %v3902_v23, %v4114_v11  ;;  %v4834_v50 = vld [vmem:[#allocation26_spill] sm:$0xff] }
 0x56f   : > { %2020 = vrot.lane.b32.xlu1 %v2014_v26, %s2984_s6  ;;  %v919_v12 = vadd.f32 %v3471_v20, %v906_v52  ;;  %v2288_v26 = vmul.f32 %v4114_v11, %v3722_v30 }
 0x570   : > { %v1549_v42 = vpop.permute.xlu2 %1548  ;;  %v1496_v59 = vpop.permute.xlu0 %1495  ;;  %v1188_v3 = vadd.f32 %v3555_v36, %v1169_v62 }
 0x571   : > { %v1557_v4 = vadd.f32 %v1549_v42, %v1538_v33  ;;  %v1502_v34 = vadd.f32 %v1496_v59, %v1483_v19  ;;  %v1475_v27 = vpop.permute.xlu1 %1474  ;;  %v1151_v33 = vadd.f32 %v3515_v60, %v1132_v55  ;;  %v905_v19 = vadd.f32 %v3459_v7, %v892_v5  ;;  %v4833_v5 = vld [vmem:[#allocation25_spill] sm:$0xff] }
 0x572   : > { %v1482_v57 = vadd.f32 %v1475_v27, %v1460_v58  ;;  %v1168_v60 = vadd.f32 %v3493_v63, %v1149_v61  ;;  %v1195_v36 = vrot.slane %v1188_v3, 1 }
 0x573   : > { %v1170_v35 = vadd.f32 %v3527_v48, %v1151_v33  ;;  %v918_v45 = vadd.f32 %v3395_v16, %v905_v19  ;;  %v932_v16 = vadd.f32 %v3435_v53, %v919_v12  ;;  %v2053_v33 = vmul.f32 %v3902_v23, %v4091_v47 }
 0x574   : > { %v1187_v63 = vadd.f32 %v3505_v9, %v1168_v60  ;;  %v4164_v12 = vstv %s2824_s28 }
 0x575   : > { %v1189_v48 = vadd.f32 %v3539_v32, %v1170_v35  ;;  %v931_v20 = vadd.f32 %v3455_v51, %v918_v45  ;;  %v4831_v51 = vld [vmem:[#allocation36_spill] sm:$0xff]  ;;  %v4155_v35 = vld [vmem:[#allocation2] sm:$0xff] }
 0x576   : > { %2058 = vrot.lane.b32.xlu2 %v2052_v22, %s2985_s8  ;;  %2277 = vrot.lane.b32.xlu0 %v2270_v44, %s2984_s6  ;;  %v1194_v32 = vrot.slane %v1187_v63, 1  ;;  %v2072_v22 = vmul.f32 %v3902_v23, %v4834_v50 }
 0x577   : > { %2258 = vrot.lane.b32.xlu1 %v2251_v0, %s2983_s27  ;;  %v1197_v42 = vrot.slane %v1189_v48, 1  ;;  %v944_v55 = vadd.f32 %v4831_v51, %v931_v20  ;;  %v1325_v20 = vmul.f32 %v4038_v1, %v3271_v54  ;;  %v4839_v51 = vld [vmem:[#allocation37_spill] sm:$0xff] }
 0x578   : > { %v1568_v14 = vpop.permute.xlu2 %1567  ;;  %v1515_v15 = vpop.permute.xlu0 %1514  ;;  %v1196_v53 = vsel %vm1193_vm10, %v1194_v32, %v1195_v36 }
 0x579   : > { %v4118_v46 = vadd.f32 %v1568_v14, %v1557_v4  ;;  %v1521_v6 = vadd.f32 %v1515_v15, %v1502_v34  ;;  %v1494_v7 = vpop.permute.xlu1 %1493  ;;  %v4832_v34 = vld [vmem:[#allocation35_spill] sm:$0xff]  ;;  %v1198_v10 = vsel %vm1193_vm10, %v1195_v36, %v1197_v42  ;;  %v4144_v44 = vadd.f32 %v1196_v53, %v944_v55  ;;  %v4836_v36 = vld [vmem:[#allocation17_spill] sm:$0xff] }
 0x57a   : > { %v1501_v25 = vadd.f32 %v1494_v7, %v1482_v57  ;;  %v945_v27 = vadd.f32 %v4832_v34, %v932_v16  ;;  %v2307_v57 = vmul.f32 %v4833_v5, %v3722_v30  ;;  %v4835_v15 = vld [vmem:[#allocation27_spill] sm:$0xff]  ;;  %v2071_v7 = vmul.f32 %v4155_v35, %v4834_v50 }
 0x57b   : > { %v2327_v60 = vmul.f32 %v3902_v23, %v4835_v15  ;;  %v1328_v32 = vadd.f32 %v1325_v20, %v4003_v17  ;;  %v2308_v42 = vmul.f32 %v3902_v23, %v4833_v5  ;;  %v1581_v5 = vmul.f32 %v3983_v31, %v4164_v12  ;;  %v4842_v50 = vld [vmem:[#allocation47_spill] sm:$0xff] }
 0x57c   : > { %v4146_v61 = vadd.f32 %v1198_v10, %v945_v27  ;;  %v4841_v27 = vld [vmem:[#allocation24_spill] sm:$0xff] }
 0x57d   : > { %v1347_v55 = vadd.f32 %v4839_v51, %v1328_v32  ;;  %v4851_v32 = vld [vmem:[#allocation63_spill] sm:$0xff]  ;;  %v4855_v51 = vld [vmem:[#allocation53_spill] sm:$0xff] }
 0x57e   : > { %2296 = vrot.lane.b32.xlu2 %v2289_v8, %s2986_s9  ;;  %2294 = vrot.lane.b32.xlu0 %v2288_v26, %s2986_s9  ;;  %v4166_v8 = vld [vmem:[#allocation2 + $0x28] sm:$0x3f] }
 0x57f   : > { %2275 = vrot.lane.b32.xlu1 %v2269_v18, %s2984_s6  ;;  %v1582_v26 = vmul.f32 %v4166_v8, %v4164_v12 }
 0x580   : > { %v1728_v9 = vpop.permute.xlu2 %1727  ;;  %v1534_v43 = vpop.permute.xlu0 %1533 }
 0x581   : > { %v1736_v59 = vadd.f32 %v1728_v9, %v1714_v2  ;;  %v1540_v58 = vadd.f32 %v1534_v43, %v1521_v6  ;;  %v1513_v13 = vpop.permute.xlu1 %1512  ;;  %v2326_v6 = vmul.f32 %v4155_v35, %v4835_v15  ;;  %v2447_v2 = vmul.f32 %v4038_v1, %v4836_v36  ;;  %v4837_v9 = vld [vmem:[#allocation49_spill] sm:$0xff] }
 0x582   : > { %v1520_v4 = vadd.f32 %v1513_v13, %v1501_v25  ;;  %v2099_v43 = vmul.f32 %v4166_v8, %v4837_v9  ;;  %v2448_v15 = vmul.f32 %v3983_v31, %v4836_v36  ;;  %v4850_v9 = vld [vmem:[#allocation57_spill] sm:$0xff] }
 0x586   : > { %2313 = vrot.lane.b32.xlu2 %v2307_v57, %s2985_s8  ;;  %2079 = vrot.lane.b32.xlu0 %v2072_v22, %s2987_s12 }
 0x587   : > { %2060 = vrot.lane.b32.xlu1 %v2053_v33, %s2985_s8  ;;  %v4843_v33 = vld [vmem:[#allocation54_spill] sm:$0xff] }
 0x588   : > { %v1747_v0 = vpop.permute.xlu2 %1746  ;;  %v1553_v52 = vpop.permute.xlu0 %1552 }
 0x589   : > { %v1755_v30 = vadd.f32 %v1747_v0, %v1736_v59  ;;  %v1559_v19 = vadd.f32 %v1553_v52, %v1540_v58  ;;  %v1532_v62 = vpop.permute.xlu1 %1531  ;;  %v4838_v59 = vld [vmem:[#allocation44_spill] sm:$0xff]  ;;  %v2118_v0 = vmul.f32 %v4166_v8, %v4843_v33  ;;  %v4844_v52 = vld [vmem:[#allocation58_spill] sm:$0xff] }
 0x58a   : > { %v1539_v14 = vadd.f32 %v1532_v62, %v1520_v4  ;;  %v1348_v54 = vadd.f32 %v4838_v59, %v4072_v56  ;;  %v4840_v4 = vld [vmem:[#allocation40_spill] sm:$0xff]  ;;  %v4846_v62 = vld [vmem:[#allocation42_spill] sm:$0xff]  ;;  %v4852_v59 = vld [vmem:[#allocation67_spill] sm:$0xff] }
 0x58b   : > { %v1349_v34 = vadd.f32 %v4840_v4, %v4043_v29  ;;  %v4856_v4 = vld [vmem:[#allocation61_spill] sm:$0xff] }
 0x58c   : > { %v1367_v22 = vadd.f32 %v4842_v50, %v1348_v54  ;;  %v2392_v54 = vmul.f32 %v4166_v8, %v4852_v59 }
 0x58e   : > { %2334 = vrot.lane.b32.xlu2 %v2327_v60, %s2987_s12  ;;  %2332 = vrot.lane.b32.xlu0 %v2326_v6, %s2987_s12  ;;  %v4847_v60 = vld [vmem:[#allocation52_spill] sm:$0xff] }
 0x58f   : > { %2077 = vrot.lane.b32.xlu1 %v2071_v7, %s2987_s12  ;;  %v1386_v6 = vadd.f32 %v4847_v60, %v1367_v22  ;;  %v4862_v60 = vld [vmem:[#allocation62_spill] sm:$0xff] }
 0x590   : > { %v1766_v45 = vpop.permute.xlu2 %1765  ;;  %v1572_v25 = vpop.permute.xlu0 %1571 }
 0x591   : > { %v1774_v3 = vadd.f32 %v1766_v45, %v1755_v30  ;;  %v1578_v63 = vadd.f32 %v1572_v25, %v1559_v19  ;;  %v1551_v48 = vpop.permute.xlu1 %1550  ;;  %v2137_v30 = vmul.f32 %v4166_v8, %v4844_v52  ;;  %v4845_v19 = vld [vmem:[#allocation38_spill] sm:$0xff]  ;;  %v1715_v25 = vmul.f32 %v3902_v23, %v3358_v40 }
 0x592   : > { %v1558_v18 = vadd.f32 %v1551_v48, %v1539_v14  ;;  %v1366_v29 = vadd.f32 %v4845_v19, %v1347_v55  ;;  %v1368_v14 = vadd.f32 %v4846_v62, %v1349_v34  ;;  %v4854_v40 = vld [vmem:[#allocation50_spill] sm:$0xff]  ;;  %v2354_v55 = vmul.f32 %v4166_v8, %v4855_v51 }
 0x593   : > { %v4172_v16 = vadd.f32 %v1582_v26, %v1578_v63  ;;  %v4849_v63 = vld [vmem:[#allocation45_spill] sm:$0xff]  ;;  %v1978_v19 = vmul.f32 %v3912_v28, %v4015_v37 }
 0x594   : > { %v1387_v48 = vadd.f32 %v4849_v63, %v1368_v14  ;;  %v4861_v14 = vld [vmem:[#allocation59_spill] sm:$0xff] }
 0x596   : > { %2453 = vrot.lane.b32.xlu2 %v2447_v2, %s2987_s12  ;;  %2107 = vrot.lane.b32.xlu0 %v2099_v43, %s2971_s14  ;;  %v1405_v43 = vadd.f32 %v4850_v9, %v1386_v6  ;;  %v1406_v23 = vadd.f32 %v4854_v40, %v1387_v48  ;;  %v2156_v6 = vmul.f32 %v4166_v8, %v4862_v60 }
 0x597   : > { %2315 = vrot.lane.b32.xlu1 %v2308_v42, %s2985_s8  ;;  %v2373_v42 = vmul.f32 %v4166_v8, %v4851_v32  ;;  %v2233_v32 = vmul.f32 %v3912_v28, %v4025_v49  ;;  %v2035_v49 = vmul.f32 %v3912_v28, %v4062_v24 }
 0x598   : > { %v1785_v58 = vpop.permute.xlu2 %1784  ;;  %v1732_v13 = vpop.permute.xlu0 %1731  ;;  %v1424_v34 = vadd.f32 %v4856_v4, %v1405_v43  ;;  %v2290_v4 = vmul.f32 %v3912_v28, %v4114_v11 }
 0x599   : > { %v1793_v17 = vadd.f32 %v1785_v58, %v1774_v3  ;;  %v1738_v53 = vadd.f32 %v1732_v13, %v4841_v27  ;;  %v1570_v10 = vpop.permute.xlu1 %1569  ;;  %v4848_v3 = vld [vmem:[#allocation39_spill] sm:$0xff]  ;;  %v4853_v58 = vld [vmem:[#allocation41_spill] sm:$0xff] }
 0x59a   : > { %v1577_v57 = vadd.f32 %v1570_v10, %v1558_v18  ;;  %v1385_v26 = vadd.f32 %v4848_v3, %v1366_v29  ;;  %v4860_v29 = vld [vmem:[#allocation46_spill] sm:$0xff] }
 0x59c   : > { %v4193_v56 = vadd.f32 %v1581_v5, %v1577_v57  ;;  %v1404_v13 = vadd.f32 %v4853_v58, %v1385_v26  ;;  %v4858_v5 = vld [vmem:[#allocation55_spill] sm:$0xff] }
 0x59d   : > { %v1425_v57 = vadd.f32 %v4858_v5, %v1406_v23 }
 0x59e   : > { %2126 = vrot.lane.b32.xlu2 %v2118_v0, %s2983_s27  ;;  %2145 = vrot.lane.b32.xlu0 %v2137_v30, %s2984_s6  ;;  %v4859_v0 = vld [vmem:[#allocation66_spill] sm:$0xff]  ;;  %v1997_v30 = vmul.f32 %v3912_v28, %v4013_v38 }
 0x59f   : > { %2455 = vrot.lane.b32.xlu1 %v2448_v15, %s2987_s12  ;;  %v1443_v52 = vadd.f32 %v4859_v0, %v1424_v34  ;;  %v1444_v15 = vadd.f32 %v4861_v14, %v1425_v57  ;;  %v4864_v34 = vld [vmem:[#allocation29_spill] sm:$0xff]  ;;  %v4867_v57 = vld [vmem:[#allocation51_spill] sm:$0xff] }
 0x5a0   : > { %v1804_v7 = vpop.permute.xlu2 %1803  ;;  %v1751_v45 = vpop.permute.xlu0 %1750 }
 0x5a1   : > { %v4211_v18 = vadd.f32 %v1804_v7, %v1793_v17  ;;  %v1757_v20 = vadd.f32 %v1751_v45, %v1738_v53  ;;  %v1730_v36 = vpop.permute.xlu1 %1729  ;;  %v4857_v53 = vld [vmem:[#allocation43_spill] sm:$0xff]  ;;  %v1450_v7 = vrot.slane %v1443_v52, 2  ;;  %v1452_v3 = vrot.slane %v1444_v15, 2  ;;  %v4870_v52 = vld [vmem:[#allocation74_spill] sm:$0xff]  ;;  %v4873_v15 = vld [vmem:[#allocation56_spill] sm:$0xff] }
 0x5a2   : > { %v1737_v2 = vadd.f32 %v1730_v36, %v1715_v25  ;;  %v1423_v10 = vadd.f32 %v4857_v53, %v1404_v13  ;;  %v2252_v36 = vmul.f32 %v3912_v28, %v4036_v39  ;;  %v4866_v53 = vld [vmem:[#allocation70_spill] sm:$0xff] }
 0x5a4   : > { %v1442_v62 = vadd.f32 %v4860_v29, %v1423_v10  ;;  %v1603_v10 = vadd.f32 %v4866_v53, %v4193_v56  ;;  %v4871_v56 = vld [vmem:[#allocation48_spill] sm:$0xff] }
 0x5a5   : > { %v1939_v29 = vmul.f32 %v4166_v8, %v4871_v56 }
 0x5a6   : > { %2381 = vrot.lane.b32.xlu2 %v2373_v42, %s2983_s27  ;;  %2400 = vrot.lane.b32.xlu0 %v2392_v54, %s2984_s6  ;;  %v1449_v25 = vrot.slane %v1442_v62, 2  ;;  %v4872_v62 = vld [vmem:[#allocation76_spill] sm:$0xff] }
 0x5a7   : > { %2362 = vrot.lane.b32.xlu1 %v2354_v55, %s2971_s14  ;;  %v4863_v55 = vld [vmem:[#allocation18_spill] sm:$0xff]  ;;  %v2411_v14 = vmul.f32 %v4166_v8, %v4872_v62 }
 0x5a8   : > { %v4226_v17 = vpop.permute.xlu2 %1822  ;;  %v1770_v27 = vpop.permute.xlu0 %1769  ;;  %v1451_v48 = vsel %vm1448_vm11, %v1449_v25, %v1450_v7 }
 0x5a9   : > { %v1776_v50 = vadd.f32 %v1770_v27, %v1757_v20  ;;  %v1749_v22 = vpop.permute.xlu1 %1748  ;;  %v1453_v20 = vsel %vm1448_vm11, %v1450_v7, %v1452_v3  ;;  %v4249_v9 = vadd.f32 %v1451_v48, %v4144_v44  ;;  %v2054_v44 = vmul.f32 %v3912_v28, %v4091_v47  ;;  %v4865_v27 = vld [vmem:[#allocation30_spill] sm:$0xff]  ;;  %v4876_v3 = vld [vmem:[#allocation32_spill] sm:$0xff] }
 0x5aa   : > { %v1756_v33 = vadd.f32 %v1749_v22, %v1737_v2  ;;  %v2016_v2 = vmul.f32 %v3912_v28, %v4045_v41  ;;  %v4252_v43 = vadd.f32 %v1453_v20, %v4146_v61  ;;  %v2271_v61 = vmul.f32 %v3912_v28, %v4098_v21  ;;  %v4869_v22 = vld [vmem:[#allocation16_spill] sm:$0xff] }
 0x5ab   : > { %v1580_v47 = vmul.f32 %v4038_v1, %v4164_v12  ;;  %v1831_v25 = vadd.f32 %v4226_v17, %v4211_v18  ;;  %v4878_v20 = vld [vmem:[#allocation72_spill] sm:$0xff]  ;;  %v4881_v17 = vld [vmem:[#allocation65_spill] sm:$0xff] }
 0x5ad   : > { %v1583_v24 = vadd.f32 %v1580_v47, %v4118_v46  ;;  %v4885_v47 = vld [vmem:[#allocation19_spill] sm:$0xff] }
 0x5ae   : > { %2005 = vrot.lane.b32.xlu2 %v1997_v30, %s2983_s27  ;;  %1986 = vrot.lane.b32.xlu0 %v1978_v19, %s2971_s14  ;;  %v1622_v30 = vadd.f32 %v4870_v52, %v1603_v10  ;;  %v4888_v10 = vld [vmem:[#allocation69_spill] sm:$0xff]  ;;  %v4892_v52 = vld [vmem:[#allocation82_spill] sm:$0xff] }
 0x5af   : > { %2164 = vrot.lane.b32.xlu1 %v2156_v6, %s2986_s9  ;;  %v1602_v46 = vadd.f32 %v4867_v57, %v1583_v24  ;;  %v4874_v6 = vld [vmem:[#allocation68_spill] sm:$0xff] }
 0x5b0   : > { %v4242_v45 = vpop.permute.xlu2 %2001  ;;  %v1789_v38 = vpop.permute.xlu0 %1788 }
 0x5b1   : > { %v1795_v37 = vadd.f32 %v1789_v38, %v1776_v50  ;;  %v1768_v26 = vpop.permute.xlu1 %1767  ;;  %v4868_v50 = vld [vmem:[#allocation64_spill] sm:$0xff]  ;;  %v1621_v60 = vadd.f32 %v4873_v15, %v1602_v46  ;;  %v4889_v46 = vld [vmem:[#allocation81_spill] sm:$0xff] }
 0x5b2   : > { %v1775_v63 = vadd.f32 %v1768_v26, %v1756_v33  ;;  %v1604_v28 = vadd.f32 %v4868_v50, %v4172_v16  ;;  %v1836_v33 = vmul.f32 %v3983_v31, %v4869_v22  ;;  %v4875_v16 = vld [vmem:[#allocation79_spill] sm:$0xff] }
 0x5b3   : > { %v1641_v38 = vadd.f32 %v4875_v16, %v1622_v30  ;;  %v4897_v16 = vld [vmem:[#allocation85_spill] sm:$0xff] }
 0x5b4   : > { %v1623_v7 = vadd.f32 %v4874_v6, %v1604_v28  ;;  %v4890_v28 = vld [vmem:[#allocation95_spill] sm:$0xff] }
 0x5b6   : > { %2260 = vrot.lane.b32.xlu2 %v2252_v36, %s2983_s27  ;;  %2024 = vrot.lane.b32.xlu0 %v2016_v2, %s2984_s6  ;;  %v1642_v36 = vadd.f32 %v4878_v20, %v1623_v7  ;;  %v1835_v2 = vmul.f32 %v4038_v1, %v4869_v22  ;;  %s2988_s27 = smov 16  }
 0x5b7   : > { %2241 = vrot.lane.b32.xlu1 %v2233_v32, %s2971_s14  ;;  %s4421_s14 = sld [smem:[#allocation4]] }
 0x5b8   : > { %v4259_v42 = vpop.permute.xlu2 %2239  ;;  %v1808_v39 = vpop.permute.xlu0 %1807 }
 0x5b9   : > { %v1814_v59 = vadd.f32 %v1808_v39, %v1795_v37  ;;  %v1787_v41 = vpop.permute.xlu1 %1786  ;;  %v4879_v39 = vld [vmem:[#allocation83_spill] sm:$0xff] }
 0x5ba   : > { %v1794_v54 = vadd.f32 %v1787_v41, %v1775_v63  ;;  %v4877_v63 = vld [vmem:[#allocation60_spill] sm:$0xff]  ;;  %v1838_v41 = vadd.f32 %v1835_v2, %v1831_v25 }
 0x5bb   : > { %v1640_v48 = vadd.f32 %v4877_v63, %v1621_v60  ;;  %v4896_v60 = vld [vmem:[#allocation84_spill] sm:$0xff]  ;;  %v4898_v63 = vld [vmem:[#allocation101_spill] sm:$0xff] }
 0x5be   : > { %2062 = vrot.lane.b32.xlu2 %v2054_v44, %s2985_s8  ;;  %2279 = vrot.lane.b32.xlu0 %v2271_v61, %s2984_s6  ;;  %v1659_v44 = vadd.f32 %v4881_v17, %v1640_v48  ;;  %v4882_v61 = vld [vmem:[#allocation77_spill] sm:$0xff]  ;;  %v4900_v17 = vld [vmem:[#allocation104_spill] sm:$0xff]  ;;  %s2989_s6 = smov 32  }
 0x5bf   : > { %2043 = vrot.lane.b32.xlu1 %v2035_v49, %s2986_s9  ;;  %v1661_v49 = vadd.f32 %v4882_v61, %v1642_v36  ;;  %v4901_v61 = vld [vmem:[#allocation91_spill] sm:$0xff] }
 0x5c0   : > { %v4270_v58 = vpop.permute.xlu2 %2256  ;;  %v1827_v13 = vpop.permute.xlu0 %1826  ;;  %v1678_v57 = vadd.f32 %v4888_v10, %v1659_v44 }
 0x5c1   : > { %v1833_v40 = vadd.f32 %v1827_v13, %v1814_v59  ;;  %v1806_v23 = vpop.permute.xlu1 %1805  ;;  %v1660_v59 = vadd.f32 %v4879_v39, %v1641_v38  ;;  %v4883_v13 = vld [vmem:[#allocation92_spill] sm:$0xff]  ;;  %v1680_v50 = vadd.f32 %v4889_v46, %v1661_v49 }
 0x5c2   : > { %v1813_v51 = vadd.f32 %v1806_v23, %v1794_v54  ;;  %v4880_v54 = vld [vmem:[#allocation75_spill] sm:$0xff]  ;;  %v4899_v39 = vld [vmem:[#allocation88_spill] sm:$0xff] }
 0x5c3   : > { %v4275_v21 = vadd.f32 %v4863_v55, %v1833_v40  ;;  %v2194_v18 = vmul.f32 %v4166_v8, %v4880_v54  ;;  %v4884_v23 = vld [vmem:[#allocation71_spill] sm:$0xff]  ;;  %v4886_v55 = vld [vmem:[#allocation86_spill] sm:$0xff]  ;;  %v1699_v6 = vadd.f32 %v4896_v60, %v1680_v50  ;;  %v4905_v46 = vld [vmem:[#allocation28_spill] sm:$0xff] }
 0x5c4   : > { %v1679_v24 = vadd.f32 %v4886_v55, %v1660_v59  ;;  %v2224_v50 = vmul.f32 %v4155_v35, %v4905_v46 }
 0x5c5   : > { %v1707_v2 = vrot.slane %v1699_v6, 3 }
 0x5c6   : > { %2317 = vrot.lane.b32.xlu2 %v4864_v34, %s2985_s8  ;;  %2081 = vrot.lane.b32.xlu0 %v4865_v27, %s2987_s12 }
 0x5c7   : > { %2298 = vrot.lane.b32.xlu1 %v2290_v4, %s2986_s9  ;;  %v4887_v4 = vld [vmem:[#allocation78_spill] sm:$0xff] }
 0x5c8   : > { %v4287_v12 = vpop.permute.xlu2 %2041  ;;  %v4289_v5 = vpop.permute.xlu0 %1984  ;;  %v1857_v34 = vadd.f32 %v4887_v4, %v1838_v41  ;;  %v2941_v4 = vld [vmem:[#allocation2 + $0x8] sm:$0xff] }
 0x5c9   : > { %v1825_v11 = vpop.permute.xlu1 %1824 }
 0x5ca   : > { %v1832_v0 = vadd.f32 %v1825_v11, %v1813_v51  ;;  %v2175_v51 = vmul.f32 %v4166_v8, %v4884_v23  ;;  %v1876_v30 = vadd.f32 %v4892_v52, %v1857_v34  ;;  %v4904_v34 = vld [vmem:[#allocation31_spill] sm:$0xff] }
 0x5cb   : > { %v1970_v10 = vmul.f32 %v2941_v4, %v4904_v34 }
 0x5cc   : > { %v1839_v19 = vadd.f32 %v1836_v33, %v1832_v0  ;;  %v4891_v33 = vld [vmem:[#allocation89_spill] sm:$0xff]  ;;  %v1895_v38 = vadd.f32 %v4897_v16, %v1876_v30  ;;  %v2225_v16 = vmul.f32 %v2941_v4, %v4905_v46 }
 0x5cd   : > { %v1698_v0 = vadd.f32 %v4891_v33, %v1679_v24 }
 0x5ce   : > { %1947 = vrot.lane.b32.xlu2 %v1939_v29, %s2987_s12  ;;  %2419 = vrot.lane.b32.xlu0 %v2411_v14, %s2986_s9  ;;  %v1858_v40 = vadd.f32 %v4883_v13, %v1839_v19  ;;  %v4893_v19 = vld [vmem:[#allocation73_spill] sm:$0xff]  ;;  %v4894_v29 = vld [vmem:[#allocation98_spill] sm:$0xff]  ;;  %v4895_v14 = vld [vmem:[#allocation80_spill] sm:$0xff]  ;;  %v1914_v59 = vadd.f32 %v4899_v39, %v1895_v38  ;;  %s2991_s9 = smov 64  }
 0x5cf   : > { %2336 = vrot.lane.b32.xlu1 %v4876_v3, %s2987_s12  ;;  %v1697_v56 = vadd.f32 %v4893_v19, %v1678_v57  ;;  %v2430_v15 = vmul.f32 %v4166_v8, %v4895_v14  ;;  %v1705_v7 = vrot.slane %v1698_v0, 3  ;;  %v4906_v38 = vld [vmem:[#allocation20_spill] sm:$0xff] }
 0x5d0   : > { %v4310_v37 = vpop.permute.xlu2 %2058  ;;  %v2238_v26 = vpop.permute.xlu0 %2237  ;;  %v1877_v11 = vadd.f32 %v4890_v28, %v1858_v40  ;;  %v1933_v49 = vadd.f32 %v4901_v61, %v1914_v59  ;;  %v4902_v40 = vld [vmem:[#allocation109_spill] sm:$0xff]  ;;  %v1969_v28 = vmul.f32 %v4155_v35, %v4904_v34  ;;  %v4912_v34 = vld [vmem:[#allocation106_spill] sm:$0xff] }
 0x5d1   : > { %v1983_v32 = vpop.permute.xlu1 %1982  ;;  %v1704_v3 = vrot.slane %v1697_v56, 3  ;;  %v1708_v54 = vsel %vm1703_vm12, %v1705_v7, %v1707_v2  ;;  %v2246_v0 = vadd.f32 %v2238_v26, %v2224_v50  ;;  %v4907_v2 = vld [vmem:[#allocation102_spill] sm:$0xff]  ;;  %v4915_v50 = vld [vmem:[#allocation97_spill] sm:$0xff] }
 0x5d2   : > { %v1896_v62 = vadd.f32 %v4894_v29, %v1877_v11  ;;  %v1991_v19 = vadd.f32 %v1983_v32, %v1969_v28 }
 0x5d3   : > { %v1706_v41 = vsel %vm1703_vm12, %v1704_v3, %v1705_v7 }
 0x5d4   : > { %v1915_v48 = vadd.f32 %v4898_v63, %v1896_v62  ;;  %v1711_v8 = vadd.f32 %v1706_v41, %v4249_v9  ;;  %v2265_v62 = vadd.f32 %v4270_v58, %v2246_v0  ;;  %v2010_v14 = vadd.f32 %v4242_v45, %v1991_v19  ;;  %v4908_v41 = vld [vmem:[#allocation21_spill] sm:$0xff] }
 0x5d5   : > { %v2247_v63 = vadd.f32 %v4259_v42, %v2225_v16  ;;  %v2090_v42 = vmul.f32 %v4038_v1, %v4906_v38  ;;  %v4916_v0 = vld [vmem:[#allocation117_spill] sm:$0xff]  ;;  %v4922_v16 = vld [vmem:[#allocation112_spill] sm:$0xff] }
 0x5d6   : > { %2202 = vrot.lane.b32.xlu2 %v2194_v18, %s2987_s12  ;;  %2457 = vrot.lane.b32.xlu0 %v4885_v47, %s2987_s12  ;;  %v4348_v18 = vadd.f32 %v1708_v54, %v4252_v43  ;;  %v1934_v44 = vadd.f32 %v4900_v17, %v1915_v48  ;;  %v4903_v47 = vld [vmem:[#allocation94_spill] sm:$0xff]  ;;  %v1992_v43 = vadd.f32 %v4289_v5, %v1970_v10  ;;  %v4913_v10 = vld [vmem:[#allocation107_spill] sm:$0xff]  ;;  %s2992_s12 = smov 80  }
 0x5d7   : > { %2183 = vrot.lane.b32.xlu1 %v2175_v51, %s2985_s8  ;;  %v1952_v55 = vadd.f32 %v4903_v47, %v1933_v49  ;;  %v2345_v54 = vmul.f32 %v4038_v1, %v4908_v41  ;;  %v4909_v17 = vld [vmem:[#allocation110_spill] sm:$0xff] }
 0x5d8   : > { %v4330_v27 = vpop.permute.xlu2 %2296  ;;  %v2023_v53 = vpop.permute.xlu0 %2022  ;;  %v4353_v23 = vadd.f32 %v4902_v40, %v1934_v44 }
 0x5d9   : > { %v2004_v22 = vpop.permute.xlu1 %2003  ;;  %v1959_v57 = vrot.slane %v1952_v55, 4  ;;  %v4911_v55 = vld [vmem:[#allocation105_spill] sm:$0xff] }
 0x5da   : > { %v1960_v9 = vrot.slane %v4353_v23, 4  ;;  %v2011_v11 = vadd.f32 %v2004_v22, %v1992_v43 }
 0x5dc   : > { %v1961_v30 = vsel %vm1958_vm13, %v1959_v57, %v1960_v9  ;;  %v2030_v5 = vadd.f32 %v2023_v53, %v2011_v11  ;;  %v2091_v53 = vmul.f32 %v3983_v31, %v4906_v38  ;;  %v4914_v57 = vld [vmem:[#allocation103_spill] sm:$0xff]  ;;  %v4923_v38 = vld [vmem:[#allocation100_spill] sm:$0xff] }
 0x5dd   : > { %v4368_v56 = vadd.f32 %v1961_v30, %v1711_v8 }
 0x5de   : > { %v2049_v26 = vadd.f32 %v4287_v12, %v2030_v5  ;;  %v4918_v5 = vld [vmem:[#allocation118_spill] sm:$0xff] }
 0x5df   : > { %2438 = vrot.lane.b32.xlu1 %v2430_v15, %s2985_s8  ;;  %s2990_s8 = smov 48  }
 0x5e0   : > { %v2040_v25 = vpop.permute.xlu0 %2039  ;;  %v2314_v20 = vpop.permute.xlu2 %2313 }
 0x5e1   : > { %v2021_v36 = vpop.permute.xlu1 %2020 }
 0x5e2   : > { %v2029_v22 = vadd.f32 %v2021_v36, %v2010_v14  ;;  %v4919_v14 = vld [vmem:[#allocation111_spill] sm:$0xff] }
 0x5e4   : > { %v2048_v32 = vadd.f32 %v2040_v25, %v2029_v22  ;;  %v2346_v22 = vmul.f32 %v3983_v31, %v4908_v41  ;;  %v4927_v41 = vld [vmem:[#allocation123_spill] sm:$0xff] }
 0x5e6   : > { %v2067_v59 = vadd.f32 %v4310_v37, %v2048_v32 }
 0x5e8   : > { %v2278_v13 = vpop.permute.xlu0 %2277  ;;  %v4356_v24 = vpop.permute.xlu2 %2334 }
 0x5e9   : > { %v2259_v51 = vpop.permute.xlu1 %2258 }
 0x5ea   : > { %v2266_v36 = vadd.f32 %v2259_v51, %v2247_v63 }
 0x5ec   : > { %v2285_v40 = vadd.f32 %v2278_v13, %v2266_v36  ;;  %v4925_v36 = vld [vmem:[#allocation116_spill] sm:$0xff] }
 0x5ee   : > { %v2304_v11 = vadd.f32 %v4330_v27, %v2285_v40 }
 0x5f0   : > { %v2295_v33 = vpop.permute.xlu0 %2294  ;;  %v4370_v29 = vpop.permute.xlu2 %2453 }
 0x5f1   : > { %v2276_v52 = vpop.permute.xlu1 %2275 }
 0x5f2   : > { %v2284_v35 = vadd.f32 %v2276_v52, %v2265_v62  ;;  %v4917_v52 = vld [vmem:[#allocation113_spill] sm:$0xff] }
 0x5f4   : > { %v2303_v7 = vadd.f32 %v2295_v33, %v2284_v35 }
 0x5f6   : > { %v2322_v45 = vadd.f32 %v2314_v20, %v2303_v7  ;;  %v4910_v20 = vld [vmem:[#allocation108_spill] sm:$0xff] }
 0x5f8   : > { %v2080_v15 = vpop.permute.xlu0 %2079  ;;  %v4379_v48 = vpop.permute.xlu2 %2126 }
 0x5f9   : > { %v2061_v60 = vpop.permute.xlu1 %2060 }
 0x5fa   : > { %v2068_v6 = vadd.f32 %v2061_v60, %v2049_v26  ;;  %v4920_v26 = vld [vmem:[#allocation120_spill] sm:$0xff] }
 0x5fc   : > { %v2087_v3 = vadd.f32 %v2080_v15, %v2068_v6  ;;  %v4921_v6 = vld [vmem:[#allocation115_spill] sm:$0xff] }
 0x5fe   : > { %v2094_v58 = vadd.f32 %v2091_v53, %v2087_v3  ;;  %v4924_v3 = vld [vmem:[#allocation119_spill] sm:$0xff] }
 0x600   : > { %v2113_v39 = vadd.f32 %v4907_v2, %v2094_v58  ;;  %v2333_v12 = vpop.permute.xlu0 %2332  ;;  %v4395_v33 = vpop.permute.xlu2 %2381 }
 0x601   : > { %v2341_v25 = vadd.f32 %v2333_v12, %v2322_v45  ;;  %v2078_v8 = vpop.permute.xlu1 %2077  ;;  %v4926_v12 = vld [vmem:[#allocation114_spill] sm:$0xff] }
 0x602   : > { %v2132_v44 = vadd.f32 %v4909_v17, %v2113_v39  ;;  %v2086_v61 = vadd.f32 %v2078_v8, %v2067_v59  ;;  %v4928_v8 = vld [vmem:[#allocation122_spill] sm:$0xff] }
 0x603   : > { %v2348_v49 = vadd.f32 %v2345_v54, %v2341_v25 }
 0x604   : > { %v2151_v51 = vadd.f32 %v4910_v20, %v2132_v44  ;;  %v2093_v47 = vadd.f32 %v2090_v42, %v2086_v61  ;;  %v4929_v44 = vld [vmem:[#allocation121_spill] sm:$0xff] }
 0x605   : > { %v2367_v4 = vadd.f32 %v4911_v55, %v2348_v49 }
 0x606   : > { %v2170_v37 = vadd.f32 %v4912_v34, %v2151_v51  ;;  %v2112_v43 = vadd.f32 %v4913_v10, %v2093_v47 }
 0x607   : > { %v2386_v46 = vadd.f32 %v4914_v57, %v2367_v4 }
 0x608   : > { %v2131_v28 = vadd.f32 %v4915_v50, %v2112_v43  ;;  %v2189_v13 = vadd.f32 %v4916_v0, %v2170_v37  ;;  %v2006_v2 = vpop.permute.xlu2 %2005 }
 0x609   : > { %v2316_v1 = vpop.permute.xlu1 %2315  ;;  %v2405_v62 = vadd.f32 %v4918_v5, %v2386_v46 }
 0x60a   : > { %v2150_v30 = vadd.f32 %v4917_v52, %v2131_v28  ;;  %v2323_v19 = vadd.f32 %v2316_v1, %v2304_v11  ;;  %v4406_v7 = vadd.f32 %v4921_v6, %v2189_v13  ;;  %v4931_v28 = vld [vmem:[#allocation90_spill] sm:$0xff]  ;;  %v4932_v13 = vld [vmem:[#allocation93_spill] sm:$0xff] }
 0x60b   : > { %v2424_v32 = vadd.f32 %v4922_v16, %v2405_v62  ;;  %v4933_v62 = vld [vmem:[#allocation96_spill] sm:$0xff] }
 0x60c   : > { %v2169_v35 = vadd.f32 %v4919_v14, %v2150_v30  ;;  %v2342_v15 = vadd.f32 %v4356_v24, %v2323_v19  ;;  %v2215_v45 = vrot.slane %v4406_v7, 5  ;;  %v4413_v24 = vpop.permute.xlu0 %2107 }
 0x60d   : > { %v2443_v54 = vadd.f32 %v4927_v41, %v2424_v32 }
 0x60e   : > { %v2188_v60 = vadd.f32 %v4920_v26, %v2169_v35  ;;  %v2349_v27 = vadd.f32 %v2346_v22, %v2342_v15 }
 0x60f   : > { %v2462_v61 = vadd.f32 %v4370_v29, %v2443_v54  ;;  %v4930_v29 = vld [vmem:[#allocation87_spill] sm:$0xff] }
 0x610   : > { %v2368_v53 = vadd.f32 %v4923_v38, %v2349_v27  ;;  %v2207_v63 = vadd.f32 %v4924_v3, %v2188_v60  ;;  %v2261_v47 = vpop.permute.xlu2 %2260  ;;  %v1859_v43 = vadd.f32 %v4930_v29, %v4275_v21  ;;  %v4934_v21 = vld [vmem:[#allocation99_spill] sm:$0xff]  ;;  %v4935_v3 = vld [vmem:[#allocation33_spill] sm:$0xff] }
 0x611   : > { %v2456_v49 = vpop.permute.xlu1 %2455  ;;  %v2468_v20 = vrot.slane %v2462_v61, 6 }
 0x612   : > { %v2214_v58 = vrot.slane %v2207_v63, 5  ;;  %v2387_v31 = vadd.f32 %v4925_v36, %v2368_v53  ;;  %v1878_v11 = vadd.f32 %v4931_v28, %v1859_v43 }
 0x614   : > { %v2216_v39 = vsel %vm2213_vm14, %v2214_v58, %v2215_v45  ;;  %v2406_v59 = vadd.f32 %v4926_v12, %v2387_v31  ;;  %v4429_v55 = vpop.permute.xlu0 %2145  ;;  %v1897_v52 = vadd.f32 %v4932_v13, %v1878_v11 }
 0x615   : > { %v2221_v25 = vadd.f32 %v2216_v39, %v4368_v56  ;;  %v2477_v56 = vstv %s4421_s14 }
 0x616   : > { %v2425_v17 = vadd.f32 %v4928_v8, %v2406_v59  ;;  %v1916_v14 = vadd.f32 %v4933_v62, %v1897_v52 }
 0x618   : > { %v2444_v42 = vadd.f32 %v4929_v44, %v2425_v17  ;;  %v2063_v57 = vpop.permute.xlu2 %2062  ;;  %v1935_v15 = vadd.f32 %v4934_v21, %v1916_v14 }
 0x619   : > { %v4441_v50 = vpop.permute.xlu1 %2362 }
 0x61a   : > { %v4426_v40 = vadd.f32 %v2456_v49, %v2444_v42  ;;  %v4936_v42 = vld [vmem:[#allocation34_spill] sm:$0xff] }
 0x61c   : > { %v2469_v51 = vrot.slane %v4426_v40, 6  ;;  %v4439_v46 = vpop.permute.xlu0 %2400  ;;  %v2518_v40 = vlaneseq }
 0x61e   : > { %v2470_v4 = vsel %vm331_vm3, %v2468_v20, %v2469_v51  ;;  %vm4497_vm8 = vcmp.ge.s32.totalorder %v2518_v40, 16  ;;  %vm4502_vm9 = vcmp.lt.s32.totalorder %v2518_v40, 32  ;;  %vm4520_vm11 = vcmp.ge.s32.totalorder %v2518_v40, 32 }
 0x61f   : > { %v2475_v34 = vadd.f32 %v2470_v4, %v2221_v25  ;;  %vm2532_vm10 = vmand %vm4497_vm8, %vm4502_vm9  ;;  %vm4525_vm12 = vcmp.lt.s32.totalorder %v2518_v40, 48 }
 0x620   : > { %v2318_v30 = vpop.permute.xlu2 %2317 }
 0x621   : > { %v2478_v37 = vadd.f32 %v2477_v56, %v2475_v34  ;;  %v2165_v5 = vpop.permute.xlu1 %2164  ;;  %v4937_v34 = vld [vmem:[#allocation22_spill] sm:$0xff] }
 0x623   : > { %v2852_v10 = vmul.f32 -1.442695, %v2478_v37 }
 0x624   : > { %v1987_v19 = vpop.permute.xlu0 %1986 }
 0x625   : > { %2927 = vpow2.f32 %v2852_v10  ;;  %v1993_v63 = vadd.f32 %v1987_v19, %v4935_v3 }
 0x627   : > { %v2012_v54 = vadd.f32 %v2006_v2, %v1993_v63 }
 0x628   : > { %v1948_v60 = vpop.permute.xlu2 %1947 }
 0x629   : > { %v1954_v16 = vadd.f32 %v1948_v60, %v1935_v15  ;;  %v2242_v32 = vpop.permute.xlu1 %2241 }
 0x62a   : > { %v2248_v61 = vadd.f32 %v2242_v32, %v4936_v42 }
 0x62b   : > { %v2928_v1 = vpop.eup %2927  ;;  %v1962_v58 = vrot.slane %v1954_v16, 4 }
 0x62c   : > { %v2486_v0 = vadd.f32 1.0, %v2928_v1  ;;  %v2025_v27 = vpop.permute.xlu0 %2024  ;;  %v2267_v23 = vadd.f32 %v2261_v47, %v2248_v61  ;;  %v4938_v1 = vld [vmem:[#allocation23_spill] sm:$0xff] }
 0x62d   : > { %v1963_v39 = vsel %vm1958_vm13, %v1960_v9, %v1962_v58  ;;  %v2031_v8 = vadd.f32 %v2025_v27, %v2012_v54  ;;  %vm2542_vm13 = vmand %vm4520_vm11, %vm4525_vm12 }
 0x62e   : > { %2929 = vrcp.f32 %v2486_v0  ;;  %v2499_v6 = vand.u32 2147483648, %v2486_v0  ;;  %v2497_v53 = vand.u32 2147483647, %v2486_v0  ;;  %vm2493_vm0 = vweird.f32 %v2486_v0 }
 0x62f   : > { %v1967_v59 = vadd.f32 %v1963_v39, %v4348_v18 }
 0x630   : > { %v2500_v31 = vor.u32 1.1754944e-38, %v2499_v6  ;;  %vm2498_vm2 = vcmp.eq.f32.partialorder %v2497_v53, 8.507059e+37  ;;  %v4977_v53 = vld [vmem:[#allocation14_spill] sm:$0xff] }
 0x631   : > { %v2044_v17 = vpop.permute.xlu1 %2043 }
 0x632   : > { %v2050_v44 = vadd.f32 %v2044_v17, %v2031_v8 }
 0x634   : > { %v2930_v35 = vpop.eup %2929  ;;  %v2280_v25 = vpop.permute.xlu0 %2279  ;;  %v2069_v20 = vadd.f32 %v2063_v57, %v2050_v44 }
 0x635   : > { %v2489_v22 = vmul.f32 %v2930_v35, %v2486_v0  ;;  %vm2494_vm15 = vweird.f32 %v2930_v35  ;;  %v2286_v2 = vadd.f32 %v2280_v25, %v2267_v23 }
 0x636   : > { %vm2495_vm1 = vmor %vm2493_vm0, %vm2494_vm15  ;;  %vm4544_vm15 = vcmp.lt.s32.totalorder %v2518_v40, 64  ;;  %vm4549_vm0 = vcmp.ge.s32.totalorder %v2518_v40, 64 }
 0x637   : > { %v2490_v26 = vsub.f32 1.0, %v2489_v22 }
 0x639   : > { %v2491_v38 = vmul.f32 %v2930_v35, %v2490_v26  ;;  %v2299_v4 = vpop.permute.xlu1 %2298 }
 0x63a   : > { %v2305_v10 = vadd.f32 %v2299_v4, %v2286_v2 }
 0x63b   : > { %v2492_v36 = vadd.f32 %v2930_v35, %v2491_v38 }
 0x63c   : > { %v2082_v9 = vpop.permute.xlu0 %2081  ;;  %v2324_v28 = vadd.f32 %v2318_v30, %v2305_v10 }
 0x63d   : > { %v2496_v12 = vsel %vm2495_vm1, %v2930_v35, %v2492_v36  ;;  %v2088_v18 = vadd.f32 %v2082_v9, %v2069_v20  ;;  %vm4554_vm1 = vcmp.lt.s32.totalorder %v2518_v40, 80 }
 0x63e   : > { %v4452_v41 = vsel %vm2498_vm2, %v2500_v31, %v2496_v12  ;;  %vm4966_vm9 = vmand %vm4549_vm0, %vm4554_vm1 }
 0x63f   : > { %2524 = vst [vmem:[#allocation1] sm:$0xff] %v4452_v41  ;;  %v2095_v37 = vadd.f32 %v4937_v34, %v2088_v18 }
 0x641   : > { %v2114_v29 = vadd.f32 %v4413_v24, %v2095_v37  ;;  %v2337_v47 = vpop.permute.xlu1 %2336 }
 0x642   : > { %v2343_v57 = vadd.f32 %v2337_v47, %v2324_v28 }
 0x643   : > { %v2133_v11 = vadd.f32 %v4379_v48, %v2114_v29  ;;  %v2203_v48 = vpop.permute.xlu2 %2202 }
 0x644   : > { %v2350_v0 = vadd.f32 %v4938_v1, %v2343_v57  ;;  %v2420_v62 = vpop.permute.xlu0 %2419 }
 0x645   : > { %v2152_v13 = vadd.f32 %v4429_v55, %v2133_v11 }
 0x646   : > { %v2526_v49 = vld [vmem:[#allocation1 + $0x1] ss:$9 sm:$0xff]  ;;  %v2369_v52 = vadd.f32 %v4441_v50, %v2350_v0 }
 0x647   : > { %2534 = vst [vmem:[#allocation1] sm:$0xff] %v4452_v41  ;;  %2527 = vrot.lane.b32.xlu2 %v2526_v49, %s2988_s27  ;;  %v2171_v19 = vadd.f32 %v2165_v5, %v2152_v13 }
 0x648   : > { %v2388_v24 = vadd.f32 %v4395_v33, %v2369_v52  ;;  %v4963_v52 = vmov 0 }
 0x649   : > { %v2184_v30 = vpop.permute.xlu1 %2183 }
 0x64a   : > { %v2190_v14 = vadd.f32 %v2184_v30, %v2171_v19  ;;  %v2407_v22 = vadd.f32 %v4439_v46, %v2388_v24 }
 0x64c   : > { %v2209_v35 = vadd.f32 %v2203_v48, %v2190_v14  ;;  %v2426_v26 = vadd.f32 %v2420_v62, %v2407_v22  ;;  %v2458_v5 = vpop.permute.xlu0 %2457 }
 0x64e   : > { %v2536_v43 = vld [vmem:[#allocation1 + $0x2] ss:$9 sm:$0xff]  ;;  %v2217_v21 = vrot.slane %v2209_v35, 5 }
 0x64f   : > { %2537 = vrot.lane.b32.xlu0 %v2536_v43, %s2989_s6  ;;  %2544 = vst [vmem:[#allocation1] sm:$0xff] %v4452_v41 }
 0x650   : > { %v2218_v15 = vsel %vm2213_vm14, %v2215_v45, %v2217_v21  ;;  %vm4539_vm14 = vcmp.ge.s32.totalorder %v2518_v40, 48 }
 0x651   : > { %v2222_v55 = vadd.f32 %v2218_v15, %v1967_v59  ;;  %v2439_v60 = vpop.permute.xlu1 %2438  ;;  %vm4709_vm2 = vmand %vm4539_vm14, %vm4544_vm15 }
 0x652   : > { %v2445_v50 = vadd.f32 %v2439_v60, %v2426_v26  ;;  %vm4965_vm8 = vmand %vm4539_vm14, %vm4544_vm15  ;;  %v4970_v60 = vld [vmem:[#allocation9_spill] sm:$0xff] }
 0x654   : > { %v2464_v27 = vadd.f32 %v2458_v5, %v2445_v50  ;;  %v4971_v5 = vld [vmem:[#allocation13_spill] sm:$0xff] }
 0x656   : > { %v2471_v33 = vrot.slane %v2464_v27, 6  ;;  %v2546_v16 = vld [vmem:[#allocation1 + $0x3] ss:$9 sm:$0xff] }
 0x657   : > { %2547 = vrot.lane.b32.xlu1 %v2546_v16, %s2990_s8  ;;  %2554 = vst [vmem:[#allocation1] sm:$0xff] %v4452_v41  ;;  %v4973_v16 = vld [vmem:[#allocation15_spill] sm:$0xff] }
 0x658   : > { %v2472_v6 = vsel %vm331_vm3, %v2469_v51, %v2471_v33  ;;  %vm4481_vm3 = vcmp.lt.s32.totalorder %v2518_v40, 16  ;;  %v4972_v33 = vld [vmem:[#allocation10_spill] sm:$0xff] }
 0x659   : > { %v2476_v32 = vadd.f32 %v2472_v6, %v2222_v55  ;;  %2522 = vst.msk [vmem:[#allocation3] sm:$0x1] %vm4481_vm3, %v4452_v41 }
 0x65b   : > { %v2479_v7 = vadd.f32 %v2477_v56, %v2476_v32 }
 0x65d   : > { %v2853_v45 = vmul.f32 -1.442695, %v2479_v7  ;;  %v4974_v7 = vld [vmem:[#allocation11_spill] sm:$0xff] }
 0x65e   : > { %v2556_v46 = vld [vmem:[#allocation1 + $0x4] ss:$9 sm:$0xff] }
 0x65f   : > { %2931 = vpow2.f32 %v2853_v45  ;;  %2557 = vrot.lane.b32.xlu2 %v2556_v46, %s2991_s9  ;;  %2564 = vst [vmem:[#allocation1] sm:$0xff] %v4452_v41  ;;  %v4975_v46 = vld [vmem:[#allocation12_spill] sm:$0xff] }
 0x665   : > { %v2932_v38 = vpop.eup %2931 }
 0x666   : > { %v2487_v51 = vadd.f32 1.0, %v2932_v38  ;;  %v2566_v56 = vld [vmem:[#allocation1 + $0x5] ss:$9 sm:$0xff] }
 0x667   : > { %2567 = vrot.lane.b32.xlu0 %v2566_v56, %s2992_s12  ;;  %2574 = vst [vmem:[#allocation1] sm:$0xff] %v4452_v41  ;;  %v4976_v38 = vld [vmem:[#allocation8_spill] sm:$0xff] }
 0x668   : > { %2933 = vrcp.f32 %v2487_v51  ;;  %v2514_v31 = vand.u32 2147483648, %v2487_v51  ;;  %v2512_v12 = vand.u32 2147483647, %v2487_v51  ;;  %vm2508_vm5 = vweird.f32 %v2487_v51 }
 0x66a   : > { %v2515_v54 = vor.u32 1.1754944e-38, %v2514_v31  ;;  %vm2513_vm7 = vcmp.eq.f32.partialorder %v2512_v12, 8.507059e+37 }
 0x66e   : > { %v2934_v3 = vpop.eup %2933  ;;  %v2576_v58 = vld [vmem:[#allocation1 + $0x6] ss:$9 sm:$0xff] }
 0x66f   : > { %v2504_v63 = vmul.f32 %v2934_v3, %v2487_v51  ;;  %2577 = vrot.lane.b32.xlu1 %v2576_v58, %s2993_s29  ;;  %2584 = vst [vmem:[#allocation1] sm:$0xff] %v4452_v41  ;;  %vm2509_vm4 = vweird.f32 %v2934_v3 }
 0x670   : > { %vm2510_vm6 = vmor %vm2508_vm5, %vm2509_vm4  ;;  %vm4577_vm4 = vcmp.ge.s32.totalorder %v2518_v40, 80  ;;  %vm4582_vm5 = vcmp.lt.s32.totalorder %v2518_v40, 96 }
 0x671   : > { %v2505_v36 = vsub.f32 1.0, %v2504_v63 }
 0x673   : > { %v2506_v39 = vmul.f32 %v2934_v3, %v2505_v36 }
 0x675   : > { %v2507_v59 = vadd.f32 %v2934_v3, %v2506_v39 }
 0x676   : > { %v2586_v17 = vld [vmem:[#allocation1 + $0x7] ss:$9 sm:$0xff] }
 0x677   : > { %v2511_v25 = vsel %vm2510_vm6, %v2934_v3, %v2507_v59  ;;  %vm4710_vm6 = vmand %vm4577_vm4, %vm4582_vm5 }
 0x678   : > { %v2516_v8 = vsel %vm2513_vm7, %v2515_v54, %v2511_v25  ;;  %vm4596_vm7 = vcmp.ge.s32.totalorder %v2518_v40, 96 }
 0x679   : > { %2596 = vst [vmem:[#allocation1] sm:$0xff] %v2516_v8 }
 0x67a   : > { %2594 = vst.msk [vmem:[#allocation3 + $0x1] sm:$0x1] %vm4481_vm3, %v2516_v8  ;;  %vm4708_vm3 = vmand %vm4549_vm0, %vm4554_vm1 }
 0x680   : > { %v2598_v44 = vld [vmem:[#allocation1 + $0x1] ss:$9 sm:$0xff] }
 0x681   : > { %2599 = vrot.lane.b32.xlu1 %v2598_v44, %s2988_s27  ;;  %2603 = vst [vmem:[#allocation1] sm:$0xff] %v2516_v8 }
 0x688   : > { %v2605_v41 = vld [vmem:[#allocation1 + $0x2] ss:$9 sm:$0xff] }
 0x689   : > { %2606 = vrot.lane.b32.xlu2 %v2605_v41, %s2989_s6  ;;  %2610 = vst [vmem:[#allocation1] sm:$0xff] %v2516_v8 }
 0x690   : > { %v2612_v49 = vld [vmem:[#allocation1 + $0x3] ss:$9 sm:$0xff] }
 0x691   : > { %2613 = vrot.lane.b32.xlu0 %v2612_v49, %s2990_s8  ;;  %2617 = vst [vmem:[#allocation1] sm:$0xff] %v2516_v8 }
 0x698   : > { %v2619_v23 = vld [vmem:[#allocation1 + $0x4] ss:$9 sm:$0xff] }
 0x699   : > { %2620 = vrot.lane.b32.xlu1 %v2619_v23, %s2991_s9  ;;  %2624 = vst [vmem:[#allocation1] sm:$0xff] %v2516_v8 }
 0x6a0   : > { %v2626_v9 = vld [vmem:[#allocation1 + $0x5] ss:$9 sm:$0xff] }
 0x6a1   : > { %v2528_v20 = vpop.permute.xlu2 %2527  ;;  %2627 = vrot.lane.b32.xlu2 %v2626_v9, %s2992_s12  ;;  %2631 = vst [vmem:[#allocation1] sm:$0xff] %v2516_v8 }
 0x6a2   : > { %2533 = vst.msk [vmem:[#allocation3] sm:$0x1] %vm2532_vm10, %v2528_v20 }
 0x6a8   : > { %v2633_v18 = vld [vmem:[#allocation1 + $0x6] ss:$9 sm:$0xff] }
 0x6a9   : > { %2587 = vrot.lane.b32.xlu2 %v2586_v17, %s2994_s30  ;;  %2634 = vrot.lane.b32.xlu0 %v2633_v18, %s2993_s29  ;;  %2638 = vst [vmem:[#allocation1] sm:$0xff] %v2516_v8 }
 0x6b0   : > { %v2640_v34 = vld [vmem:[#allocation1 + $0x7] ss:$9 sm:$0xff] }
 0x6b1   : > { %2641 = vrot.lane.b32.xlu1 %v2640_v34, %s2994_s30 }
 0x6b9   : > { %v2558_v47 = vpop.permute.xlu2 %2557 }
 0x6c1   : > { %v2538_v37 = vpop.permute.xlu0 %2537 }
 0x6c2   : > { %2543 = vst.msk [vmem:[#allocation3] sm:$0x1] %vm2542_vm13, %v2538_v37 }
 0x6c9   : > { %v2548_v11 = vpop.permute.xlu1 %2547 }
 0x6ca   : > { %2553 = vst.msk [vmem:[#allocation3] sm:$0x1] %vm4709_vm2, %v2548_v11 }
 0x6cb   : > { %2563 = vst.msk [vmem:[#allocation3] sm:$0x1] %vm4708_vm3, %v2558_v47  ;;  %vm4601_vm3 = vcmp.lt.s32.totalorder %v2518_v40, 112 }
 0x6cc   : > { %v4964_v52 = vsel %vm4601_vm3, 4294967295, %v4963_v52  ;;  %vm4712_vm2 = vmand %vm4596_vm7, %vm4601_vm3  ;;  %vm2591_vm3 = vcmp.lt.s32.totalorder %v2518_v40, 128 }
 0x6cd   : > { %vm4968_vm11 = vnez %v4964_v52 }
 0x6ce   : > { %vm4969_vm12 = vmand %vm4596_vm7, %vm4968_vm11 }
 0x6d9   : > { %v2568_v0 = vpop.permute.xlu0 %2567 }
 0x6da   : > { %2573 = vst.msk [vmem:[#allocation3] sm:$0x1] %vm4710_vm6, %v2568_v0  ;;  %vm2590_vm6 = vcmp.ge.s32.totalorder %v2518_v40, 112 }
 0x6e1   : > { %v2578_v19 = vpop.permute.xlu1 %2577 }
 0x6e2   : > { %2583 = vst.msk [vmem:[#allocation3] sm:$0x1] %vm4712_vm2, %v2578_v19  ;;  %vm2592_vm2 = vmand %vm2590_vm6, %vm2591_vm3 }
 0x6e3   : > { %v2607_v24 = vpop.permute.xlu2 %2606 }
 0x6f3   : > { %v2600_v62 = vpop.permute.xlu1 %2599 }
 0x6f4   : > { %2602 = vst.msk [vmem:[#allocation3 + $0x1] sm:$0x1] %vm2532_vm10, %v2600_v62  ;;  %vm4967_vm10 = vmand %vm4577_vm4, %vm4582_vm5 }
 0x6f5   : > { %2609 = vst.msk [vmem:[#allocation3 + $0x1] sm:$0x1] %vm2542_vm13, %v2607_v24 }
 0x6fb   : > { %v2628_v30 = vpop.permute.xlu2 %2627 }
 0x703   : > { %v2614_v14 = vpop.permute.xlu0 %2613  ;;  %v2588_v48 = vpop.permute.xlu2 %2587 }
 0x704   : > { %2616 = vst.msk [vmem:[#allocation3 + $0x1] sm:$0x1] %vm4965_vm8, %v2614_v14 }
 0x705   : > { %2593 = vst.msk [vmem:[#allocation3] sm:$0x1] %vm2592_vm2, %v2588_v48 }
 0x70b   : > { %v2621_v35 = vpop.permute.xlu1 %2620 }
 0x70c   : > { %2623 = vst.msk [vmem:[#allocation3 + $0x1] sm:$0x1] %vm4966_vm9, %v2621_v35 }
 0x70d   : > { %2630 = vst.msk [vmem:[#allocation3 + $0x1] sm:$0x1] %vm4967_vm10, %v2628_v30 }
 0x71b   : > { %v2635_v22 = vpop.permute.xlu0 %2634 }
 0x71c   : > { %2637 = vst.msk [vmem:[#allocation3 + $0x1] sm:$0x1] %vm4969_vm12, %v2635_v22 }
 0x723   : > { %v2642_v21 = vpop.permute.xlu1 %2641 }
 0x724   : > { %2644 = vst.msk [vmem:[#allocation3 + $0x1] sm:$0x1] %vm2592_vm2, %v2642_v21 }
 0x72b   : > { %v2645_v15 = vld [vmem:[#allocation3] sm:$0x3] }
 0x72c   : > { %v2647_v26 = vperm.slane %v2645_v15, 0  ;;  %v2648_v55 = vperm.slane %v2645_v15, 1 }
 0x72e   : > { %v2651_v50 = vmul.f32 %v2647_v26, %v4970_v60  ;;  %v2652_v27 = vmul.f32 %v2648_v55, %v4971_v5  ;;  %v2653_v6 = vmul.f32 %v2647_v26, %v4972_v33  ;;  %v2654_v32 = vmul.f32 %v2648_v55, %v4973_v16 }
 0x72f   : > { %v2655_v45 = vmul.f32 %v2647_v26, %v4974_v7  ;;  %v2656_v40 = vmul.f32 %v2648_v55, %v4975_v46  ;;  %v2657_v51 = vmul.f32 %v2647_v26, %v4976_v38  ;;  %v2658_v56 = vmul.f32 %v2648_v55, %v4977_v53 }
 0x730   : > { %2659 = vst [vmem:[%s239_s13] sm:$0xff] %v2651_v50 }
 0x731   : > { %2660 = vst [vmem:[%s239_s13 + $0x8] sm:$0xff] %v2652_v27 }
 0x732   : > { %2661 = vst [vmem:[%s239_s13 + $0x10] sm:$0xff] %v2653_v6 }
 0x733   : > { %2662 = vst [vmem:[%s239_s13 + $0x18] sm:$0xff] %v2654_v32 }
 0x734   : > { %2663 = vst [vmem:[%s239_s13 + $0x20] sm:$0xff] %v2655_v45 }
 0x735   : > { %2664 = vst [vmem:[%s239_s13 + $0x28] sm:$0xff] %v2656_v40 }
 0x736   : > { %2665 = vst [vmem:[%s239_s13 + $0x30] sm:$0xff] %v2657_v51 }
 0x737   : > { %2666 = vst [vmem:[%s239_s13 + $0x38] sm:$0xff] %v2658_v56 }
 0x738 PF: > { %s17_s20 = sadd.s32 1, %s2967_s20  }
 0x739   : > { %p14_p7 = scmp.ge.s32.totalorder %s17_s20, 4  }
 0x73b   :  { %16 = sbr.rel (!%p14_p7) target bundleno = 3 (0x3), region = 90 }
 0x740   :  { %2688 = vsyncpa [#allocation6], 1 }
 0x741   :  { %2690 = vsyncpa [#allocation6 + $0x1], 1 }

</bundles_post_ra>
